<compile_context>
chip_gen: v6e
topology: v6e:2x2x1
jax: 0.10.0
libtpu: 0.0.40
codegen_flags: <defaults>
</compile_context>

<pallas_src>
import jax
import jax.numpy as jnp
from jax import lax
from jax.experimental import pallas as pl
from jax.experimental.pallas import tpu as pltpu


def dec_block_kernel(xp_ref, w1_ref, b1_ref, w2_ref, b2_ref, o_ref, ybp_ref):
    # xp_ref : (1, H+1, W+1, Cin)   input, zero-padded by one row/col at bottom/right
    # w1_ref : (4*Cin, 4*Cout)      sub-pixel (block-form) deconv1 weights, bf16
    # b1_ref : (1, 4*Cout)          deconv1 bias tiled over the 4 sub-pixel phases, f32
    # w2_ref : (36*Cout, 4*Cout)    block-form deconv2 (stride-1) weights, bf16
    # b2_ref : (1, 4*Cout)
    # o_ref  : (1, H*W, 4*Cout)     output in block form (row = m*W + n, col = (s, t, c))
    # ybp_ref: (H+2, W+2, 4*Cout)   f32 scratch: block-form y1 with a 1-block zero halo
    H = xp_ref.shape[1] - 1
    W = xp_ref.shape[2] - 1
    Cin = xp_ref.shape[3]
    C4 = b1_ref.shape[1]  # 4 * Cout

    # ---- deconv1: ConvTranspose2d(stride=2, pad=1, output_padding=1) as ONE matmul.
    # Output sub-pixel (2m+s, 2n+t) only depends on x[m..m+1, n..n+1]; the 4 taps are
    # concatenated along channels (im2col) and contracted once against w1_ref.
    x = xp_ref[0]                                                   # (H+1, W+1, Cin)
    taps1 = [x[a:a + H, b:b + W, :] for a in (0, 1) for b in (0, 1)]
    patch1 = jnp.concatenate(taps1, axis=-1).reshape(H * W, 4 * Cin)
    y1 = jnp.dot(patch1.astype(jnp.bfloat16), w1_ref[...],
                 preferred_element_type=jnp.float32) + b1_ref[...]
    y1 = jnp.where(y1 >= 0, y1, 0.2 * y1)                           # LeakyReLU(0.2)

    # Block-form y1 with a 1-block zero halo (== zero padding of the fine 2Hx2W map).
    # The scratch persists across grid steps and its interior is fully overwritten every
    # step, so only the thin border strips are (re)zeroed (cheap, and safe when the batch
    # axis is split across cores, unlike a program_id==0 one-time init).
    ybp_ref[0:1, :, :] = jnp.zeros((1, W + 2, C4), jnp.float32)
    ybp_ref[H + 1:H + 2, :, :] = jnp.zeros((1, W + 2, C4), jnp.float32)
    ybp_ref[:, 0:1, :] = jnp.zeros((H + 2, 1, C4), jnp.float32)
    ybp_ref[:, W + 1:W + 2, :] = jnp.zeros((H + 2, 1, C4), jnp.float32)
    ybp_ref[1:H + 1, 1:W + 1, :] = y1.reshape(H, W, C4)

    # ---- deconv2: ConvTranspose2d(stride=1, pad=1) == 3x3 conv with the flipped kernel,
    # evaluated directly in block form with ONE matmul (K = 9 * 4*Cout).
    taps2 = [ybp_ref[dh:dh + H, dw:dw + W, :] for dh in (0, 1, 2) for dw in (0, 1, 2)]
    patch2 = jnp.concatenate(taps2, axis=-1).reshape(H * W, 9 * C4)
    y2 = jnp.dot(patch2.astype(jnp.bfloat16), w2_ref[...],
                 preferred_element_type=jnp.float32) + b2_ref[...]
    o_ref[0] = y2.astype(o_ref.dtype)                               # lane width = 4*Cout


def _build_w1_block(w1):
    """ConvTranspose2d(stride=2, pad=1, out_pad=1) weights (Cin, Cout, 3, 3) -> (4*Cin, 4*Cout).

    Row blocks: input tap (a, b) in {0,1}^2 (x[m+a, n+b]);
    col blocks: output sub-pixel phase (s, t) in {0,1}^2 (fine pixel (2m+s, 2n+t)).
    """
    Cin, Cout = w1.shape[0], w1.shape[1]
    zero = jnp.zeros((Cin, Cout), w1.dtype)
    kidx = {(0, 0): 1, (1, 0): 2, (1, 1): 0}   # (phase, tap) -> kernel index; (0, 1) unused
    rows = []
    for a in (0, 1):
        for b in (0, 1):
            cols = []
            for s in (0, 1):
                for t in (0, 1):
                    kh = kidx.get((s, a))
                    kw = kidx.get((t, b))
                    cols.append(zero if kh is None or kw is None else w1[:, :, kh, kw])
            rows.append(jnp.concatenate(cols, axis=1))
    return jnp.concatenate(rows, axis=0)


def _build_w2_block(w2):
    """ConvTranspose2d(stride=1, pad=1) weights (Cout, Cout, 3, 3) -> (36*Cout, 4*Cout).

    Row blocks: (block offset (dm, dn) in {-1,0,1}^2, input phase (sp, tp));
    col blocks: output phase (s, t).  Matches the 9-tap block-form im2col in the kernel.
    """
    C = w2.shape[0]
    zero = jnp.zeros((C, C), w2.dtype)
    rows = []
    for dm in (-1, 0, 1):
        for dn in (-1, 0, 1):
            for sp in (0, 1):
                for tp in (0, 1):
                    cols = []
                    for s in (0, 1):
                        for t in (0, 1):
                            kh = s + 1 - 2 * dm - sp
                            kw = t + 1 - 2 * dn - tp
                            ok = (0 <= kh <= 2) and (0 <= kw <= 2)
                            cols.append(w2[:, :, kh, kw] if ok else zero)
                    rows.append(jnp.concatenate(cols, axis=1))
    return jnp.concatenate(rows, axis=0)


def dec_block_output_forward(x_nchw, w1, b1, w2, b2, out_size=None):
    """x_nchw: (N, Cin, H, W) f32 -> (N, Cout, 2H, 2W) f32 (DecBlock_output forward)."""
    N, Cin, H, W = x_nchw.shape
    Cout = w1.shape[1]
    C4 = 4 * Cout
    if out_size is not None:
        assert tuple(out_size) == (2 * H, 2 * W), "only out_size == 2 * input is supported"

    x = jnp.transpose(x_nchw, (0, 2, 3, 1)).astype(jnp.float32)       # NHWC
    xp = jnp.pad(x, ((0, 0), (0, 1), (0, 1), (0, 0)))                 # +1 zero row/col (bottom/right)

    w1b = _build_w1_block(w1.astype(jnp.float32)).astype(jnp.bfloat16)
    w2b = _build_w2_block(w2.astype(jnp.float32)).astype(jnp.bfloat16)
    b1b = jnp.tile(b1.astype(jnp.float32), 4).reshape(1, C4)
    b2b = jnp.tile(b2.astype(jnp.float32), 4).reshape(1, C4)

    out_blk = pl.pallas_call(
        dec_block_kernel,
        out_shape=jax.ShapeDtypeStruct((N, H * W, C4), jnp.float32),
        grid=(N,),
        in_specs=[
            pl.BlockSpec((1, H + 1, W + 1, Cin), lambda b: (b, 0, 0, 0)),
            pl.BlockSpec((4 * Cin, C4), lambda b: (0, 0)),
            pl.BlockSpec((1, C4), lambda b: (0, 0)),
            pl.BlockSpec((9 * C4, C4), lambda b: (0, 0)),
            pl.BlockSpec((1, C4), lambda b: (0, 0)),
        ],
        out_specs=pl.BlockSpec((1, H * W, C4), lambda b: (b, 0, 0)),
        scratch_shapes=[pltpu.VMEM((H + 2, W + 2, C4), jnp.float32)],
        compiler_params=pltpu.CompilerParams(dimension_semantics=("parallel",)),
    )(xp, w1b, b1b, w2b, b2b)

    # depth-to-space: (N, H*W, (s, t, c)) -> (N, 2H, 2W, C) -> NCHW (cheap XLA reshapes).
    out = out_blk.reshape(N, H, W, 2, 2, Cout)
    out = jnp.transpose(out, (0, 1, 3, 2, 4, 5)).reshape(N, 2 * H, 2 * W, Cout)
    return jnp.transpose(out, (0, 3, 1, 2))


def init_params(key, nin, nout, kernel=3):
    """Deterministic PyTorch-style uniform init; weights in ConvTranspose2d layout
    (in_channels, out_channels, kH, kW)."""
    k1, k2, k3, k4 = jax.random.split(key, 4)
    bound1 = 1.0 / (nin * kernel * kernel) ** 0.5
    bound2 = 1.0 / (nout * kernel * kernel) ** 0.5
    w1 = jax.random.uniform(k1, (nin, nout, kernel, kernel), jnp.float32, -bound1, bound1)
    b1 = jax.random.uniform(k2, (nout,), jnp.float32, -bound1, bound1)
    w2 = jax.random.uniform(k3, (nout, nout, kernel, kernel), jnp.float32, -bound2, bound2)
    b2 = jax.random.uniform(k4, (nout,), jnp.float32, -bound2, bound2)
    return w1, b1, w2, b2


def ref_forward(x_nchw, w1, b1, w2, b2):
    """Pure-JAX reference matching PyTorch DecBlock_output.forward (out_size = 2*input)."""
    x = jnp.transpose(x_nchw, (0, 2, 3, 1)).astype(jnp.float32)
    dn = ('NHWC', 'HWIO', 'NHWC')
    # ConvTranspose == fractionally-strided cross-correlation with the flipped kernel.
    w1f = jnp.flip(jnp.transpose(w1, (2, 3, 0, 1)), axis=(0, 1))
    w2f = jnp.flip(jnp.transpose(w2, (2, 3, 0, 1)), axis=(0, 1))
    y = lax.conv_general_dilated(x, w1f, window_strides=(1, 1),
                                 padding=((1, 2), (1, 2)), lhs_dilation=(2, 2),
                                 dimension_numbers=dn,
                                 precision=lax.Precision.HIGHEST) + b1
    y = jnp.where(y >= 0, y, 0.2 * y)
    y = lax.conv_general_dilated(y, w2f, window_strides=(1, 1),
                                 padding=((1, 1), (1, 1)),
                                 dimension_numbers=dn,
                                 precision=lax.Precision.HIGHEST) + b2
    return jnp.transpose(y, (0, 3, 1, 2))


if __name__ == "__main__":
    key = jax.random.PRNGKey(0)
    N, nin, nout, H, W = 2, 8, 8, 16, 16
    kx, kp = jax.random.split(key)
    x = jax.random.normal(kx, (N, nin, H, W), jnp.float32)
    w1, b1, w2, b2 = init_params(kp, nin, nout)

    out = dec_block_output_forward(x, w1, b1, w2, b2, out_size=(2 * H, 2 * W))
    out = jax.block_until_ready(out)
    assert out.shape == (N, nout, 2 * H, 2 * W), out.shape

    ref = ref_forward(x, w1, b1, w2, b2)
    if not bool(jnp.allclose(out, ref, atol=2e-2, rtol=2e-2)):
        raise AssertionError(
            f"mismatch vs reference, max abs err = {float(jnp.max(jnp.abs(out - ref)))}")
    print("KERNEL_OK")
</pallas_src>

<mosaic_0001>
module attributes {stable_mosaic.version = 11 : i64} {
  func.func @dec_block_kernel(%arg0: i32, %arg1: memref<1x17x17x8xf32, #tpu.memory_space<vmem>>, %arg2: memref<32x32xbf16, #tpu.memory_space<vmem>>, %arg3: memref<1x32xf32, #tpu.memory_space<vmem>>, %arg4: memref<288x32xbf16, #tpu.memory_space<vmem>>, %arg5: memref<1x32xf32, #tpu.memory_space<vmem>>, %arg6: memref<1x256x32xf32, #tpu.memory_space<vmem>>, %arg7: memref<18x18x32xf32, #tpu.memory_space<vmem>>) attributes {dimension_semantics = [#tpu.dimension_semantics<parallel>], iteration_bounds = array<i64: 2>, scalar_prefetch = 0 : i64, scratch_operands = 1 : i64, tpu.core_type = #tpu.core_type<tc>, window_params = [{transform_indices = @transform_0, window_bounds = array<i64: 1, 17, 17, 8>}, {pipeline_mode = #tpu.pipeline_mode<synchronous>, transform_indices = @transform_1, window_bounds = array<i64: 32, 32>}, {pipeline_mode = #tpu.pipeline_mode<synchronous>, transform_indices = @transform_2, window_bounds = array<i64: 1, 32>}, {pipeline_mode = #tpu.pipeline_mode<synchronous>, transform_indices = @transform_3, window_bounds = array<i64: 288, 32>}, {pipeline_mode = #tpu.pipeline_mode<synchronous>, transform_indices = @transform_4, window_bounds = array<i64: 1, 32>}, {transform_indices = @transform_5, window_bounds = array<i64: 1, 256, 32>}]} {
    %c0 = arith.constant 0 : index
    %c0_0 = arith.constant 0 : index
    %c0_1 = arith.constant 0 : index
    %c0_2 = arith.constant 0 : index
    %0 = vector.load %arg1[%c0, %c0_0, %c0_1, %c0_2] : memref<1x17x17x8xf32, #tpu.memory_space<vmem>>, vector<1x17x17x8xf32>
    %1 = vector.shape_cast %0 : vector<1x17x17x8xf32> to vector<17x17x8xf32>
    %2 = vector.extract_strided_slice %1 {offsets = [0, 0, 0], sizes = [16, 16, 8], strides = [1, 1, 1]} : vector<17x17x8xf32> to vector<16x16x8xf32>
    %3 = vector.extract_strided_slice %1 {offsets = [0, 1, 0], sizes = [16, 16, 8], strides = [1, 1, 1]} : vector<17x17x8xf32> to vector<16x16x8xf32>
    %4 = vector.extract_strided_slice %1 {offsets = [1, 0, 0], sizes = [16, 16, 8], strides = [1, 1, 1]} : vector<17x17x8xf32> to vector<16x16x8xf32>
    %5 = vector.extract_strided_slice %1 {offsets = [1, 1, 0], sizes = [16, 16, 8], strides = [1, 1, 1]} : vector<17x17x8xf32> to vector<16x16x8xf32>
    %6 = tpu.concatenate %2, %3, %4, %5 in 2 : vector<16x16x8xf32>, vector<16x16x8xf32>, vector<16x16x8xf32>, vector<16x16x8xf32> -> vector<16x16x32xf32>
    %7 = vector.shape_cast %6 : vector<16x16x32xf32> to vector<256x32xf32>
    %8 = arith.truncf %7 : vector<256x32xf32> to vector<256x32xbf16>
    %c0_3 = arith.constant 0 : index
    %c0_4 = arith.constant 0 : index
    %9 = vector.load %arg2[%c0_3, %c0_4] : memref<32x32xbf16, #tpu.memory_space<vmem>>, vector<32x32xbf16>
    %cst = arith.constant dense<0.000000e+00> : vector<256x32xf32>
    %10 = tpu.matmul %8, %9, %cst {dimension_numbers = #tpu.dot_dimension_numbers<[1], [0], [0], [1], [0, 0, 1, 1], [], []>} : vector<256x32xbf16>, vector<32x32xbf16>, vector<256x32xf32> -> vector<256x32xf32>
    %c0_5 = arith.constant 0 : index
    %c0_6 = arith.constant 0 : index
    %11 = vector.load %arg3[%c0_5, %c0_6] : memref<1x32xf32, #tpu.memory_space<vmem>>, vector<1x32xf32>
    %12 = vector.broadcast %11 : vector<1x32xf32> to vector<256x32xf32>
    %13 = arith.addf %10, %12 : vector<256x32xf32>
    %cst_7 = arith.constant 0.000000e+00 : f32
    %14 = vector.broadcast %cst_7 : f32 to vector<256x32xf32>
    %15 = arith.cmpf oge, %13, %14 : vector<256x32xf32>
    %cst_8 = arith.constant 2.000000e-01 : f32
    %16 = vector.broadcast %cst_8 : f32 to vector<256x32xf32>
    %17 = arith.mulf %16, %13 : vector<256x32xf32>
    %18 = arith.select %15, %13, %17 : vector<256x32xi1>, vector<256x32xf32>
    %cst_9 = arith.constant 0.000000e+00 : f32
    %19 = vector.broadcast %cst_9 : f32 to vector<1x18x32xf32>
    %c0_10 = arith.constant 0 : index
    %c0_11 = arith.constant 0 : index
    %c0_12 = arith.constant 0 : index
    %20 = vector.load %arg7[%c0_10, %c0_11, %c0_12] : memref<18x18x32xf32, #tpu.memory_space<vmem>>, vector<1x18x32xf32>
    tpu.vector_store %arg7[%c0_10, %c0_11, %c0_12], %19 {strides = array<i32>} : memref<18x18x32xf32, #tpu.memory_space<vmem>>, vector<1x18x32xf32>,
    %cst_13 = arith.constant 0.000000e+00 : f32
    %21 = vector.broadcast %cst_13 : f32 to vector<1x18x32xf32>
    %c17 = arith.constant 17 : index
    %c0_14 = arith.constant 0 : index
    %c0_15 = arith.constant 0 : index
    %22 = vector.load %arg7[%c17, %c0_14, %c0_15] : memref<18x18x32xf32, #tpu.memory_space<vmem>>, vector<1x18x32xf32>
    tpu.vector_store %arg7[%c17, %c0_14, %c0_15], %21 {strides = array<i32>} : memref<18x18x32xf32, #tpu.memory_space<vmem>>, vector<1x18x32xf32>,
    %cst_16 = arith.constant 0.000000e+00 : f32
    %23 = vector.broadcast %cst_16 : f32 to vector<18x1x32xf32>
    %c0_17 = arith.constant 0 : index
    %c0_18 = arith.constant 0 : index
    %c0_19 = arith.constant 0 : index
    %24 = vector.load %arg7[%c0_17, %c0_18, %c0_19] : memref<18x18x32xf32, #tpu.memory_space<vmem>>, vector<18x1x32xf32>
    tpu.vector_store %arg7[%c0_17, %c0_18, %c0_19], %23 {strides = array<i32>} : memref<18x18x32xf32, #tpu.memory_space<vmem>>, vector<18x1x32xf32>,
    %cst_20 = arith.constant 0.000000e+00 : f32
    %25 = vector.broadcast %cst_20 : f32 to vector<18x1x32xf32>
    %c0_21 = arith.constant 0 : index
    %c17_22 = arith.constant 17 : index
    %c0_23 = arith.constant 0 : index
    %26 = vector.load %arg7[%c0_21, %c17_22, %c0_23] : memref<18x18x32xf32, #tpu.memory_space<vmem>>, vector<18x1x32xf32>
    tpu.vector_store %arg7[%c0_21, %c17_22, %c0_23], %25 {strides = array<i32>} : memref<18x18x32xf32, #tpu.memory_space<vmem>>, vector<18x1x32xf32>,
    %27 = vector.shape_cast %18 : vector<256x32xf32> to vector<16x16x32xf32>
    %c1 = arith.constant 1 : index
    %c1_24 = arith.constant 1 : index
    %c0_25 = arith.constant 0 : index
    %28 = vector.load %arg7[%c1, %c1_24, %c0_25] : memref<18x18x32xf32, #tpu.memory_space<vmem>>, vector<16x16x32xf32>
    tpu.vector_store %arg7[%c1, %c1_24, %c0_25], %27 {strides = array<i32>} : memref<18x18x32xf32, #tpu.memory_space<vmem>>, vector<16x16x32xf32>,
    %c0_26 = arith.constant 0 : index
    %c0_27 = arith.constant 0 : index
    %c0_28 = arith.constant 0 : index
    %29 = vector.load %arg7[%c0_26, %c0_27, %c0_28] : memref<18x18x32xf32, #tpu.memory_space<vmem>>, vector<16x16x32xf32>
    %c0_29 = arith.constant 0 : index
    %c1_30 = arith.constant 1 : index
    %c0_31 = arith.constant 0 : index
    %30 = vector.load %arg7[%c0_29, %c1_30, %c0_31] : memref<18x18x32xf32, #tpu.memory_space<vmem>>, vector<16x16x32xf32>
    %c0_32 = arith.constant 0 : index
    %c2 = arith.constant 2 : index
    %c0_33 = arith.constant 0 : index
    %31 = vector.load %arg7[%c0_32, %c2, %c0_33] : memref<18x18x32xf32, #tpu.memory_space<vmem>>, vector<16x16x32xf32>
    %c1_34 = arith.constant 1 : index
    %c0_35 = arith.constant 0 : index
    %c0_36 = arith.constant 0 : index
    %32 = vector.load %arg7[%c1_34, %c0_35, %c0_36] : memref<18x18x32xf32, #tpu.memory_space<vmem>>, vector<16x16x32xf32>
    %c1_37 = arith.constant 1 : index
    %c1_38 = arith.constant 1 : index
    %c0_39 = arith.constant 0 : index
    %33 = vector.load %arg7[%c1_37, %c1_38, %c0_39] : memref<18x18x32xf32, #tpu.memory_space<vmem>>, vector<16x16x32xf32>
    %c1_40 = arith.constant 1 : index
    %c2_41 = arith.constant 2 : index
    %c0_42 = arith.constant 0 : index
    %34 = vector.load %arg7[%c1_40, %c2_41, %c0_42] : memref<18x18x32xf32, #tpu.memory_space<vmem>>, vector<16x16x32xf32>
    %c2_43 = arith.constant 2 : index
    %c0_44 = arith.constant 0 : index
    %c0_45 = arith.constant 0 : index
    %35 = vector.load %arg7[%c2_43, %c0_44, %c0_45] : memref<18x18x32xf32, #tpu.memory_space<vmem>>, vector<16x16x32xf32>
    %c2_46 = arith.constant 2 : index
    %c1_47 = arith.constant 1 : index
    %c0_48 = arith.constant 0 : index
    %36 = vector.load %arg7[%c2_46, %c1_47, %c0_48] : memref<18x18x32xf32, #tpu.memory_space<vmem>>, vector<16x16x32xf32>
    %c2_49 = arith.constant 2 : index
    %c2_50 = arith.constant 2 : index
    %c0_51 = arith.constant 0 : index
    %37 = vector.load %arg7[%c2_49, %c2_50, %c0_51] : memref<18x18x32xf32, #tpu.memory_space<vmem>>, vector<16x16x32xf32>
    %38 = tpu.concatenate %29, %30, %31, %32, %33, %34, %35, %36, %37 in 2 : vector<16x16x32xf32>, vector<16x16x32xf32>, vector<16x16x32xf32>, vector<16x16x32xf32>, vector<16x16x32xf32>, vector<16x16x32xf32>, vector<16x16x32xf32>, vector<16x16x32xf32>, vector<16x16x32xf32> -> vector<16x16x288xf32>
    %39 = vector.shape_cast %38 : vector<16x16x288xf32> to vector<256x288xf32>
    %40 = arith.truncf %39 : vector<256x288xf32> to vector<256x288xbf16>
    %c0_52 = arith.constant 0 : index
    %c0_53 = arith.constant 0 : index
    %41 = vector.load %arg4[%c0_52, %c0_53] : memref<288x32xbf16, #tpu.memory_space<vmem>>, vector<288x32xbf16>
    %cst_54 = arith.constant dense<0.000000e+00> : vector<256x32xf32>
    %42 = tpu.matmul %40, %41, %cst_54 {dimension_numbers = #tpu.dot_dimension_numbers<[1], [0], [0], [1], [0, 0, 1, 1], [], []>} : vector<256x288xbf16>, vector<288x32xbf16>, vector<256x32xf32> -> vector<256x32xf32>
    %c0_55 = arith.constant 0 : index
    %c0_56 = arith.constant 0 : index
    %43 = vector.load %arg5[%c0_55, %c0_56] : memref<1x32xf32, #tpu.memory_space<vmem>>, vector<1x32xf32>
    %44 = vector.broadcast %43 : vector<1x32xf32> to vector<256x32xf32>
    %45 = arith.addf %42, %44 : vector<256x32xf32>
    %c0_57 = arith.constant 0 : index
    %c0_58 = arith.constant 0 : index
    %c0_59 = arith.constant 0 : index
    %46 = vector.load %arg6[%c0_57, %c0_58, %c0_59] : memref<1x256x32xf32, #tpu.memory_space<vmem>>, vector<1x256x32xf32>
    %47 = vector.shape_cast %46 : vector<1x256x32xf32> to vector<256x32xf32>
    %48 = vector.shape_cast %45 : vector<256x32xf32> to vector<1x256x32xf32>
    tpu.vector_store %arg6[%c0_57, %c0_58, %c0_59], %48 {strides = array<i32>} : memref<1x256x32xf32, #tpu.memory_space<vmem>>, vector<1x256x32xf32>,
    return
  }
  func.func @transform_0(%arg0: i32) -> (i32, i32, i32, i32) {
    %c0_i32 = arith.constant 0 : i32
    %c0_i32_0 = arith.constant 0 : i32
    %c0_i32_1 = arith.constant 0 : i32
    %c0_i32_2 = arith.constant 0 : i32
    return %arg0, %c0_i32, %c0_i32_0, %c0_i32_1 : i32, i32, i32, i32
  }
  func.func @transform_1(%arg0: i32) -> (i32, i32) {
    %c0_i32 = arith.constant 0 : i32
    %c0_i32_0 = arith.constant 0 : i32
    %c0_i32_1 = arith.constant 0 : i32
    return %c0_i32, %c0_i32_0 : i32, i32
  }
  func.func @transform_2(%arg0: i32) -> (i32, i32) {
    %c0_i32 = arith.constant 0 : i32
    %c0_i32_0 = arith.constant 0 : i32
    %c0_i32_1 = arith.constant 0 : i32
    return %c0_i32, %c0_i32_0 : i32, i32
  }
  func.func @transform_3(%arg0: i32) -> (i32, i32) {
    %c0_i32 = arith.constant 0 : i32
    %c0_i32_0 = arith.constant 0 : i32
    %c0_i32_1 = arith.constant 0 : i32
    return %c0_i32, %c0_i32_0 : i32, i32
  }
  func.func @transform_4(%arg0: i32) -> (i32, i32) {
    %c0_i32 = arith.constant 0 : i32
    %c0_i32_0 = arith.constant 0 : i32
    %c0_i32_1 = arith.constant 0 : i32
    return %c0_i32, %c0_i32_0 : i32, i32
  }
  func.func @transform_5(%arg0: i32) -> (i32, i32, i32) {
    %c0_i32 = arith.constant 0 : i32
    %c0_i32_0 = arith.constant 0 : i32
    %c0_i32_1 = arith.constant 0 : i32
    return %arg0, %c0_i32, %c0_i32_0 : i32, i32, i32
  }
}

</mosaic_0001>

<bundles_post_ra>
// kernel: tpu_custom_call.1
= control target key start
LH: loop header
LB: loop body
LE: loop exit
PB: predicated region body
PF: predicated region fallthrough
CT: control target
= control target key end

     0   :  { %s4237_s18 = smov 0   ;;  %s5647_s0 = inlined_call_operand.vmem [shape: f32[2,17,17,8], index: 0, kind: input, shape index: {}]   ;;  %s5648_s1 = inlined_call_operand.vmem [shape: bf16[32,32], index: 1, kind: input, shape index: {}]   ;;  %s5649_s2 = inlined_call_operand.vmem [shape: f32[1,32], index: 2, kind: input, shape index: {}]   ;;  %s5650_s3 = inlined_call_operand.vmem [shape: bf16[288,32], index: 3, kind: input, shape index: {}]   ;;  %s5651_s4 = inlined_call_operand.vmem [shape: f32[1,32], index: 4, kind: input, shape index: {}]   ;;  %s5652_s5 = inlined_call_operand.vmem [shape: f32[2,256,32], index: 5, kind: output, shape index: {}]  }
   0x1 LB: > { %s3131_s19 = sadd.s32 4294967295, %s4198_s18   ;;  %p3135_p0 = scmp.ge.s32.totalorder %s4198_s18, 1  ;;  %s4198_s18 = sphi %s4237_s18, %s15_s18  }
   0x2   : > { %p187_p1 = scmp.lt.s32.totalorder %s4198_s18, 3 }
   0x4   : > { %p188_p2 = pnand %p3135_p0, %p187_p1 }
   0x5   : > { %p215_p3 = scmp.lt.s32.totalorder (!%p188_p2), %s3131_s19, 1  ;;  %s4200_s26 = smov (!%p188_p2), 16  }
   0x6   : > { %191 = sbr.rel (%p188_p2) target bundleno = 875 (0x36b), region = 40  ;;  %s4201_s27 = smov (!%p188_p2), 8  }
   0x7   : > { %s4202_s28 = smov (!%p188_p2), 24   ;;  %s4204_s6 = smov (!%p188_p2), 32  }
   0x8   : > { %s4205_s7 = smov (!%p188_p2), 64   ;;  %s4206_s13 = smov (!%p188_p2), 96  }
   0xb   : > { %s5654_s19 = smov (!%p215_p3, %s3131_s19), 1  ;;  %v4168_v0 = vld [vmem:[%s5648_s1 + $0x8] sm:$0xff]   ;;  %vm325_vm0 = vcmask 1046528   ;;  %v4169_v57 = vld [vmem:[%s5648_s1] sm:$0xff]   ;;  %vm702_vm1 = vcmask 64512   ;;  %vm735_vm2 = vcmask 130048  }
   0xc   : > { %s3432_s20 = smul.u32 408, %s5654_s19  ;;  %3344 = vmatprep.subr.bf16.mxu0 %v4168_v0  ;;  %vm768_vm3 = vcmask 195584   ;;  %vm840_vm4 = vcmask 261120   ;;  %vm1148_vm5 = vcmask 254976   ;;  %vm1154_vm6 = vcmask 253952  }
   0xd   : > { %3345 = vmatpush3.bf16.msra.mxu0 %v4168_v0 }
   0xe   : > { %s4254_s25 = scalar_lea.vmem %s5647_s0, %s3432_s20  ;;  %3346 = vmatprep.subr.bf16.mxu0 %v4169_v57 }
   0xf   : > { %v4257_v1 = vld [vmem:[%s4254_s25 + $0x18] sm:$0xff]  ;;  %v4260_v2 = vld [vmem:[%s4254_s25 + $0x20] sm:$0xff]  ;;  %v4270_v7 = vld [vmem:[%s4254_s25 + $0x8] sm:$0xff] }
  0x10   : > { %v4263_v3 = vld [vmem:[%s4254_s25] sm:$0xff]  ;;  %v332_v4 = vrot.slane %v4260_v2, 1  ;;  %v3448_v5 = vpack.i.bf16 %v4260_v2, %v4257_v1  ;;  %v331_v6 = vrot.slane %v4257_v1, 1  ;;  %v228_v8 = vld [vmem:[%s4254_s25 + $0x10] sm:$0x1]  ;;  %v327_v10 = vrot.slane %v4270_v7, 1 }
  0x11   : > { %v326_v9 = vrot.slane %v4263_v3, 1  ;;  %v329_v11 = vrot.slane %v228_v8, 1  ;;  %v4276_v12 = vld [vmem:[%s4254_s25 + $0x30] sm:$0xff]  ;;  %v4279_v13 = vld [vmem:[%s4254_s25 + $0x38] sm:$0xff]  ;;  %v231_v14 = vld [vmem:[%s4254_s25 + $0x28] sm:$0x1]  ;;  %3347 = vmatpush3.bf16.msra.mxu0 %v4169_v57 }
  0x12   : > { %3449 = vrot.lane.b32.xlu1 %v3448_v5, %s4200_s26  ;;  %v337_v15 = vrot.slane %v4279_v13, 1  ;;  %v3453_v16 = vpack.i.bf16 %v4279_v13, %v4276_v12  ;;  %v336_v17 = vrot.slane %v4276_v12, 1  ;;  %v333_v18 = vsel %vm325_vm0, %v331_v6, %v332_v4  ;;  %v234_v19 = vld [vmem:[%s4254_s25 + $0x40] sm:$0x1]  ;;  %v4290_v20 = vld [vmem:[%s4254_s25 + $0x48] sm:$0xff]  ;;  %v4293_v21 = vld [vmem:[%s4254_s25 + $0x50] sm:$0xff] }
  0x13   : > { %v328_v22 = vsel %vm325_vm0, %v326_v9, %v327_v10  ;;  %v330_v23 = vsel %vm325_vm0, %v327_v10, %v329_v11  ;;  %v334_v24 = vrot.slane %v231_v14, 1  ;;  %v339_v25 = vrot.slane %v234_v19, 1  ;;  %v237_v26 = vld [vmem:[%s4254_s25 + $0x58] sm:$0x1]  ;;  %v4308_v38 = vld [vmem:[%s4254_s25 + $0x60] sm:$0xff]  ;;  %v4311_v39 = vld [vmem:[%s4254_s25 + $0x68] sm:$0xff] }
  0x14   : > { %v3458_v27 = vpack.i.bf16 %v330_v23, %v328_v22  ;;  %v338_v28 = vsel %vm325_vm0, %v336_v17, %v337_v15  ;;  %v341_v29 = vrot.slane %v4290_v20, 1  ;;  %v342_v30 = vrot.slane %v4293_v21, 1  ;;  %v240_v40 = vld [vmem:[%s4254_s25 + $0x70] sm:$0x1]  ;;  %v4319_v45 = vld [vmem:[%s4254_s25 + $0x78] sm:$0xff]  ;;  %v4322_v46 = vld [vmem:[%s4254_s25 + $0x80] sm:$0xff] }
  0x15   : > { %v335_v31 = vsel %vm325_vm0, %v332_v4, %v334_v24  ;;  %v340_v32 = vsel %vm325_vm0, %v337_v15, %v339_v25  ;;  %v344_v33 = vrot.slane %v237_v26, 1  ;;  %v347_v42 = vrot.slane %v4311_v39, 1  ;;  %v243_v47 = vld [vmem:[%s4254_s25 + $0x88] sm:$0x1]  ;;  %v4331_v50 = vld [vmem:[%s4254_s25 + $0x90] sm:$0xff]  ;;  %v4334_v51 = vld [vmem:[%s4254_s25 + $0x98] sm:$0xff] }
  0x16   : > { %3459 = vrot.lane.b32.xlu0 %v3458_v27, %s4201_s27  ;;  %3454 = vrot.lane.b32.xlu1 %v3453_v16, %s4200_s26  ;;  %v3463_v34 = vpack.i.bf16 %v335_v31, %v333_v18  ;;  %v3473_v35 = vpack.i.bf16 %v340_v32, %v338_v28  ;;  %v343_v36 = vsel %vm325_vm0, %v341_v29, %v342_v30  ;;  %v346_v43 = vrot.slane %v4308_v38, 1  ;;  %v246_v56 = vld [vmem:[%s4254_s25 + $0xa0] sm:$0x1]  ;;  %v4344_v58 = vld [vmem:[%s4254_s25 + $0xa8] sm:$0xff] }
  0x17   : > { %v345_v37 = vsel %vm325_vm0, %v342_v30, %v344_v33  ;;  %v349_v44 = vrot.slane %v240_v40, 1  ;;  %v3493_v48 = vpack.i.bf16 %v4311_v39, %v4308_v38  ;;  %v351_v53 = vrot.slane %v4319_v45, 1  ;;  %v4348_v60 = vld [vmem:[%s4254_s25 + $0xb0] sm:$0xff]  ;;  %v249_v61 = vld [vmem:[%s4254_s25 + $0xb8] sm:$0x1]  ;;  %v4352_v62 = vld [vmem:[%s4254_s25 + $0x128] sm:$0xff] }
  0x18   : > { %v3483_v41 = vpack.i.bf16 %v345_v37, %v343_v36  ;;  %v348_v49 = vsel %vm325_vm0, %v346_v43, %v347_v42  ;;  %v352_v54 = vrot.slane %v4322_v46, 1  ;;  %v354_v55 = vrot.slane %v243_v47, 1  ;;  %v4362_v9 = vld [vmem:[%s4254_s25 + $0x120] sm:$0xff]  ;;  %v264_v10 = vld [vmem:[%s4254_s25 + $0x130] sm:$0x1]  ;;  %v4367_v14 = vld [vmem:[%s4254_s25 + $0x138] sm:$0xff] }
  0x19   : > { %v350_v52 = vsel %vm325_vm0, %v347_v42, %v349_v44  ;;  %v357_v59 = vrot.slane %v4334_v51, 1  ;;  %v3488_v63 = vpack.i.bf16 %v4293_v21, %v4290_v20  ;;  %v356_v4 = vrot.slane %v4331_v50, 1  ;;  %v4370_v15 = vld [vmem:[%s4254_s25 + $0x140] sm:$0xff]  ;;  %v267_v22 = vld [vmem:[%s4254_s25 + $0x148] sm:$0x1]  ;;  %v4380_v23 = vld [vmem:[%s4254_s25 + $0x158] sm:$0xff] }
  0x1a   : > { %3464 = vrot.lane.b32.xlu0 %v3463_v34, %s4201_s27  ;;  %3474 = vrot.lane.b32.xlu1 %v3473_v35, %s4202_s28  ;;  %v3503_v0 = vpack.i.bf16 %v350_v52, %v348_v49  ;;  %v359_v5 = vrot.slane %v246_v56, 1  ;;  %v353_v6 = vsel %vm325_vm0, %v351_v53, %v352_v54  ;;  %v355_v8 = vsel %vm325_vm0, %v352_v54, %v354_v55  ;;  %v4385_v26 = vld [vmem:[%s4254_s25 + $0x150] sm:$0xff]  ;;  %v270_v27 = vld [vmem:[%s4254_s25 + $0x160] sm:$0x1] }
  0x1b   : > { %v361_v11 = vrot.slane %v4344_v58, 1  ;;  %v4374_v16 = vpack.i.bf16 %v355_v8, %v353_v6  ;;  %v362_v17 = vrot.slane %v4348_v60, 1  ;;  %v364_v18 = vrot.slane %v249_v61, 1  ;;  %v4394_v32 = vld [vmem:[%s4254_s25 + $0x168] sm:$0xff]  ;;  %v4397_v33 = vld [vmem:[%s4254_s25 + $0x170] sm:$0xff] }
  0x1c   : > { %v387_v19 = vrot.slane %v4352_v62, 1  ;;  %v358_v24 = vsel %vm325_vm0, %v356_v4, %v357_v59  ;;  %v360_v25 = vsel %vm325_vm0, %v357_v59, %v359_v5  ;;  %v3518_v28 = vpack.i.bf16 %v4322_v46, %v4319_v45  ;;  %v4403_v40 = vld [vmem:[%s4254_s25 + $0x188] sm:$0xff]  ;;  %v276_v55 = vld [vmem:[%s4254_s25 + $0x190] sm:$0x1]  ;;  %v4429_v5 = vld [vmem:[%s4254_s25 + $0xc0] sm:$0xff] }
  0x1d   : > { %v3523_v29 = vpack.i.bf16 %v4334_v51, %v4331_v50  ;;  %v386_v30 = vrot.slane %v4362_v9, 1  ;;  %v389_v31 = vrot.slane %v264_v10, 1  ;;  %v392_v36 = vrot.slane %v4370_v15, 1 }
  0x1e   : > { %3469 = vrot.lane.b32.xlu0 %v3463_v34, %s4202_s28  ;;  %3484 = vrot.lane.b32.xlu1 %v3483_v41, %s4201_s27  ;;  %v273_v34 = vld [vmem:[%s4254_s25 + $0x178] sm:$0x1]  ;;  %v394_v37 = vrot.slane %v267_v22, 1  ;;  %v3533_v42 = vpack.i.bf16 %v360_v25, %v358_v24  ;;  %v397_v47 = vrot.slane %v4380_v23, 1  ;;  %v399_v54 = vrot.slane %v270_v27, 1  ;;  %v4439_v22 = vld [vmem:[%s4254_s25 + $0xc8] sm:$0xff] }
  0x1f   : > { %v388_v43 = vsel %vm325_vm0, %v386_v30, %v387_v19  ;;  %v390_v44 = vsel %vm325_vm0, %v387_v19, %v389_v31  ;;  %v363_v56 = vsel %vm325_vm0, %v361_v11, %v362_v17  ;;  %v401_v57 = vrot.slane %v4394_v32, 1 }
  0x20   : > { %v395_v52 = vsel %vm325_vm0, %v392_v36, %v394_v37  ;;  %v402_v59 = vrot.slane %v4397_v33, 1  ;;  %v404_v61 = vrot.slane %v273_v34, 1  ;;  %v365_v4 = vsel %vm325_vm0, %v362_v17, %v364_v18  ;;  %v252_v17 = vld [vmem:[%s4254_s25 + $0xd0] sm:$0x1]  ;;  %v4459_v37 = vld [vmem:[%s4254_s25 + $0xe0] sm:$0xff] }
  0x21   : > { %v400_v8 = vsel %vm325_vm0, %v397_v47, %v399_v54  ;;  %v602_v10 = vrot.slane %v4403_v40, 1  ;;  %v604_v25 = vrot.slane %v276_v55, 1  ;;  %v3543_v27 = vpack.i.bf16 %v365_v4, %v363_v56  ;;  %v258_v4 = vld [vmem:[%s4254_s25 + $0x100] sm:$0x1] }
  0x22   : > { %3479 = vrot.lane.b32.xlu0 %v3473_v35, %s4201_s27  ;;  %3494 = vrot.lane.b32.xlu1 %v3493_v48, %s4200_s26  ;;  %v391_v35 = vrot.slane %v4367_v14, 1  ;;  %v4411_v48 = vpack.i.bf16 %v390_v44, %v388_v43  ;;  %v403_v19 = vsel %vm325_vm0, %v401_v57, %v402_v59  ;;  %v367_v30 = vrot.slane %v4439_v22, 1  ;;  %v255_v43 = vld [vmem:[%s4254_s25 + $0xe8] sm:$0x1] }
  0x23   : > { %v366_v31 = vrot.slane %v4429_v5, 1  ;;  %v369_v34 = vrot.slane %v252_v17, 1  ;;  %v3553_v44 = vpack.i.bf16 %v4439_v22, %v4429_v5  ;;  %v374_v54 = vrot.slane %v255_v43, 1  ;;  %v261_v17 = vld [vmem:[%s4254_s25 + $0x118] sm:$0x1] }
  0x24   : > { %v393_v49 = vsel %vm325_vm0, %v391_v35, %v392_v36  ;;  %v4453_v35 = vld [vmem:[%s4254_s25 + $0xd8] sm:$0xff]  ;;  %v4456_v36 = vsel %vm325_vm0, %v602_v10, %v604_v25  ;;  %v384_v43 = vrot.slane %v261_v17, 1 }
  0x25   : > { %v4415_v53 = vpack.i.bf16 %v395_v52, %v393_v49  ;;  %v368_v49 = vsel %vm325_vm0, %v366_v31, %v367_v30  ;;  %v370_v52 = vsel %vm325_vm0, %v367_v30, %v369_v34 }
  0x26   : > { %3489 = vrot.lane.b32.xlu0 %v3488_v63, %s4200_s26  ;;  %3504 = vrot.lane.b32.xlu1 %v3503_v0, %s4202_s28  ;;  %v4423_v63 = vld [vmem:[%s4254_s25 + $0x180] sm:$0xff]  ;;  %v3563_v55 = vpack.i.bf16 %v370_v52, %v368_v49 }
  0x27   : > { %v601_v24 = vrot.slane %v4423_v63, 1 }
  0x2a   : > { %3499 = vrot.lane.b32.xlu0 %v3483_v41, %s4202_s28  ;;  %3514 = vrot.lane.b32.xlu1 %v4374_v16, %s4201_s27  ;;  %v396_v41 = vrot.slane %v4385_v26, 1 }
  0x2c   : > { %v398_v6 = vsel %vm325_vm0, %v396_v41, %v397_v47  ;;  %v371_v47 = vrot.slane %v4453_v35, 1  ;;  %v372_v41 = vrot.slane %v4459_v37, 1 }
  0x2d   : > { %v4434_v11 = vpack.i.bf16 %v400_v8, %v398_v6 }
  0x2e   : > { %3509 = vrot.lane.b32.xlu0 %v3503_v0, %s4201_s27  ;;  %3524 = vrot.lane.b32.xlu1 %v3523_v29, %s4200_s26  ;;  %v405_v0 = vsel %vm325_vm0, %v402_v59, %v404_v61  ;;  %v4448_v29 = vsel %vm325_vm0, %v601_v24, %v602_v10  ;;  %v373_v56 = vsel %vm325_vm0, %v371_v47, %v372_v41  ;;  %v4480_v59 = vld [vmem:[%s4254_s25 + $0xf0] sm:$0xff]  ;;  %v4483_v61 = vld [vmem:[%s4254_s25 + $0xf8] sm:$0xff]  ;;  %v379_v10 = vrot.slane %v258_v4, 1 }
  0x2f   : > { %v4442_v18 = vpack.i.bf16 %v405_v0, %v403_v19  ;;  %v375_v57 = vsel %vm325_vm0, %v372_v41, %v374_v54  ;;  %v377_v6 = vrot.slane %v4483_v61, 1  ;;  %v376_v8 = vrot.slane %v4480_v59, 1  ;;  %v4491_v19 = vld [vmem:[%s4254_s25 + $0x108] sm:$0xff]  ;;  %v4494_v0 = vld [vmem:[%s4254_s25 + $0x110] sm:$0xff] }
  0x30   : > { %v3583_v24 = vpack.i.bf16 %v4483_v61, %v4480_v59  ;;  %v381_v25 = vrot.slane %v4491_v19, 1  ;;  %v382_v34 = vrot.slane %v4494_v0, 1  ;;  %v3613_v41 = vpack.i.bf16 %v4352_v62, %v4362_v9 }
  0x31   : > { %v378_v30 = vsel %vm325_vm0, %v376_v8, %v377_v6  ;;  %v380_v31 = vsel %vm325_vm0, %v377_v6, %v379_v10  ;;  %v3608_v54 = vpack.i.bf16 %v4494_v0, %v4491_v19 }
  0x32   : > { %3519 = vrot.lane.b32.xlu0 %v3518_v28, %s4200_s26  ;;  %3534 = vrot.lane.b32.xlu1 %v3533_v42, %s4202_s28  ;;  %v3683_v28 = vpack.i.bf16 %v4456_v36, %v4448_v29  ;;  %v383_v47 = vsel %vm325_vm0, %v381_v25, %v382_v34  ;;  %v385_v49 = vsel %vm325_vm0, %v382_v34, %v384_v43 }
  0x33   : > { %v3603_v52 = vpack.i.bf16 %v385_v49, %v383_v47 }
  0x36   : > { %3529 = vrot.lane.b32.xlu0 %v4374_v16, %s4202_s28  ;;  %3544 = vrot.lane.b32.xlu1 %v3543_v27, %s4201_s27  ;;  %v3548_v16 = vpack.i.bf16 %v4348_v60, %v4344_v58 }
  0x3a   : > { %3539 = vrot.lane.b32.xlu0 %v3533_v42, %s4201_s27  ;;  %3554 = vrot.lane.b32.xlu1 %v3553_v44, %s4200_s26  ;;  %v3573_v42 = vpack.i.bf16 %v375_v57, %v373_v56  ;;  %v3578_v44 = vpack.i.bf16 %v4459_v37, %v4453_v35  ;;  %v3673_v56 = vpack.i.bf16 %v4403_v40, %v4423_v63 }
  0x3e   : > { %3549 = vrot.lane.b32.xlu0 %v3548_v16, %s4200_s26  ;;  %3564 = vrot.lane.b32.xlu1 %v3563_v55, %s4202_s28  ;;  %v3643_v16 = vpack.i.bf16 %v4380_v23, %v4385_v26 }
  0x42   : > { %3559 = vrot.lane.b32.xlu0 %v3543_v27, %s4202_s28  ;;  %3574 = vrot.lane.b32.xlu1 %v3573_v42, %s4201_s27  ;;  %v3593_v27 = vpack.i.bf16 %v380_v31, %v378_v30 }
  0x46   : > { %3569 = vrot.lane.b32.xlu0 %v3563_v55, %s4201_s27  ;;  %3584 = vrot.lane.b32.xlu1 %v3583_v24, %s4200_s26  ;;  %v3638_v55 = vpack.i.bf16 %v4370_v15, %v4367_v14 }
  0x4a   : > { %3579 = vrot.lane.b32.xlu0 %v3578_v44, %s4200_s26  ;;  %3594 = vrot.lane.b32.xlu1 %v3593_v27, %s4202_s28 }
  0x4e   : > { %3589 = vrot.lane.b32.xlu0 %v3573_v42, %s4202_s28  ;;  %3604 = vrot.lane.b32.xlu1 %v3603_v52, %s4201_s27 }
  0x52   : > { %3599 = vrot.lane.b32.xlu0 %v3593_v27, %s4201_s27  ;;  %3614 = vrot.lane.b32.xlu1 %v3613_v41, %s4200_s26 }
  0x56   : > { %3609 = vrot.lane.b32.xlu0 %v3608_v54, %s4200_s26  ;;  %3624 = vrot.lane.b32.xlu1 %v4411_v48, %s4202_s28 }
  0x5a   : > { %3619 = vrot.lane.b32.xlu0 %v3603_v52, %s4202_s28  ;;  %3634 = vrot.lane.b32.xlu1 %v4415_v53, %s4201_s27 }
  0x5e   : > { %3629 = vrot.lane.b32.xlu0 %v4411_v48, %s4201_s27  ;;  %3644 = vrot.lane.b32.xlu1 %v3643_v16, %s4200_s26  ;;  %v3668_v48 = vpack.i.bf16 %v4397_v33, %v4394_v32 }
  0x62   : > { %3639 = vrot.lane.b32.xlu0 %v3638_v55, %s4200_s26  ;;  %3654 = vrot.lane.b32.xlu1 %v4434_v11, %s4202_s28 }
  0x66   : > { %3649 = vrot.lane.b32.xlu0 %v4415_v53, %s4202_s28  ;;  %3664 = vrot.lane.b32.xlu1 %v4442_v18, %s4201_s27 }
  0x6a   : > { %3659 = vrot.lane.b32.xlu0 %v4434_v11, %s4201_s27  ;;  %3674 = vrot.lane.b32.xlu1 %v3673_v56, %s4200_s26 }
  0x6e   : > { %3669 = vrot.lane.b32.xlu0 %v3668_v48, %s4200_s26  ;;  %3684 = vrot.lane.b32.xlu1 %v3683_v28, %s4202_s28 }
  0x72   : > { %3679 = vrot.lane.b32.xlu0 %v4442_v18, %s4202_s28  ;;  %s3195_s28 = sshll.u32 %s5654_s19, 8 }
  0x73   : > { %s5547_s8 = scalar_lea.vmem %s5652_s5, %s3195_s28 }
  0x84   : > { %v3450_v53 = vpop.permute.xlu1 %3449 }
  0x85   : > { %v3452_v10 = vunpack.i.h.bf16 %v3450_v53  ;;  %v3451_v17 = vunpack.i.l.bf16 %v3450_v53 }
  0x88   : > { %v3460_v40 = vpop.permute.xlu0 %3459  ;;  %v3455_v63 = vpop.permute.xlu1 %3454 }
  0x89   : > { %v3462_v57 = vunpack.i.h.bf16 %v3460_v40  ;;  %v3461_v11 = vunpack.i.l.bf16 %v3460_v40  ;;  %v3457_v4 = vunpack.i.h.bf16 %v3455_v63  ;;  %v3456_v42 = vunpack.i.l.bf16 %v3455_v63 }
  0x8b   : > { %v703_v18 = vsel %vm702_vm1, %v4263_v3, %v3461_v11  ;;  %v704_v28 = vsel %vm702_vm1, %v4270_v7, %v3462_v57 }
  0x8c   : > { %v3465_v6 = vpop.permute.xlu0 %3464  ;;  %v3475_v8 = vpop.permute.xlu1 %3474  ;;  %v736_v3 = vsel %vm735_vm2, %v703_v18, %v3451_v17  ;;  %v737_v52 = vsel %vm735_vm2, %v704_v28, %v3452_v10 }
  0x8d   : > { %v3467_v24 = vunpack.i.h.bf16 %v3465_v6  ;;  %v3466_v25 = vunpack.i.l.bf16 %v3465_v6  ;;  %v3477_v29 = vunpack.i.h.bf16 %v3475_v8  ;;  %v3476_v36 = vunpack.i.l.bf16 %v3475_v8 }
  0x8f   : > { %v706_v30 = vsel %vm702_vm1, %v4260_v2, %v3467_v24  ;;  %v705_v31 = vsel %vm702_vm1, %v4257_v1, %v3466_v25 }
  0x90   : > { %v738_v34 = vsel %vm735_vm2, %v705_v31, %v3456_v42  ;;  %v739_v43 = vsel %vm735_vm2, %v706_v30, %v3457_v4  ;;  %v3470_v44 = vpop.permute.xlu0 %3469  ;;  %v3485_v27 = vpop.permute.xlu1 %3484 }
  0x91   : > { %v3472_v47 = vunpack.i.h.bf16 %v3470_v44  ;;  %v3471_v49 = vunpack.i.l.bf16 %v3470_v44  ;;  %v771_v7 = vsel %vm768_vm3, %v738_v34, %v3476_v36  ;;  %v772_v2 = vsel %vm768_vm3, %v739_v43, %v3477_v29 }
  0x92   : > { %v3487_v41 = vunpack.i.h.bf16 %v3485_v27  ;;  %v3486_v54 = vunpack.i.l.bf16 %v3485_v27  ;;  %v802_v63 = vpack.c.bf16 %v772_v2, %v771_v7 }
  0x93   : > { %v769_v1 = vsel %vm768_vm3, %v736_v3, %v3471_v49  ;;  %v770_v16 = vsel %vm768_vm3, %v737_v52, %v3472_v47 }
  0x94   : > { %v3480_v55 = vpop.permute.xlu0 %3479  ;;  %v3495_v56 = vpop.permute.xlu1 %3494  ;;  %v801_v48 = vpack.c.bf16 %v770_v16, %v769_v1  ;;  %v710_v57 = vsel %vm702_vm1, %v4293_v21, %v3487_v41  ;;  %v709_v11 = vsel %vm702_vm1, %v4290_v20, %v3486_v54 }
  0x95   : > { %v3497_v53 = vunpack.i.h.bf16 %v3495_v56  ;;  %v3496_v40 = vunpack.i.l.bf16 %v3495_v56  ;;  %v3482_v4 = vunpack.i.h.bf16 %v3480_v55  ;;  %v3481_v42 = vunpack.i.l.bf16 %v3480_v55 }
  0x96   : > { %3348 = vmatprep.mubr.msk.bf16.mxu0 %vm840_vm4, %v801_v48 }
  0x97   : > { %3349 = vmatmul.mubr.msk.bf16.vlgmr.msra.gmra.mxu0 %vm840_vm4, %v802_v63  ;;  %v742_v10 = vsel %vm735_vm2, %v709_v11, %v3496_v40  ;;  %v743_v17 = vsel %vm735_vm2, %v710_v57, %v3497_v53  ;;  %v708_v21 = vsel %vm702_vm1, %v4279_v13, %v3482_v4  ;;  %v707_v20 = vsel %vm702_vm1, %v4276_v12, %v3481_v42 }
  0x98   : > { %v3490_v6 = vpop.permute.xlu0 %3489  ;;  %v3505_v8 = vpop.permute.xlu1 %3504 }
  0x99   : > { %v3507_v24 = vunpack.i.h.bf16 %v3505_v8  ;;  %v3506_v25 = vunpack.i.l.bf16 %v3505_v8  ;;  %v3492_v29 = vunpack.i.h.bf16 %v3490_v6  ;;  %v3491_v36 = vunpack.i.l.bf16 %v3490_v6 }
  0x9b   : > { %v775_v18 = vsel %vm768_vm3, %v742_v10, %v3506_v25  ;;  %v776_v28 = vsel %vm768_vm3, %v743_v17, %v3507_v24  ;;  %v740_v47 = vsel %vm735_vm2, %v707_v20, %v3491_v36  ;;  %v741_v49 = vsel %vm735_vm2, %v708_v21, %v3492_v29 }
  0x9c   : > { %v3500_v30 = vpop.permute.xlu0 %3499  ;;  %v3515_v31 = vpop.permute.xlu1 %3514  ;;  %v804_v41 = vpack.c.bf16 %v776_v28, %v775_v18 }
  0x9d   : > { %v3502_v34 = vunpack.i.h.bf16 %v3500_v30  ;;  %v3501_v43 = vunpack.i.l.bf16 %v3500_v30  ;;  %v3517_v44 = vunpack.i.h.bf16 %v3515_v31  ;;  %v3516_v27 = vunpack.i.l.bf16 %v3515_v31 }
  0x9f   : > { %v773_v3 = vsel %vm768_vm3, %v740_v47, %v3501_v43  ;;  %v774_v13 = vsel %vm768_vm3, %v741_v49, %v3502_v34  ;;  %v714_v12 = vsel %vm702_vm1, %v4322_v46, %v3517_v44  ;;  %v713_v7 = vsel %vm702_vm1, %v4319_v45, %v3516_v27 }
  0xa0   : > { %v3510_v52 = vpop.permute.xlu0 %3509  ;;  %v803_v2 = vpack.c.bf16 %v774_v13, %v773_v3  ;;  %v3525_v54 = vpop.permute.xlu1 %3524 }
  0xa1   : > { %v3512_v1 = vunpack.i.h.bf16 %v3510_v52  ;;  %v3511_v16 = vunpack.i.l.bf16 %v3510_v52  ;;  %v3527_v55 = vunpack.i.h.bf16 %v3525_v54  ;;  %v3526_v56 = vunpack.i.l.bf16 %v3525_v54 }
  0xa2   : > { %3352 = vmatprep.mubr.msk.bf16.mxu0 %vm840_vm4, %v803_v2 }
  0xa3   : > { %3353 = vmatmul.mubr.msk.bf16.gmra.mxu0 %vm840_vm4, %v804_v41  ;;  %v712_v48 = vsel %vm702_vm1, %v4311_v39, %v3512_v1  ;;  %v711_v46 = vsel %vm702_vm1, %v4308_v38, %v3511_v16  ;;  %v746_v45 = vsel %vm735_vm2, %v713_v7, %v3526_v56  ;;  %v747_v40 = vsel %vm735_vm2, %v714_v12, %v3527_v55 }
  0xa4   : > { %v3520_v53 = vpop.permute.xlu0 %3519  ;;  %v3535_v63 = vpop.permute.xlu1 %3534 }
  0xa5   : > { %v3522_v57 = vunpack.i.h.bf16 %v3520_v53  ;;  %v3521_v11 = vunpack.i.l.bf16 %v3520_v53  ;;  %v3537_v4 = vunpack.i.h.bf16 %v3535_v63  ;;  %v3536_v42 = vunpack.i.l.bf16 %v3535_v63 }
  0xa7   : > { %v744_v6 = vsel %vm735_vm2, %v711_v46, %v3521_v11  ;;  %v745_v8 = vsel %vm735_vm2, %v712_v48, %v3522_v57  ;;  %v779_v39 = vsel %vm768_vm3, %v746_v45, %v3536_v42  ;;  %v780_v17 = vsel %vm768_vm3, %v747_v40, %v3537_v4 }
  0xa8   : > { %v3530_v10 = vpop.permute.xlu0 %3529  ;;  %v3545_v38 = vpop.permute.xlu1 %3544  ;;  %v806_v18 = vpack.c.bf16 %v780_v17, %v779_v39 }
  0xa9   : > { %v3532_v24 = vunpack.i.h.bf16 %v3530_v10  ;;  %v3531_v25 = vunpack.i.l.bf16 %v3530_v10  ;;  %v3547_v29 = vunpack.i.h.bf16 %v3545_v38  ;;  %v3546_v36 = vunpack.i.l.bf16 %v3545_v38 }
  0xab   : > { %v777_v21 = vsel %vm768_vm3, %v744_v6, %v3531_v25  ;;  %v778_v20 = vsel %vm768_vm3, %v745_v8, %v3532_v24  ;;  %v718_v31 = vsel %vm702_vm1, %v4348_v60, %v3547_v29  ;;  %v717_v34 = vsel %vm702_vm1, %v4344_v58, %v3546_v36 }
  0xac   : > { %v805_v28 = vpack.c.bf16 %v778_v20, %v777_v21  ;;  %v3540_v30 = vpop.permute.xlu0 %3539  ;;  %v3555_v43 = vpop.permute.xlu1 %3554 }
  0xad   : > { %v3542_v44 = vunpack.i.h.bf16 %v3540_v30  ;;  %v3541_v27 = vunpack.i.l.bf16 %v3540_v30  ;;  %v3557_v47 = vunpack.i.h.bf16 %v3555_v43  ;;  %v3556_v49 = vunpack.i.l.bf16 %v3555_v43 }
  0xae   : > { %3356 = vmatprep.mubr.msk.bf16.mxu0 %vm840_vm4, %v805_v28 }
  0xaf   : > { %3357 = vmatmul.mubr.msk.bf16.gmra.mxu0 %vm840_vm4, %v806_v18  ;;  %v716_v3 = vsel %vm702_vm1, %v4334_v51, %v3542_v44  ;;  %v715_v13 = vsel %vm702_vm1, %v4331_v50, %v3541_v27  ;;  %v750_v60 = vsel %vm735_vm2, %v717_v34, %v3556_v49  ;;  %v751_v58 = vsel %vm735_vm2, %v718_v31, %v3557_v47 }
  0xb0   : > { %v3550_v52 = vpop.permute.xlu0 %3549  ;;  %v3565_v12 = vpop.permute.xlu1 %3564 }
  0xb1   : > { %v3552_v7 = vunpack.i.h.bf16 %v3550_v52  ;;  %v3551_v2 = vunpack.i.l.bf16 %v3550_v52  ;;  %v3567_v41 = vunpack.i.h.bf16 %v3565_v12  ;;  %v3566_v54 = vunpack.i.l.bf16 %v3565_v12 }
  0xb3   : > { %v748_v1 = vsel %vm735_vm2, %v715_v13, %v3551_v2  ;;  %v749_v16 = vsel %vm735_vm2, %v716_v3, %v3552_v7  ;;  %v783_v51 = vsel %vm768_vm3, %v750_v60, %v3566_v54  ;;  %v784_v56 = vsel %vm768_vm3, %v751_v58, %v3567_v41 }
  0xb4   : > { %v3560_v55 = vpop.permute.xlu0 %3559  ;;  %v3575_v50 = vpop.permute.xlu1 %3574  ;;  %v808_v57 = vpack.c.bf16 %v784_v56, %v783_v51 }
  0xb5   : > { %v3562_v48 = vunpack.i.h.bf16 %v3560_v55  ;;  %v3561_v46 = vunpack.i.l.bf16 %v3560_v55  ;;  %v3577_v53 = vunpack.i.h.bf16 %v3575_v50  ;;  %v3576_v45 = vunpack.i.l.bf16 %v3575_v50 }
  0xb7   : > { %v781_v40 = vsel %vm768_vm3, %v748_v1, %v3561_v46  ;;  %v782_v63 = vsel %vm768_vm3, %v749_v16, %v3562_v48  ;;  %v722_v42 = vsel %vm702_vm1, %v4459_v37, %v3577_v53  ;;  %v721_v6 = vsel %vm702_vm1, %v4453_v35, %v3576_v45 }
  0xb8   : > { %v807_v11 = vpack.c.bf16 %v782_v63, %v781_v40  ;;  %v3570_v4 = vpop.permute.xlu0 %3569  ;;  %v3585_v8 = vpop.permute.xlu1 %3584 }
  0xb9   : > { %v3572_v10 = vunpack.i.h.bf16 %v3570_v4  ;;  %v3571_v39 = vunpack.i.l.bf16 %v3570_v4  ;;  %v3587_v17 = vunpack.i.h.bf16 %v3585_v8  ;;  %v3586_v38 = vunpack.i.l.bf16 %v3585_v8 }
  0xba   : > { %3360 = vmatprep.mubr.msk.bf16.mxu0 %vm840_vm4, %v807_v11 }
  0xbb   : > { %3361 = vmatmul.mubr.msk.bf16.gmra.mxu0 %vm840_vm4, %v808_v57  ;;  %v720_v24 = vsel %vm702_vm1, %v4439_v22, %v3572_v10  ;;  %v719_v25 = vsel %vm702_vm1, %v4429_v5, %v3571_v39  ;;  %v754_v37 = vsel %vm735_vm2, %v721_v6, %v3586_v38  ;;  %v755_v35 = vsel %vm735_vm2, %v722_v42, %v3587_v17 }
  0xbc   : > { %v3580_v29 = vpop.permute.xlu0 %3579  ;;  %v3595_v36 = vpop.permute.xlu1 %3594 }
  0xbd   : > { %v3582_v21 = vunpack.i.h.bf16 %v3580_v29  ;;  %v3581_v20 = vunpack.i.l.bf16 %v3580_v29  ;;  %v3597_v18 = vunpack.i.h.bf16 %v3595_v36  ;;  %v3596_v28 = vunpack.i.l.bf16 %v3595_v36 }
  0xbf   : > { %v752_v30 = vsel %vm735_vm2, %v719_v25, %v3581_v20  ;;  %v753_v31 = vsel %vm735_vm2, %v720_v24, %v3582_v21  ;;  %v787_v22 = vsel %vm768_vm3, %v754_v37, %v3596_v28  ;;  %v788_v43 = vsel %vm768_vm3, %v755_v35, %v3597_v18 }
  0xc0   : > { %v3590_v34 = vpop.permute.xlu0 %3589  ;;  %v3605_v5 = vpop.permute.xlu1 %3604  ;;  %v810_v52 = vpack.c.bf16 %v788_v43, %v787_v22 }
  0xc1   : > { %v3592_v44 = vunpack.i.h.bf16 %v3590_v34  ;;  %v3591_v27 = vunpack.i.l.bf16 %v3590_v34  ;;  %v3607_v47 = vunpack.i.h.bf16 %v3605_v5  ;;  %v3606_v49 = vunpack.i.l.bf16 %v3605_v5 }
  0xc3   : > { %v785_v3 = vsel %vm768_vm3, %v752_v30, %v3591_v27  ;;  %v786_v13 = vsel %vm768_vm3, %v753_v31, %v3592_v44  ;;  %v726_v12 = vsel %vm702_vm1, %v4494_v0, %v3607_v47  ;;  %v725_v7 = vsel %vm702_vm1, %v4491_v19, %v3606_v49 }
  0xc4   : > { %v809_v60 = vpack.c.bf16 %v786_v13, %v785_v3  ;;  %v3600_v58 = vpop.permute.xlu0 %3599  ;;  %v3615_v2 = vpop.permute.xlu1 %3614 }
  0xc5   : > { %v3602_v41 = vunpack.i.h.bf16 %v3600_v58  ;;  %v3601_v54 = vunpack.i.l.bf16 %v3600_v58  ;;  %v3617_v1 = vunpack.i.h.bf16 %v3615_v2  ;;  %v3616_v16 = vunpack.i.l.bf16 %v3615_v2 }
  0xc6   : > { %3364 = vmatprep.mubr.msk.bf16.mxu0 %vm840_vm4, %v809_v60 }
  0xc7   : > { %3365 = vmatmul.mubr.msk.bf16.gmra.mxu0 %vm840_vm4, %v810_v52  ;;  %v724_v55 = vsel %vm702_vm1, %v4483_v61, %v3602_v41  ;;  %v723_v51 = vsel %vm702_vm1, %v4480_v59, %v3601_v54  ;;  %v758_v0 = vsel %vm735_vm2, %v725_v7, %v3616_v16  ;;  %v759_v19 = vsel %vm735_vm2, %v726_v12, %v3617_v1 }
  0xc8   : > { %v3610_v56 = vpop.permute.xlu0 %3609  ;;  %v3625_v50 = vpop.permute.xlu1 %3624 }
  0xc9   : > { %v3612_v48 = vunpack.i.h.bf16 %v3610_v56  ;;  %v3611_v46 = vunpack.i.l.bf16 %v3610_v56  ;;  %v3627_v53 = vunpack.i.h.bf16 %v3625_v50  ;;  %v3626_v45 = vunpack.i.l.bf16 %v3625_v50 }
  0xcb   : > { %v756_v40 = vsel %vm735_vm2, %v723_v51, %v3611_v46  ;;  %v757_v63 = vsel %vm735_vm2, %v724_v55, %v3612_v48  ;;  %v791_v61 = vsel %vm768_vm3, %v758_v0, %v3626_v45  ;;  %v792_v11 = vsel %vm768_vm3, %v759_v19, %v3627_v53 }
  0xcc   : > { %v3620_v57 = vpop.permute.xlu0 %3619  ;;  %v3635_v59 = vpop.permute.xlu1 %3634  ;;  %v812_v17 = vpack.c.bf16 %v792_v11, %v791_v61  ;;  %v4203_v19 = vmov 0.0  }
  0xcd   : > { %v3622_v4 = vunpack.i.h.bf16 %v3620_v57  ;;  %v3621_v42 = vunpack.i.l.bf16 %v3620_v57  ;;  %v3637_v6 = vunpack.i.h.bf16 %v3635_v59  ;;  %v3636_v8 = vunpack.i.l.bf16 %v3635_v59  ;;  %1146 = vst.msk [vmem:[#allocation2] sm:$0xff] %vm840_vm4, %v4203_v19  ;;  %1147 = vst.msk [vmem:[#allocation2 + $0x8] sm:$0xff] %vm840_vm4, %v4203_v19 }
  0xce   : > { %1149 = vst.msk [vmem:[#allocation2 + $0x10] sm:$0x3] %vm1148_vm5, %v4203_v19  ;;  %1153 = vst.msk [vmem:[#allocation2 + $0x1a8] sm:$0x3] %vm1148_vm5, %v4203_v19 }
  0xcf   : > { %v789_v10 = vsel %vm768_vm3, %v756_v40, %v3621_v42  ;;  %v790_v39 = vsel %vm768_vm3, %v757_v63, %v3622_v4  ;;  %v730_v25 = vsel %vm702_vm1, %v4370_v15, %v3637_v6  ;;  %v729_v29 = vsel %vm702_vm1, %v4367_v14, %v3636_v8  ;;  %1151 = vst.msk [vmem:[#allocation2 + $0x198] sm:$0xff] %vm840_vm4, %v4203_v19 }
  0xd0   : > { %v811_v38 = vpack.c.bf16 %v790_v39, %v789_v10  ;;  %v3630_v24 = vpop.permute.xlu0 %3629  ;;  %v3645_v37 = vpop.permute.xlu1 %3644  ;;  %1152 = vst.msk [vmem:[#allocation2 + $0x1a0] sm:$0xff] %vm840_vm4, %v4203_v19 }
  0xd1   : > { %v3632_v35 = vunpack.i.h.bf16 %v3630_v24  ;;  %v3631_v36 = vunpack.i.l.bf16 %v3630_v24  ;;  %v3647_v21 = vunpack.i.h.bf16 %v3645_v37  ;;  %v3646_v20 = vunpack.i.l.bf16 %v3645_v37  ;;  %1156 = vst.msk [vmem:[#allocation2 + $0x18] sm:$0x1] %vm1154_vm6, %v4203_v19  ;;  %1157 = vst.msk [vmem:[#allocation2 + $0x30] sm:$0x1] %vm1154_vm6, %v4203_v19 }
  0xd2   : > { %3368 = vmatprep.mubr.msk.bf16.mxu0 %vm840_vm4, %v811_v38  ;;  %1158 = vst.msk [vmem:[#allocation2 + $0x48] sm:$0x1] %vm1154_vm6, %v4203_v19  ;;  %1159 = vst.msk [vmem:[#allocation2 + $0x60] sm:$0x1] %vm1154_vm6, %v4203_v19 }
  0xd3   : > { %3369 = vmatmul.mubr.msk.bf16.gmra.mxu0 %vm840_vm4, %v812_v17  ;;  %v728_v18 = vsel %vm702_vm1, %v4352_v62, %v3632_v35  ;;  %v727_v28 = vsel %vm702_vm1, %v4362_v9, %v3631_v36  ;;  %v762_v15 = vsel %vm735_vm2, %v729_v29, %v3646_v20  ;;  %v763_v14 = vsel %vm735_vm2, %v730_v25, %v3647_v21  ;;  %v4170_v35 = vld [vmem:[%s5650_s3 + $0x78] sm:$0xff]   ;;  %v4756_v21 = vld [vmem:[%s5649_s2] ss:$0 sm:$0xff] }
  0xd4   : > { %v3640_v30 = vpop.permute.xlu0 %3639  ;;  %v3655_v31 = vpop.permute.xlu1 %3654  ;;  %1160 = vst.msk [vmem:[#allocation2 + $0x78] sm:$0x1] %vm1154_vm6, %v4203_v19  ;;  %1161 = vst.msk [vmem:[#allocation2 + $0x90] sm:$0x1] %vm1154_vm6, %v4203_v19  ;;  %v1256_v42 = vld [vmem:[#allocation2 + $0x1] sm:$0xff]  ;;  %v4171_v36 = vld [vmem:[%s5650_s3 + $0x38] sm:$0xff]   ;;  %3214 = vmatprep.subr.bf16.mxu0 %v4170_v35  ;;  %3416 = vmatprep.subr.bf16.mxu1 %v4170_v35 }
  0xd5   : > { %v3642_v34 = vunpack.i.h.bf16 %v3640_v30  ;;  %v3641_v22 = vunpack.i.l.bf16 %v3640_v30  ;;  %v3657_v43 = vunpack.i.h.bf16 %v3655_v31  ;;  %v3656_v5 = vunpack.i.l.bf16 %v3655_v31  ;;  %1162 = vst.msk [vmem:[#allocation2 + $0xa8] sm:$0x1] %vm1154_vm6, %v4203_v19  ;;  %1163 = vst.msk [vmem:[#allocation2 + $0xc0] sm:$0x1] %vm1154_vm6, %v4203_v19  ;;  %v1257_v6 = vld [vmem:[#allocation2 + $0x9] sm:$0xff]  ;;  %3215 = vmatpush3.bf16.msra.mxu0 %v4171_v36  ;;  %3424 = vmatpush3.bf16.msra.mxu1 %v4171_v36 }
  0xd6   : > { %1164 = vst.msk [vmem:[#allocation2 + $0xd8] sm:$0x1] %vm1154_vm6, %v4203_v19  ;;  %1165 = vst.msk [vmem:[#allocation2 + $0xf0] sm:$0x1] %vm1154_vm6, %v4203_v19  ;;  %v3688_v17 = vpack.i.bf16 %v1257_v6, %v1256_v42  ;;  %v4173_v30 = vld [vmem:[%s5650_s3 + $0x30] sm:$0xff]   ;;  %v4182_v6 = vld [vmem:[%s5650_s3 + $0x48] sm:$0xff]  }
  0xd7   : > { %v4674_v44 = vsel %vm768_vm3, %v762_v15, %v3656_v5  ;;  %v4677_v27 = vsel %vm768_vm3, %v763_v14, %v3657_v43  ;;  %v760_v62 = vsel %vm735_vm2, %v727_v28, %v3641_v22  ;;  %v761_v9 = vsel %vm735_vm2, %v728_v18, %v3642_v34  ;;  %1166 = vst.msk [vmem:[#allocation2 + $0x108] sm:$0x1] %vm1154_vm6, %v4203_v19  ;;  %v4172_v18 = vld [vmem:[%s5650_s3 + $0x70] sm:$0xff]   ;;  %v4174_v22 = vld [vmem:[%s5650_s3 + $0x68] sm:$0xff]  }
  0xd8   : > { %v3650_v47 = vpop.permute.xlu0 %3649  ;;  %v3665_v49 = vpop.permute.xlu1 %3664  ;;  %v814_v58 = vpack.c.bf16 %v4677_v27, %v4674_v44  ;;  %1167 = vst.msk [vmem:[#allocation2 + $0x120] sm:$0x1] %vm1154_vm6, %v4203_v19  ;;  %1168 = vst.msk [vmem:[#allocation2 + $0x138] sm:$0x1] %vm1154_vm6, %v4203_v19  ;;  %3689 = vrot.lane.b32.xlu0 %v3688_v17, %s4204_s6  ;;  %3216 = vmatprep.subr.bf16.mxu0 %v4172_v18  ;;  %v4175_v43 = vld [vmem:[%s5650_s3 + $0x28] sm:$0xff]  }
  0xd9   : > { %v3652_v3 = vunpack.i.h.bf16 %v3650_v47  ;;  %v3651_v13 = vunpack.i.l.bf16 %v3650_v47  ;;  %v3667_v52 = vunpack.i.h.bf16 %v3665_v49  ;;  %v3666_v60 = vunpack.i.l.bf16 %v3665_v49  ;;  %1169 = vst.msk [vmem:[#allocation2 + $0x150] sm:$0x1] %vm1154_vm6, %v4203_v19  ;;  %1170 = vst.msk [vmem:[#allocation2 + $0x168] sm:$0x1] %vm1154_vm6, %v4203_v19  ;;  %3417 = vmatprep.subr.bf16.mxu1 %v4172_v18  ;;  %3217 = vmatpush3.bf16.msra.mxu0 %v4173_v30 }
  0xda   : > { %1171 = vst.msk [vmem:[#allocation2 + $0x180] sm:$0x1] %vm1154_vm6, %v4203_v19  ;;  %1174 = vst.msk [vmem:[#allocation2 + $0x29] sm:$0x1] %vm1154_vm6, %v4203_v19  ;;  %3425 = vmatpush3.bf16.msra.mxu1 %v4173_v30  ;;  %3218 = vmatprep.subr.bf16.mxu0 %v4174_v22 }
  0xdb   : > { %v793_v12 = vsel %vm768_vm3, %v760_v62, %v3651_v13  ;;  %v794_v7 = vsel %vm768_vm3, %v761_v9, %v3652_v3  ;;  %v734_v2 = vsel %vm702_vm1, %v4397_v33, %v3667_v52  ;;  %v733_v41 = vsel %vm702_vm1, %v4394_v32, %v3666_v60  ;;  %1175 = vst.msk [vmem:[#allocation2 + $0x41] sm:$0x1] %vm1154_vm6, %v4203_v19  ;;  %v4176_v3 = vld [vmem:[%s5650_s3 + $0x60] sm:$0xff]  }
  0xdc   : > { %v813_v54 = vpack.c.bf16 %v794_v7, %v793_v12  ;;  %v3660_v1 = vpop.permute.xlu0 %3659  ;;  %v3675_v16 = vpop.permute.xlu1 %3674  ;;  %1176 = vst.msk [vmem:[#allocation2 + $0x59] sm:$0x1] %vm1154_vm6, %v4203_v19  ;;  %1177 = vst.msk [vmem:[#allocation2 + $0x71] sm:$0x1] %vm1154_vm6, %v4203_v19  ;;  %3418 = vmatprep.subr.bf16.mxu1 %v4174_v22  ;;  %v4177_v13 = vld [vmem:[%s5650_s3 + $0x20] sm:$0xff]  }
  0xdd   : > { %v3662_v55 = vunpack.i.h.bf16 %v3660_v1  ;;  %v3661_v51 = vunpack.i.l.bf16 %v3660_v1  ;;  %v3677_v56 = vunpack.i.h.bf16 %v3675_v16  ;;  %v3676_v0 = vunpack.i.l.bf16 %v3675_v16  ;;  %1178 = vst.msk [vmem:[#allocation2 + $0x89] sm:$0x1] %vm1154_vm6, %v4203_v19  ;;  %1179 = vst.msk [vmem:[#allocation2 + $0xa1] sm:$0x1] %vm1154_vm6, %v4203_v19  ;;  %3219 = vmatpush3.bf16.msra.mxu0 %v4175_v43 }
  0xde   : > { %1180 = vst.msk [vmem:[#allocation2 + $0xb9] sm:$0x1] %vm1154_vm6, %v4203_v19  ;;  %1181 = vst.msk [vmem:[#allocation2 + $0xd1] sm:$0x1] %vm1154_vm6, %v4203_v19  ;;  %3372 = vmatprep.mubr.msk.bf16.mxu0 %vm840_vm4, %v813_v54  ;;  %3426 = vmatpush3.bf16.msra.mxu1 %v4175_v43  ;;  %v4179_v54 = vld [vmem:[%s5650_s3 + $0x18] sm:$0xff]  }
  0xdf   : > { %1182 = vst.msk [vmem:[#allocation2 + $0xe9] sm:$0x1] %vm1154_vm6, %v4203_v19  ;;  %1183 = vst.msk [vmem:[#allocation2 + $0x101] sm:$0x1] %vm1154_vm6, %v4203_v19  ;;  %3373 = vmatmul.mubr.msk.bf16.gmra.mxu0 %vm840_vm4, %v814_v58  ;;  %v732_v32 = vsel %vm702_vm1, %v4380_v23, %v3662_v55  ;;  %v731_v33 = vsel %vm702_vm1, %v4385_v26, %v3661_v51  ;;  %v766_v48 = vsel %vm735_vm2, %v733_v41, %v3676_v0  ;;  %v1288_v26 = vld [vmem:[#allocation2 + $0x2] sm:$0xff] }
  0xe0   : > { %1184 = vst.msk [vmem:[#allocation2 + $0x119] sm:$0x1] %vm1154_vm6, %v4203_v19  ;;  %1185 = vst.msk [vmem:[#allocation2 + $0x131] sm:$0x1] %vm1154_vm6, %v4203_v19  ;;  %v3670_v50 = vpop.permute.xlu0 %3669  ;;  %v767_v46 = vsel %vm735_vm2, %v734_v2, %v3677_v56  ;;  %v3685_v53 = vpop.permute.xlu1 %3684  ;;  %3220 = vmatprep.subr.bf16.mxu0 %v4176_v3  ;;  %3419 = vmatprep.subr.bf16.mxu1 %v4176_v3  ;;  %v4178_v2 = vld [vmem:[%s5650_s3 + $0x58] sm:$0xff]  }
  0xe1   : > { %1186 = vst.msk [vmem:[#allocation2 + $0x149] sm:$0x1] %vm1154_vm6, %v4203_v19  ;;  %1187 = vst.msk [vmem:[#allocation2 + $0x161] sm:$0x1] %vm1154_vm6, %v4203_v19  ;;  %v3672_v45 = vunpack.i.h.bf16 %v3670_v50  ;;  %v3671_v40 = vunpack.i.l.bf16 %v3670_v50  ;;  %v3687_v63 = vunpack.i.h.bf16 %v3685_v53  ;;  %v3686_v57 = vunpack.i.l.bf16 %v3685_v53  ;;  %3221 = vmatpush3.bf16.msra.mxu0 %v4177_v13 }
  0xe2   : > { %1188 = vst.msk [vmem:[#allocation2 + $0x179] sm:$0x1] %vm1154_vm6, %v4203_v19  ;;  %1189 = vst.msk [vmem:[#allocation2 + $0x191] sm:$0x1] %vm1154_vm6, %v4203_v19  ;;  %3427 = vmatpush3.bf16.msra.mxu1 %v4177_v13  ;;  %3222 = vmatprep.subr.bf16.mxu0 %v4178_v2 }
  0xe3   : > { %1173 = vst.msk [vmem:[#allocation2 + $0x11] sm:$0x1] %vm1154_vm6, %v4203_v19  ;;  %1155 = vst.msk [vmem:[#allocation2] sm:$0x1] %vm1154_vm6, %v4203_v19  ;;  %v764_v61 = vsel %vm735_vm2, %v731_v33, %v3671_v40  ;;  %v765_v11 = vsel %vm735_vm2, %v732_v32, %v3672_v45  ;;  %v799_v23 = vsel %vm768_vm3, %v766_v48, %v3686_v57  ;;  %3420 = vmatprep.subr.bf16.mxu1 %v4178_v2  ;;  %v4180_v45 = vld [vmem:[%s5650_s3 + $0x50] sm:$0xff]  }
  0xe4   : > { %1190 = vst.msk [vmem:[#allocation2 + $0x1a9] sm:$0x1] %vm1154_vm6, %v4203_v19  ;;  %1172 = vst.msk [vmem:[#allocation2 + $0x198] sm:$0x1] %vm1154_vm6, %v4203_v19  ;;  %v3680_v59 = vpop.permute.xlu0 %3679  ;;  %v800_v4 = vsel %vm768_vm3, %v767_v46, %v3687_v63  ;;  %v4181_v40 = vld [vmem:[%s5650_s3 + $0x10] sm:$0xff]  }
  0xe5   : > { %v3682_v8 = vunpack.i.h.bf16 %v3680_v59  ;;  %v3681_v10 = vunpack.i.l.bf16 %v3680_v59  ;;  %v816_v29 = vpack.c.bf16 %v800_v4, %v799_v23  ;;  %3223 = vmatpush3.bf16.msra.mxu0 %v4179_v54 }
  0xe6   : > { %3428 = vmatpush3.bf16.msra.mxu1 %v4179_v54  ;;  %3224 = vmatprep.subr.bf16.mxu0 %v4180_v45 }
  0xe7   : > { %v797_v24 = vsel %vm768_vm3, %v764_v61, %v3681_v10  ;;  %v798_v25 = vsel %vm768_vm3, %v765_v11, %v3682_v8  ;;  %3421 = vmatprep.subr.bf16.mxu1 %v4180_v45 }
  0xe8   : > { %v815_v37 = vpack.c.bf16 %v798_v25, %v797_v24  ;;  %v4184_v25 = vld [vmem:[%s5650_s3 + $0x40] sm:$0xff]  }
  0xe9   : > { %3225 = vmatpush3.bf16.msra.mxu0 %v4181_v40 }
  0xea   : > { %v1289_v39 = vld [vmem:[#allocation2 + $0xa] sm:$0xff]  ;;  %3376 = vmatprep.mubr.msk.bf16.mxu0 %vm840_vm4, %v815_v37  ;;  %3429 = vmatpush3.bf16.msra.mxu1 %v4181_v40 }
  0xeb   : > { %v3693_v38 = vpack.i.bf16 %v1289_v39, %v1288_v26  ;;  %3377 = vmatmul.mubr.msk.bf16.gmra.mxu0 %vm840_vm4, %v816_v29  ;;  %v4183_v39 = vld [vmem:[%s5650_s3 + $0x8] sm:$0xff]   ;;  %3226 = vmatprep.subr.bf16.mxu0 %v4182_v6 }
  0xec   : > { %3422 = vmatprep.subr.bf16.mxu1 %v4182_v6 }
  0xed   : > { %3694 = vrot.lane.b32.xlu1 %v3693_v38, %s4205_s7  ;;  %3227 = vmatpush3.bf16.msra.mxu0 %v4183_v39 }
  0xee   : > { %3430 = vmatpush3.bf16.msra.mxu1 %v4183_v39  ;;  %3228 = vmatprep.subr.bf16.mxu0 %v4184_v25 }
  0xef   : > { %3423 = vmatprep.subr.bf16.mxu1 %v4184_v25 }
 0x157   : > { %v3350_v20 = vpop.f32.mrf.mxu0 }
 0x158   : > { %v932_v28 = vadd.f32 %v3350_v20, %v4756_v21  ;;  %v4185_v20 = vld [vmem:[%s5650_s3] sm:$0xff]  }
 0x159   : > { %v923_v15 = vpop.f32.mrf.mxu0  ;;  %3229 = vmatpush3.bf16.msra.mxu0 %v4185_v20  ;;  %3431 = vmatpush3.bf16.msra.mxu1 %v4185_v20 }
 0x15a   : > { %vm1052_vm7 = vcmp.ge.f32.partialorder %v932_v28, 0.0  ;;  %v1084_v14 = vmul.f32 0.2, %v932_v28  ;;  %v924_v31 = vadd.f32 %v4756_v21, %v923_v15 }
 0x15b   : > { %v3351_v34 = vpop.f32.mrf.mxu0 }
 0x15c   : > { %v1116_v5 = vsel %vm1052_vm7, %v932_v28, %v1084_v14  ;;  %vm1050_vm8 = vcmp.ge.f32.partialorder %v924_v31, 0.0  ;;  %v1082_v44 = vmul.f32 0.2, %v924_v31  ;;  %v935_v27 = vadd.f32 %v3351_v34, %v4756_v21 }
 0x15d   : > { %1194 = vst.msk [vmem:[#allocation2 + $0x31] sm:$0xff] %vm840_vm4, %v1116_v5  ;;  %v926_v62 = vpop.f32.mrf.mxu0 }
 0x15e   : > { %v1114_v9 = vsel %vm1050_vm8, %v924_v31, %v1082_v44  ;;  %vm1053_vm9 = vcmp.ge.f32.partialorder %v935_v27, 0.0  ;;  %v1085_v47 = vmul.f32 0.2, %v935_v27  ;;  %v927_v49 = vadd.f32 %v4756_v21, %v926_v62  ;;  %v4837_v44 = vld [vmem:[%s5650_s3 + $0x88] sm:$0xff]  }
 0x15f   : > { %1192 = vst.msk [vmem:[#allocation2 + $0x19] sm:$0xff] %vm840_vm4, %v1114_v9  ;;  %3380 = vmatprep.subr.bf16.mxu0 %v4837_v44 }
 0x160   : > { %v1117_v52 = vsel %vm1053_vm9, %v935_v27, %v1085_v47  ;;  %vm1051_vm10 = vcmp.ge.f32.partialorder %v927_v49, 0.0  ;;  %v1083_v60 = vmul.f32 0.2, %v927_v49 }
 0x161   : > { %1195 = vst.msk [vmem:[#allocation2 + $0x39] sm:$0xff] %vm840_vm4, %v1117_v52 }
 0x162   : > { %v1115_v58 = vsel %vm1051_vm10, %v927_v49, %v1083_v60 }
 0x163   : > { %1193 = vst.msk [vmem:[#allocation2 + $0x21] sm:$0xff] %vm840_vm4, %v1115_v58  ;;  %v3354_v12 = vpop.f32.mrf.mxu0 }
 0x164   : > { %v948_v7 = vadd.f32 %v3354_v12, %v4756_v21  ;;  %v1322_v51 = vld [vmem:[#allocation2 + $0x30] sm:$0xff] }
 0x165   : > { %v939_v41 = vpop.f32.mrf.mxu0  ;;  %v1260_v42 = vld [vmem:[#allocation2 + $0x31] sm:$0xff] }
 0x166   : > { %vm1056_vm11 = vcmp.ge.f32.partialorder %v948_v7, 0.0  ;;  %v1088_v1 = vmul.f32 0.2, %v948_v7  ;;  %v940_v16 = vadd.f32 %v4756_v21, %v939_v41  ;;  %v1320_v37 = vld [vmem:[#allocation2 + $0x18] sm:$0xff] }
 0x167   : > { %v3355_v55 = vpop.f32.mrf.mxu0  ;;  %v4858_v41 = vld [vmem:[#allocation2 + $0x19] sm:$0xff] }
 0x168   : > { %v1120_v56 = vsel %vm1056_vm11, %v948_v7, %v1088_v1  ;;  %vm1054_vm12 = vcmp.ge.f32.partialorder %v940_v16, 0.0  ;;  %v1086_v0 = vmul.f32 0.2, %v940_v16  ;;  %v951_v19 = vadd.f32 %v3355_v55, %v4756_v21  ;;  %v1386_v32 = vld [vmem:[#allocation2 + $0x32] sm:$0xff]  ;;  %v1387_v33 = vld [vmem:[#allocation2 + $0x3a] sm:$0xff] }
 0x169   : > { %v1323_v50 = vld [vmem:[#allocation2 + $0x38] sm:$0xff]  ;;  %1198 = vst.msk [vmem:[#allocation2 + $0x61] sm:$0xff] %vm840_vm4, %v1120_v56  ;;  %v942_v48 = vpop.f32.mrf.mxu0  ;;  %v3698_v46 = vpack.i.bf16 %v1387_v33, %v1386_v32 }
 0x16a   : > { %v4794_v53 = vpack.i.bf16 %v1323_v50, %v1322_v51  ;;  %v1118_v63 = vsel %vm1054_vm12, %v940_v16, %v1086_v0  ;;  %vm1057_vm13 = vcmp.ge.f32.partialorder %v951_v19, 0.0  ;;  %v1089_v57 = vmul.f32 0.2, %v951_v19  ;;  %v1261_v11 = vld [vmem:[#allocation2 + $0x39] sm:$0xff]  ;;  %v1385_v23 = vld [vmem:[#allocation2 + $0x22] sm:$0xff] }
 0x16b   : > { %v943_v61 = vadd.f32 %v4756_v21, %v942_v48  ;;  %v1384_v59 = vld [vmem:[#allocation2 + $0x1a] sm:$0xff]  ;;  %1196 = vst.msk [vmem:[#allocation2 + $0x49] sm:$0xff] %vm840_vm4, %v1118_v63  ;;  %3699 = vrot.lane.b32.xlu1 %v3698_v46, %s4204_s6  ;;  %v3708_v8 = vpack.i.bf16 %v1261_v11, %v1260_v42 }
 0x16c   : > { %3704 = vrot.lane.b32.xlu0 %v4794_v53, %s4206_s13  ;;  %v1121_v4 = vsel %vm1057_vm13, %v951_v19, %v1089_v57  ;;  %v4811_v10 = vpack.i.bf16 %v1385_v23, %v1384_v59  ;;  %v1321_v38 = vld [vmem:[#allocation2 + $0x20] sm:$0xff] }
 0x16d   : > { %vm1055_vm14 = vcmp.ge.f32.partialorder %v943_v61, 0.0  ;;  %v1087_v26 = vmul.f32 0.2, %v943_v61  ;;  %1199 = vst.msk [vmem:[#allocation2 + $0x69] sm:$0xff] %vm840_vm4, %v1121_v4  ;;  %v3743_v36 = vpack.i.bf16 %v1321_v38, %v1320_v37  ;;  %v4853_v7 = vld [vmem:[#allocation2 + $0x21] sm:$0xff] }
 0x16e   : > { %v3728_v16 = vpack.i.bf16 %v4853_v7, %v4858_v41 }
 0x16f   : > { %v1119_v17 = vsel %vm1055_vm14, %v943_v61, %v1087_v26  ;;  %v3358_v24 = vpop.f32.mrf.mxu0  ;;  %3739 = vrot.lane.b32.xlu1 %v4811_v10, %s4204_s6 }
 0x170   : > { %1197 = vst.msk [vmem:[#allocation2 + $0x51] sm:$0xff] %vm840_vm4, %v1119_v17  ;;  %3709 = vrot.lane.b32.xlu0 %v3708_v8, %s4204_s6  ;;  %v964_v29 = vadd.f32 %v3358_v24, %v4756_v21  ;;  %v1421_v34 = vld [vmem:[#allocation2 + $0x60] sm:$0xff] }
 0x171   : > { %v955_v35 = vpop.f32.mrf.mxu0  ;;  %v4847_v13 = vld [vmem:[#allocation2 + $0x61] sm:$0xff] }
 0x172   : > { %vm1060_vm15 = vcmp.ge.f32.partialorder %v964_v29, 0.0  ;;  %v1092_v18 = vmul.f32 0.2, %v964_v29  ;;  %v956_v28 = vadd.f32 %v4756_v21, %v955_v35  ;;  %v1419_v32 = vld [vmem:[#allocation2 + $0x48] sm:$0xff] }
 0x173   : > { %v3359_v30 = vpop.f32.mrf.mxu0  ;;  %3744 = vrot.lane.b32.xlu1 %v3743_v36, %s4206_s13  ;;  %v1451_v61 = vld [vmem:[#allocation2 + $0x49] sm:$0xff] }
 0x174   : > { %3714 = vrot.lane.b32.xlu0 %v3698_v46, %s4205_s7  ;;  %v1124_v15 = vsel %vm1060_vm15, %v964_v29, %v1092_v18  ;;  %vm1058_vm0 = vcmp.ge.f32.partialorder %v956_v28, 0.0  ;;  %v1090_v14 = vmul.f32 0.2, %v956_v28  ;;  %v967_v31 = vadd.f32 %v3359_v30, %v4756_v21  ;;  %v1422_v22 = vld [vmem:[#allocation2 + $0x68] sm:$0xff] }
 0x175   : > { %1202 = vst.msk [vmem:[#allocation2 + $0x91] sm:$0xff] %vm840_vm4, %v1124_v15  ;;  %v958_v43 = vpop.f32.mrf.mxu0  ;;  %v4832_v5 = vpack.i.bf16 %v1422_v22, %v1421_v34  ;;  %v4840_v47 = vld [vmem:[#allocation2 + $0x69] sm:$0xff] }
 0x176   : > { %v1122_v27 = vsel %vm1058_vm0, %v956_v28, %v1090_v14  ;;  %vm1061_vm1 = vcmp.ge.f32.partialorder %v967_v31, 0.0  ;;  %v1093_v62 = vmul.f32 0.2, %v967_v31  ;;  %v959_v9 = vadd.f32 %v4756_v21, %v958_v43  ;;  %v1390_v58 = vld [vmem:[#allocation2 + $0x62] sm:$0xff]  ;;  %v1391_v12 = vld [vmem:[#allocation2 + $0x6a] sm:$0xff] }
 0x177   : > { %1200 = vst.msk [vmem:[#allocation2 + $0x79] sm:$0xff] %vm840_vm4, %v1122_v27  ;;  %3749 = vrot.lane.b32.xlu1 %v4832_v5, %s4205_s7  ;;  %v3753_v52 = vpack.i.bf16 %v4840_v47, %v4847_v13  ;;  %v4861_v1 = vpack.i.bf16 %v1391_v12, %v1390_v58  ;;  %v1420_v51 = vld [vmem:[#allocation2 + $0x50] sm:$0xff] }
 0x178   : > { %3719 = vrot.lane.b32.xlu0 %v4794_v53, %s4205_s7  ;;  %v1125_v49 = vsel %vm1061_vm1, %v967_v31, %v1093_v62  ;;  %vm1059_vm2 = vcmp.ge.f32.partialorder %v959_v9, 0.0  ;;  %v1091_v3 = vmul.f32 0.2, %v959_v9  ;;  %v4870_v46 = vpack.i.bf16 %v1420_v51, %v1419_v32  ;;  %v1452_v45 = vld [vmem:[#allocation2 + $0x51] sm:$0xff] }
 0x179   : > { %1203 = vst.msk [vmem:[#allocation2 + $0x99] sm:$0xff] %vm840_vm4, %v1125_v49  ;;  %v3783_v23 = vpack.i.bf16 %v1452_v45, %v1451_v61  ;;  %v1388_v4 = vld [vmem:[#allocation2 + $0x4a] sm:$0xff]  ;;  %v1389_v26 = vld [vmem:[#allocation2 + $0x52] sm:$0xff] }
 0x17a   : > { %v1123_v60 = vsel %vm1059_vm2, %v959_v9, %v1091_v3 }
 0x17b   : > { %1201 = vst.msk [vmem:[#allocation2 + $0x81] sm:$0xff] %vm840_vm4, %v1123_v60  ;;  %3754 = vrot.lane.b32.xlu1 %v3753_v52, %s4206_s13  ;;  %v3362_v2 = vpop.f32.mrf.mxu0 }
 0x17c   : > { %3724 = vrot.lane.b32.xlu0 %v3708_v8, %s4206_s13  ;;  %v980_v54 = vadd.f32 %v3362_v2, %v4756_v21  ;;  %v1425_v17 = vld [vmem:[#allocation2 + $0x90] sm:$0xff] }
 0x17d   : > { %v971_v55 = vpop.f32.mrf.mxu0  ;;  %v1457_v28 = vld [vmem:[#allocation2 + $0x91] sm:$0xff] }
 0x17e   : > { %vm1064_vm3 = vcmp.ge.f32.partialorder %v980_v54, 0.0  ;;  %v1096_v56 = vmul.f32 0.2, %v980_v54  ;;  %v972_v0 = vadd.f32 %v4756_v21, %v971_v55  ;;  %v1423_v2 = vld [vmem:[#allocation2 + $0x78] sm:$0xff] }
 0x17f   : > { %3759 = vrot.lane.b32.xlu1 %v4861_v1, %s4204_s6  ;;  %v3363_v19 = vpop.f32.mrf.mxu0  ;;  %v1455_v32 = vld [vmem:[#allocation2 + $0x79] sm:$0xff] }
 0x180   : > { %3729 = vrot.lane.b32.xlu0 %v3728_v16, %s4204_s6  ;;  %v1128_v33 = vsel %vm1064_vm3, %v980_v54, %v1096_v56  ;;  %vm1062_vm5 = vcmp.ge.f32.partialorder %v972_v0, 0.0  ;;  %v1094_v50 = vmul.f32 0.2, %v972_v0  ;;  %v983_v48 = vadd.f32 %v3363_v19, %v4756_v21  ;;  %v1426_v38 = vld [vmem:[#allocation2 + $0x98] sm:$0xff] }
 0x181   : > { %1206 = vst.msk [vmem:[#allocation2 + $0xc1] sm:$0xff] %vm840_vm4, %v1128_v33  ;;  %v974_v53 = vpop.f32.mrf.mxu0  ;;  %v4892_v20 = vpack.i.bf16 %v1426_v38, %v1425_v17  ;;  %v1458_v30 = vld [vmem:[#allocation2 + $0x99] sm:$0xff] }
 0x182   : > { %v1126_v40 = vsel %vm1062_vm5, %v972_v0, %v1094_v50  ;;  %vm1065_vm6 = vcmp.ge.f32.partialorder %v983_v48, 0.0  ;;  %v1097_v63 = vmul.f32 0.2, %v983_v48  ;;  %v975_v57 = vadd.f32 %v4756_v21, %v974_v53  ;;  %v1394_v9 = vld [vmem:[#allocation2 + $0x92] sm:$0xff]  ;;  %v1395_v49 = vld [vmem:[#allocation2 + $0x9a] sm:$0xff] }
 0x183   : > { %3779 = vrot.lane.b32.xlu1 %v4870_v46, %s4205_s7  ;;  %1204 = vst.msk [vmem:[#allocation2 + $0xa9] sm:$0xff] %vm840_vm4, %v1126_v40  ;;  %v4905_v27 = vpack.i.bf16 %v1458_v30, %v1457_v28  ;;  %v4916_v58 = vpack.i.bf16 %v1395_v49, %v1394_v9  ;;  %v1424_v54 = vld [vmem:[#allocation2 + $0x80] sm:$0xff] }
 0x184   : > { %3734 = vrot.lane.b32.xlu0 %v4811_v10, %s4205_s7  ;;  %v1129_v11 = vsel %vm1065_vm6, %v983_v48, %v1097_v63  ;;  %vm1063_vm7 = vcmp.ge.f32.partialorder %v975_v57, 0.0  ;;  %v1095_v59 = vmul.f32 0.2, %v975_v57  ;;  %v4885_v10 = vpack.i.bf16 %v1389_v26, %v1388_v4  ;;  %v1456_v33 = vld [vmem:[#allocation2 + $0x81] sm:$0xff] }
 0x185   : > { %1207 = vst.msk [vmem:[#allocation2 + $0xc9] sm:$0xff] %vm840_vm4, %v1129_v11  ;;  %v4923_v19 = vpack.i.bf16 %v1424_v54, %v1423_v2  ;;  %v1392_v26 = vld [vmem:[#allocation2 + $0x7a] sm:$0xff] }
 0x186   : > { %v1127_v42 = vsel %vm1063_vm7, %v975_v57, %v1095_v59  ;;  %v3843_v59 = vpack.i.bf16 %v1456_v33, %v1455_v32 }
 0x187   : > { %3784 = vrot.lane.b32.xlu1 %v3783_v23, %s4206_s13  ;;  %1205 = vst.msk [vmem:[#allocation2 + $0xb1] sm:$0xff] %vm840_vm4, %v1127_v42  ;;  %v3366_v6 = vpop.f32.mrf.mxu0  ;;  %v1393_v42 = vld [vmem:[#allocation2 + $0x82] sm:$0xff] }
 0x188   : > { %3764 = vrot.lane.b32.xlu0 %v4832_v5, %s4206_s13  ;;  %v996_v8 = vadd.f32 %v3366_v6, %v4756_v21  ;;  %v1429_v38 = vld [vmem:[#allocation2 + $0xc0] sm:$0xff] }
 0x189   : > { %v987_v39 = vpop.f32.mrf.mxu0  ;;  %v1461_v30 = vld [vmem:[#allocation2 + $0xc1] sm:$0xff] }
 0x18a   : > { %vm1068_vm8 = vcmp.ge.f32.partialorder %v996_v8, 0.0  ;;  %v1100_v24 = vmul.f32 0.2, %v996_v8  ;;  %v988_v25 = vadd.f32 %v4756_v21, %v987_v39  ;;  %v3848_v39 = vpack.i.bf16 %v1393_v42, %v1392_v26 }
 0x18b   : > { %3789 = vrot.lane.b32.xlu1 %v4885_v10, %s4204_s6  ;;  %v3367_v29 = vpop.f32.mrf.mxu0 }
 0x18c   : > { %3769 = vrot.lane.b32.xlu0 %v3753_v52, %s4204_s6  ;;  %v1132_v37 = vsel %vm1068_vm8, %v996_v8, %v1100_v24  ;;  %vm1066_vm9 = vcmp.ge.f32.partialorder %v988_v25, 0.0  ;;  %v1098_v35 = vmul.f32 0.2, %v988_v25  ;;  %v999_v36 = vadd.f32 %v3367_v29, %v4756_v21  ;;  %v1430_v24 = vld [vmem:[#allocation2 + $0xc8] sm:$0xff] }
 0x18d   : > { %1210 = vst.msk [vmem:[#allocation2 + $0xf1] sm:$0xff] %vm840_vm4, %v1132_v37  ;;  %v990_v18 = vpop.f32.mrf.mxu0  ;;  %v1398_v49 = vld [vmem:[#allocation2 + $0xc2] sm:$0xff] }
 0x18e   : > { %v1130_v15 = vsel %vm1066_vm9, %v988_v25, %v1098_v35  ;;  %vm1069_vm10 = vcmp.ge.f32.partialorder %v999_v36, 0.0  ;;  %v1101_v14 = vmul.f32 0.2, %v999_v36  ;;  %v991_v31 = vadd.f32 %v4756_v21, %v990_v18  ;;  %v4896_v34 = vld [vmem:[#allocation2 + $0xaa] sm:$0xff]  ;;  %v4903_v22 = vld [vmem:[#allocation2 + $0xb2] sm:$0xff] }
 0x18f   : > { %3809 = vrot.lane.b32.xlu1 %v4892_v20, %s4205_s7  ;;  %1208 = vst.msk [vmem:[#allocation2 + $0xd9] sm:$0xff] %vm840_vm4, %v1130_v15  ;;  %v2492_v62 = vpack.c.bf16 %v4903_v22, %v4896_v34  ;;  %v3868_v18 = vpack.i.bf16 %v1430_v24, %v1429_v38  ;;  %v1462_v15 = vld [vmem:[#allocation2 + $0xc9] sm:$0xff]  ;;  %v3908_v42 = vpack.i.bf16 %v4903_v22, %v4896_v34  ;;  %vm2313_vm9 = vcmask 523264  }
 0x190   : > { %3774 = vrot.lane.b32.xlu0 %v4861_v1, %s4205_s7  ;;  %v1133_v43 = vsel %vm1069_vm10, %v999_v36, %v1101_v14  ;;  %vm1067_vm11 = vcmp.ge.f32.partialorder %v991_v31, 0.0  ;;  %v1099_v5 = vmul.f32 0.2, %v991_v31  ;;  %v3873_v9 = vpack.i.bf16 %v1462_v15, %v1461_v30 }
 0x191   : > { %1211 = vst.msk [vmem:[#allocation2 + $0xf9] sm:$0xff] %vm840_vm4, %v1133_v43  ;;  %vm2346_vm10 = vcmask 785408  }
 0x192   : > { %v1131_v3 = vsel %vm1067_vm11, %v991_v31, %v1099_v5 }
 0x193   : > { %3814 = vrot.lane.b32.xlu1 %v4905_v27, %s4206_s13  ;;  %1209 = vst.msk [vmem:[#allocation2 + $0xe1] sm:$0xff] %vm840_vm4, %v1131_v3  ;;  %v3370_v52 = vpop.f32.mrf.mxu0  ;;  %v1399_v3 = vld [vmem:[#allocation2 + $0xca] sm:$0xff] }
 0x194   : > { %3794 = vrot.lane.b32.xlu0 %v4870_v46, %s4206_s13  ;;  %v1012_v60 = vadd.f32 %v3370_v52, %v4756_v21 }
 0x195   : > { %v1003_v12 = vpop.f32.mrf.mxu0 }
 0x196   : > { %vm1072_vm12 = vcmp.ge.f32.partialorder %v1012_v60, 0.0  ;;  %v1104_v1 = vmul.f32 0.2, %v1012_v60  ;;  %v1004_v16 = vadd.f32 %v4756_v21, %v1003_v12  ;;  %v3878_v12 = vpack.i.bf16 %v1399_v3, %v1398_v49 }
 0x197   : > { %3819 = vrot.lane.b32.xlu1 %v4916_v58, %s4204_s6  ;;  %v3371_v55 = vpop.f32.mrf.mxu0 }
 0x198   : > { %3799 = vrot.lane.b32.xlu0 %v3783_v23, %s4204_s6  ;;  %v1136_v51 = vsel %vm1072_vm12, %v1012_v60, %v1104_v1  ;;  %vm1070_vm13 = vcmp.ge.f32.partialorder %v1004_v16, 0.0  ;;  %v1102_v56 = vmul.f32 0.2, %v1004_v16  ;;  %v1015_v0 = vadd.f32 %v3371_v55, %v4756_v21  ;;  %v4926_v48 = vld [vmem:[#allocation2 + $0xf2] sm:$0xff]  ;;  %v4929_v40 = vld [vmem:[#allocation2 + $0xfa] sm:$0xff] }
 0x199   : > { %1214 = vst.msk [vmem:[#allocation2 + $0x121] sm:$0xff] %vm840_vm4, %v1136_v51  ;;  %v1006_v50 = vpop.f32.mrf.mxu0  ;;  %v2501_v4 = vpack.c.bf16 %v4929_v40, %v4926_v48  ;;  %v3953_v24 = vpack.i.bf16 %v4929_v40, %v4926_v48 }
 0x19a   : > { %v1134_v46 = vsel %vm1070_vm13, %v1004_v16, %v1102_v56  ;;  %vm1073_vm14 = vcmp.ge.f32.partialorder %v1015_v0, 0.0  ;;  %v1105_v53 = vmul.f32 0.2, %v1015_v0  ;;  %v1007_v45 = vadd.f32 %v4756_v21, %v1006_v50  ;;  %v4931_v63 = vld [vmem:[#allocation2 + $0xda] sm:$0xff]  ;;  %v4933_v57 = vld [vmem:[#allocation2 + $0xe2] sm:$0xff] }
 0x19b   : > { %3839 = vrot.lane.b32.xlu1 %v4923_v19, %s4205_s7  ;;  %1212 = vst.msk [vmem:[#allocation2 + $0x109] sm:$0xff] %vm840_vm4, %v1134_v46  ;;  %v2498_v23 = vpack.c.bf16 %v4933_v57, %v4931_v63 }
 0x19c   : > { %3804 = vrot.lane.b32.xlu0 %v4885_v10, %s4205_s7  ;;  %v1137_v61 = vsel %vm1073_vm14, %v1015_v0, %v1105_v53  ;;  %vm1071_vm15 = vcmp.ge.f32.partialorder %v1007_v45, 0.0  ;;  %v1103_v11 = vmul.f32 0.2, %v1007_v45  ;;  %v1427_v53 = vld [vmem:[#allocation2 + $0xa8] sm:$0xff] }
 0x19d   : > { %1215 = vst.msk [vmem:[#allocation2 + $0x129] sm:$0xff] %vm840_vm4, %v1137_v61 }
 0x19e   : > { %v1135_v6 = vsel %vm1071_vm15, %v1007_v45, %v1103_v11  ;;  %v1428_v45 = vld [vmem:[#allocation2 + $0xb0] sm:$0xff] }
 0x19f   : > { %3844 = vrot.lane.b32.xlu1 %v3843_v59, %s4206_s13  ;;  %1213 = vst.msk [vmem:[#allocation2 + $0x111] sm:$0xff] %vm840_vm4, %v1135_v6  ;;  %v3374_v8 = vpop.f32.mrf.mxu0  ;;  %v1459_v11 = vld [vmem:[#allocation2 + $0xa9] sm:$0xff] }
 0x1a0   : > { %3824 = vrot.lane.b32.xlu0 %v4892_v20, %s4206_s13  ;;  %v1028_v10 = vadd.f32 %v3374_v8, %v4756_v21  ;;  %v1338_v6 = vld [vmem:[#allocation2 + $0xf0] sm:$0xff]  ;;  %v1339_v8 = vld [vmem:[#allocation2 + $0xf8] sm:$0xff] }
 0x1a1   : > { %v1019_v17 = vpop.f32.mrf.mxu0 }
 0x1a2   : > { %vm1076_vm0 = vcmp.ge.f32.partialorder %v1028_v10, 0.0  ;;  %v1108_v25 = vmul.f32 0.2, %v1028_v10  ;;  %v1020_v29 = vadd.f32 %v4756_v21, %v1019_v17  ;;  %v1277_v17 = vld [vmem:[#allocation2 + $0xf9] sm:$0xff] }
 0x1a3   : > { %3849 = vrot.lane.b32.xlu1 %v3848_v39, %s4204_s6  ;;  %v3375_v37 = vpop.f32.mrf.mxu0 }
 0x1a4   : > { %3829 = vrot.lane.b32.xlu0 %v4905_v27, %s4204_s6  ;;  %v1140_v35 = vsel %vm1076_vm0, %v1028_v10, %v1108_v25  ;;  %vm1074_vm1 = vcmp.ge.f32.partialorder %v1020_v29, 0.0  ;;  %v1106_v36 = vmul.f32 0.2, %v1020_v29  ;;  %v1031_v20 = vadd.f32 %v3375_v37, %v4756_v21  ;;  %v1431_v25 = vld [vmem:[#allocation2 + $0xd8] sm:$0xff]  ;;  %v5004_v49 = vld [vmem:[#allocation2 + $0x12a] sm:$0xff] }
 0x1a5   : > { %1218 = vst.msk [vmem:[#allocation2 + $0x151] sm:$0xff] %vm840_vm4, %v1140_v35  ;;  %v1022_v28 = vpop.f32.mrf.mxu0  ;;  %v3943_v10 = vpack.i.bf16 %v1339_v8, %v1338_v6  ;;  %v3968_v35 = vpack.i.bf16 %v4933_v57, %v4931_v63  ;;  %v1361_v57 = vld [vmem:[#allocation2 + $0x81] sm:$0xff] }
 0x1a6   : > { %v1138_v14 = vsel %vm1074_vm1, %v1020_v29, %v1106_v36  ;;  %vm1077_vm2 = vcmp.ge.f32.partialorder %v1031_v20, 0.0  ;;  %v1109_v31 = vmul.f32 0.2, %v1031_v20  ;;  %v1023_v43 = vadd.f32 %v4756_v21, %v1022_v28  ;;  %v1432_v29 = vld [vmem:[#allocation2 + $0xe0] sm:$0xff]  ;;  %v1438_v28 = vld [vmem:[#allocation2 + $0x128] sm:$0xff] }
 0x1a7   : > { %3869 = vrot.lane.b32.xlu1 %v3868_v18, %s4205_s7  ;;  %1216 = vst.msk [vmem:[#allocation2 + $0x139] sm:$0xff] %vm840_vm4, %v1138_v14  ;;  %v3958_v37 = vpack.i.bf16 %v1432_v29, %v1431_v25  ;;  %v1463_v36 = vld [vmem:[#allocation2 + $0xd9] sm:$0xff]  ;;  %v1469_v14 = vld [vmem:[#allocation2 + $0x121] sm:$0xff] }
 0x1a8   : > { %3834 = vrot.lane.b32.xlu0 %v4916_v58, %s4205_s7  ;;  %v1141_v5 = vsel %vm1077_vm2, %v1031_v20, %v1109_v31  ;;  %vm1075_vm3 = vcmp.ge.f32.partialorder %v1023_v43, 0.0  ;;  %v1107_v27 = vmul.f32 0.2, %v1023_v43  ;;  %v1464_v20 = vld [vmem:[#allocation2 + $0xe1] sm:$0xff]  ;;  %v1470_v31 = vld [vmem:[#allocation2 + $0x129] sm:$0xff] }
 0x1a9   : > { %1219 = vst.msk [vmem:[#allocation2 + $0x159] sm:$0xff] %vm840_vm4, %v1141_v5  ;;  %v3963_v30 = vpack.i.bf16 %v1464_v20, %v1463_v36  ;;  %v3690_v5 = vpop.permute.xlu0 %3689 }
 0x1aa   : > { %v1139_v52 = vsel %vm1075_vm3, %v1023_v43, %v1107_v27  ;;  %v3695_v43 = vpop.permute.xlu1 %3694  ;;  %v3993_v27 = vpack.i.bf16 %v1470_v31, %v1469_v14 }
 0x1ab   : > { %3874 = vrot.lane.b32.xlu1 %v3873_v9, %s4206_s13  ;;  %1217 = vst.msk [vmem:[#allocation2 + $0x141] sm:$0xff] %vm840_vm4, %v1139_v52  ;;  %v3378_v60 = vpop.f32.mrf.mxu0 }
 0x1ac   : > { %3854 = vrot.lane.b32.xlu0 %v4923_v19, %s4206_s13  ;;  %v1044_v58 = vadd.f32 %v3378_v60, %v4756_v21  ;;  %v1441_v6 = vld [vmem:[#allocation2 + $0x150] sm:$0xff] }
 0x1ad   : > { %v1035_v2 = vpop.f32.mrf.mxu0 }
 0x1ae   : > { %vm1080_vm5 = vcmp.ge.f32.partialorder %v1044_v58, 0.0  ;;  %v1112_v54 = vmul.f32 0.2, %v1044_v58  ;;  %v1036_v1 = vadd.f32 %v4756_v21, %v1035_v2 }
 0x1af   : > { %3879 = vrot.lane.b32.xlu1 %v3878_v12, %s4204_s6  ;;  %v3379_v16 = vpop.f32.mrf.mxu0 }
 0x1b0   : > { %3859 = vrot.lane.b32.xlu0 %v3843_v59, %s4204_s6  ;;  %v1144_v55 = vsel %vm1080_vm5, %v1044_v58, %v1112_v54  ;;  %vm1078_vm6 = vcmp.ge.f32.partialorder %v1036_v1, 0.0  ;;  %v1110_v51 = vmul.f32 0.2, %v1036_v1  ;;  %v1047_v56 = vadd.f32 %v3379_v16, %v4756_v21  ;;  %v1460_v59 = vld [vmem:[#allocation2 + $0xb1] sm:$0xff]  ;;  %v1435_v58 = vld [vmem:[#allocation2 + $0x108] sm:$0xff] }
 0x1b1   : > { %1222 = vst.msk [vmem:[#allocation2 + $0x181] sm:$0xff] %vm840_vm4, %v1144_v55  ;;  %v1038_v0 = vpop.f32.mrf.mxu0  ;;  %v3903_v26 = vpack.i.bf16 %v1460_v59, %v1459_v11  ;;  %v1467_v16 = vld [vmem:[#allocation2 + $0x109] sm:$0xff]  ;;  %v1468_v55 = vld [vmem:[#allocation2 + $0x111] sm:$0xff] }
 0x1b2   : > { %v1142_v19 = vsel %vm1078_vm6, %v1036_v1, %v1110_v51  ;;  %vm1081_vm7 = vcmp.ge.f32.partialorder %v1047_v56, 0.0  ;;  %v1113_v32 = vmul.f32 0.2, %v1047_v56  ;;  %v1039_v33 = vadd.f32 %v4756_v21, %v1038_v0  ;;  %v1442_v8 = vld [vmem:[#allocation2 + $0x158] sm:$0xff] }
 0x1b3   : > { %3889 = vrot.lane.b32.xlu1 %v3873_v9, %s4204_s6  ;;  %1220 = vst.msk [vmem:[#allocation2 + $0x169] sm:$0xff] %vm840_vm4, %v1142_v19  ;;  %v3898_v21 = vpack.i.bf16 %v1428_v45, %v1427_v53  ;;  %v5002_v9 = vld [vmem:[#allocation2 + $0x122] sm:$0xff]  ;;  %v5025_v0 = vpack.i.bf16 %v1468_v55, %v1467_v16  ;;  %v3691_v19 = vunpack.i.l.bf16 %v3690_v5  ;;  %v3696_v53 = vunpack.i.l.bf16 %v3695_v43  ;;  %v1481_v55 = vld [vmem:[#allocation2 + $0x32] sm:$0xff] }
 0x1b4   : > { %3864 = vrot.lane.b32.xlu0 %v3848_v39, %s4205_s7  ;;  %v1145_v50 = vsel %vm1081_vm7, %v1047_v56, %v1113_v32  ;;  %vm1079_vm8 = vcmp.ge.f32.partialorder %v1039_v33, 0.0  ;;  %v1111_v46 = vmul.f32 0.2, %v1039_v33  ;;  %v1276_v39 = vld [vmem:[#allocation2 + $0xf1] sm:$0xff]  ;;  %v3998_v60 = vpack.i.bf16 %v5004_v49, %v5002_v9  ;;  %v1225_v45 = vld [vmem:[#allocation2 + $0x8] sm:$0xff] }
 0x1b5   : > { %1223 = vst.msk [vmem:[#allocation2 + $0x189] sm:$0xff] %vm840_vm4, %v1145_v50  ;;  %v3948_v38 = vpack.i.bf16 %v1277_v17, %v1276_v39  ;;  %v5027_v32 = vld [vmem:[#allocation2 + $0x10a] sm:$0xff]  ;;  %v1224_v50 = vld [vmem:[#allocation2] sm:$0xff]  ;;  %v5048_v36 = vpack.i.bf16 %v1442_v8, %v1441_v6  ;;  %v1439_v8 = vld [vmem:[#allocation2 + $0x138] sm:$0xff] }
 0x1b6   : > { %v1143_v61 = vsel %vm1079_vm8, %v1039_v33, %v1111_v46  ;;  %v5029_v33 = vld [vmem:[#allocation2 + $0x112] sm:$0xff]  ;;  %v3692_v46 = vunpack.i.h.bf16 %v3690_v5  ;;  %v2281_v59 = vsel %vm840_vm4, %v1224_v50, %v3691_v19  ;;  %v5070_v50 = vld [vmem:[#allocation2 + $0x15a] sm:$0xff] }
 0x1b7   : > { %3894 = vrot.lane.b32.xlu1 %v3878_v12, %s4205_s7  ;;  %1221 = vst.msk [vmem:[#allocation2 + $0x171] sm:$0xff] %vm840_vm4, %v1143_v61  ;;  %v1436_v12 = vld [vmem:[#allocation2 + $0x110] sm:$0xff]  ;;  %v5038_v11 = vpack.i.bf16 %v5029_v33, %v5027_v32  ;;  %v2314_v29 = vsel %vm2313_vm9, %v2281_v59, %v3696_v53  ;;  %v1474_v5 = vld [vmem:[#allocation2 + $0x159] sm:$0xff] }
 0x1b8   : > { %3884 = vrot.lane.b32.xlu0 %v3868_v18, %s4206_s13  ;;  %v1437_v18 = vld [vmem:[#allocation2 + $0x120] sm:$0xff]  ;;  %v5018_v1 = vpack.i.bf16 %v1436_v12, %v1435_v58  ;;  %v5068_v19 = vld [vmem:[#allocation2 + $0x152] sm:$0xff] }
 0x1b9   : > { %v3988_v15 = vpack.i.bf16 %v1438_v28, %v1437_v18  ;;  %v4187_v53 = vld [vmem:[%s5650_s3 + $0x80] sm:$0xff]   ;;  %v5081_v6 = vpack.i.bf16 %v5070_v50, %v5068_v19 }
 0x1bb   : > { %3899 = vrot.lane.b32.xlu1 %v3898_v21, %s4205_s7 }
 0x1bc   : > { %3914 = vrot.lane.b32.xlu0 %v3898_v21, %s4206_s13 }
 0x1bf   : > { %3904 = vrot.lane.b32.xlu1 %v3903_v26, %s4206_s13 }
 0x1c0   : > { %3919 = vrot.lane.b32.xlu0 %v3903_v26, %s4204_s6 }
 0x1c3   : > { %3909 = vrot.lane.b32.xlu1 %v3908_v42, %s4204_s6 }
 0x1c4   : > { %3924 = vrot.lane.b32.xlu0 %v3908_v42, %s4205_s7 }
 0x1c7   : > { %3944 = vrot.lane.b32.xlu1 %v3943_v10, %s4206_s13 }
 0x1c8   : > { %3929 = vrot.lane.b32.xlu0 %v3943_v10, %s4205_s7  ;;  %v3697_v10 = vunpack.i.h.bf16 %v3695_v43  ;;  %v1473_v43 = vld [vmem:[#allocation2 + $0x151] sm:$0xff] }
 0x1cb   : > { %3949 = vrot.lane.b32.xlu1 %v3948_v38, %s4204_s6 }
 0x1cc   : > { %3934 = vrot.lane.b32.xlu0 %v3948_v38, %s4206_s13  ;;  %v2282_v38 = vsel %vm840_vm4, %v1225_v45, %v3692_v46 }
 0x1cf   : > { %3954 = vrot.lane.b32.xlu1 %v3953_v24, %s4205_s7 }
 0x1d0   : > { %3939 = vrot.lane.b32.xlu0 %v3953_v24, %s4204_s6 }
 0x1d3   : > { %3959 = vrot.lane.b32.xlu1 %v3958_v37, %s4205_s7 }
 0x1d4   : > { %3969 = vrot.lane.b32.xlu0 %v3968_v35, %s4204_s6 }
 0x1d7   : > { %3964 = vrot.lane.b32.xlu1 %v3963_v30, %s4206_s13 }
 0x1d8   : > { %3989 = vrot.lane.b32.xlu0 %v3988_v15, %s4205_s7 }
 0x1db   : > { %3974 = vrot.lane.b32.xlu1 %v3958_v37, %s4206_s13 }
 0x1dc   : > { %3994 = vrot.lane.b32.xlu0 %v3993_v27, %s4206_s13 }
 0x1dd   : > { %v5008_v3 = vpop.permute.xlu1 %3699 }
 0x1de   : > { %v5010_v52 = vpop.permute.xlu0 %3704 }
 0x1df   : > { %3979 = vrot.lane.b32.xlu1 %v3963_v30, %s4204_s6 }
 0x1e0   : > { %3999 = vrot.lane.b32.xlu0 %v3998_v60, %s4204_s6 }
 0x1e1   : > { %v3740_v54 = vpop.permute.xlu1 %3739 }
 0x1e2   : > { %v5016_v2 = vpop.permute.xlu0 %3709  ;;  %v3742_v26 = vunpack.i.h.bf16 %v3740_v54  ;;  %v3741_v42 = vunpack.i.l.bf16 %v3740_v54 }
 0x1e3   : > { %3984 = vrot.lane.b32.xlu1 %v3968_v35, %s4205_s7 }
 0x1e4   : > { %4019 = vrot.lane.b32.xlu0 %v5018_v1, %s4205_s7  ;;  %v2380_v20 = vsel %vm840_vm4, %v4853_v7, %v3742_v26  ;;  %v2379_v18 = vsel %vm840_vm4, %v4858_v41, %v3741_v42 }
 0x1e5   : > { %v3745_v56 = vpop.permute.xlu1 %3744 }
 0x1e6   : > { %v5023_v51 = vpop.permute.xlu0 %3714  ;;  %v3747_v24 = vunpack.i.h.bf16 %v3745_v56  ;;  %v3746_v25 = vunpack.i.l.bf16 %v3745_v56  ;;  %v1482_v56 = vld [vmem:[#allocation2 + $0x3a] sm:$0xff] }
 0x1e7   : > { %4004 = vrot.lane.b32.xlu1 %v3988_v15, %s4206_s13  ;;  %v2315_v15 = vsel %vm2313_vm9, %v2282_v38, %v3697_v10  ;;  %v2477_v59 = vpack.c.bf16 %v1482_v56, %v1481_v55  ;;  %v1440_v10 = vld [vmem:[#allocation2 + $0x140] sm:$0xff] }
 0x1e8   : > { %4024 = vrot.lane.b32.xlu0 %v5025_v0, %s4206_s13  ;;  %v2348_v7 = vsel %vm2346_vm10, %v2315_v15, %v3747_v24  ;;  %v1226_v24 = vld [vmem:[#allocation2 + $0x18] sm:$0xff]  ;;  %v1486_v15 = vld [vmem:[#allocation2 + $0x6a] sm:$0xff] }
 0x1e9   : > { %v5034_v21 = vpop.permute.xlu1 %3749 }
 0x1ea   : > { %v3720_v61 = vpop.permute.xlu0 %3719 }
 0x1eb   : > { %v3722_v39 = vunpack.i.h.bf16 %v3720_v61  ;;  %v3721_v17 = vunpack.i.l.bf16 %v3720_v61  ;;  %4009 = vrot.lane.b32.xlu1 %v3993_v27, %s4204_s6  ;;  %v2347_v27 = vsel %vm2346_vm10, %v2314_v29, %v3746_v25  ;;  %v1227_v25 = vld [vmem:[#allocation2 + $0x20] sm:$0xff] }
 0x1ec   : > { %4029 = vrot.lane.b32.xlu0 %v5038_v11, %s4204_s6  ;;  %v2475_v46 = vpack.c.bf16 %v2348_v7, %v2347_v27  ;;  %v1354_v27 = vld [vmem:[#allocation2 + $0x31] sm:$0xff] }
 0x1ed   : > { %v5046_v35 = vpop.permute.xlu1 %3754  ;;  %v2411_v14 = vsel %vm2313_vm9, %v2379_v18, %v3721_v17  ;;  %v2412_v31 = vsel %vm2313_vm9, %v2380_v20, %v3722_v39  ;;  %v3701_v39 = vunpack.i.l.bf16 %v5008_v3  ;;  %v1485_v20 = vld [vmem:[#allocation2 + $0x62] sm:$0xff] }
 0x1ee   : > { %v3725_v37 = vpop.permute.xlu0 %3724  ;;  %v2483_v56 = vpack.c.bf16 %v1486_v15, %v1485_v20  ;;  %v3751_v20 = vunpack.i.l.bf16 %v5034_v21 }
 0x1ef   : > { %v3727_v28 = vunpack.i.h.bf16 %v3725_v37  ;;  %v3726_v30 = vunpack.i.l.bf16 %v3725_v37  ;;  %4014 = vrot.lane.b32.xlu1 %v3998_v60, %s4205_s7  ;;  %v5066_v60 = vpack.i.bf16 %v1474_v5, %v1473_v43 }
 0x1f0   : > { %4049 = vrot.lane.b32.xlu0 %v5048_v36, %s4205_s7 }
 0x1f1   : > { %v2443_v41 = vsel %vm2346_vm10, %v2411_v14, %v3726_v30  ;;  %v2444_v58 = vsel %vm2346_vm10, %v2412_v31, %v3727_v28  ;;  %v5064_v12 = vpop.permute.xlu1 %3759  ;;  %v1484_v30 = vld [vmem:[#allocation2 + $0x52] sm:$0xff]  ;;  %v3707_v14 = vunpack.i.h.bf16 %v5010_v52  ;;  %v3706_v31 = vunpack.i.l.bf16 %v5010_v52 }
 0x1f2   : > { %v3730_v54 = vpop.permute.xlu0 %3729  ;;  %v2476_v16 = vpack.c.bf16 %v2444_v58, %v2443_v41  ;;  %v1355_v41 = vld [vmem:[#allocation2 + $0x39] sm:$0xff] }
 0x1f3   : > { %4034 = vrot.lane.b32.xlu1 %v5018_v1, %s4206_s13  ;;  %v3732_v45 = vunpack.i.h.bf16 %v3730_v54  ;;  %v3731_v61 = vunpack.i.l.bf16 %v3730_v54  ;;  %v3702_v1 = vunpack.i.h.bf16 %v5008_v3  ;;  %v1483_v3 = vld [vmem:[#allocation2 + $0x4a] sm:$0xff] }
 0x1f4   : > { %2754 = vmatprep.mubr.bf16.mxu0 %v2476_v16  ;;  %4054 = vrot.lane.b32.xlu0 %v5066_v60, %s4206_s13  ;;  %v2381_v16 = vsel %vm840_vm4, %v1354_v27, %v3701_v39  ;;  %v2480_v52 = vpack.c.bf16 %v1484_v30, %v1483_v3  ;;  %v1356_v39 = vld [vmem:[#allocation2 + $0x49] sm:$0xff] }
 0x1f5   : > { %2755 = vmatmul.mubr.bf16.vlgmr.msra.gmra.mxu0 %v2475_v46  ;;  %v3780_v26 = vpop.permute.xlu1 %3779  ;;  %v2283_v18 = vsel %vm840_vm4, %v1226_v24, %v3731_v61  ;;  %v2284_v28 = vsel %vm840_vm4, %v1227_v25, %v3732_v45  ;;  %v2382_v55 = vsel %vm840_vm4, %v1355_v41, %v3702_v1  ;;  %v5107_v61 = vld [vmem:[#allocation2 + $0x139] sm:$0xff]  ;;  %v5129_v3 = vld [vmem:[#allocation2 + $0x142] sm:$0xff] }
 0x1f6   : > { %v3735_v42 = vpop.permute.xlu0 %3734  ;;  %3381 = vmatpush3.bf16.msra.mxu0 %v4837_v44  ;;  %3384 = vmatprep.mubr.msk.bf16.mxu0 %vm840_vm4, %v2477_v59  ;;  %v3782_v29 = vunpack.i.h.bf16 %v3780_v26  ;;  %v3781_v37 = vunpack.i.l.bf16 %v3780_v26  ;;  %v5093_v44 = vpack.i.bf16 %v1440_v10, %v1439_v8  ;;  %v5109_v59 = vld [vmem:[#allocation2 + $0x141] sm:$0xff] }
 0x1f7   : > { %v3737_v17 = vunpack.i.h.bf16 %v3735_v42  ;;  %v3736_v38 = vunpack.i.l.bf16 %v3735_v42  ;;  %4039 = vrot.lane.b32.xlu1 %v5025_v0, %s4204_s6  ;;  %3382 = vmatprep.subr.bf16.mxu0 %v4187_v53  ;;  %v4078_v25 = vpack.i.bf16 %v5109_v59, %v5107_v61  ;;  %v1488_v30 = vld [vmem:[#allocation2 + $0x82] sm:$0xff] }
 0x1f8   : > { %4059 = vrot.lane.b32.xlu0 %v5081_v6, %s4204_s6  ;;  %v2413_v46 = vsel %vm2313_vm9, %v2381_v16, %v3781_v37  ;;  %v2414_v45 = vsel %vm2313_vm9, %v2382_v55, %v3782_v29  ;;  %v1487_v29 = vld [vmem:[#allocation2 + $0x7a] sm:$0xff]  ;;  %v3752_v37 = vunpack.i.h.bf16 %v5034_v21  ;;  %v3756_v21 = vunpack.i.l.bf16 %v5046_v35 }
 0x1f9   : > { %v2316_v0 = vsel %vm2313_vm9, %v2283_v18, %v3736_v38  ;;  %v2317_v43 = vsel %vm2313_vm9, %v2284_v28, %v3737_v17  ;;  %v3785_v5 = vpop.permute.xlu1 %3784  ;;  %v1357_v17 = vld [vmem:[#allocation2 + $0x51] sm:$0xff]  ;;  %v5127_v28 = vld [vmem:[#allocation2 + $0x13a] sm:$0xff]  ;;  %v2486_v55 = vpack.c.bf16 %v1488_v30, %v1487_v29 }
 0x1fa   : > { %v5099_v7 = vpop.permute.xlu0 %3764  ;;  %v3787_v58 = vunpack.i.h.bf16 %v3785_v5  ;;  %v3786_v54 = vunpack.i.l.bf16 %v3785_v5  ;;  %3383 = vmatpush3.bf16.msra.mxu0 %v4187_v53  ;;  %v2349_v42 = vsel %vm2346_vm10, %v2316_v0, %v3706_v31  ;;  %v3757_v31 = vunpack.i.h.bf16 %v5046_v35  ;;  %v1490_v5 = vld [vmem:[#allocation2 + $0x9a] sm:$0xff] }
 0x1fb   : > { %4044 = vrot.lane.b32.xlu1 %v5038_v11, %s4205_s7  ;;  %v2350_v11 = vsel %vm2346_vm10, %v2317_v43, %v3707_v14  ;;  %v1489_v43 = vld [vmem:[#allocation2 + $0x92] sm:$0xff]  ;;  %v4083_v16 = vpack.i.bf16 %v5129_v3, %v5127_v28  ;;  %v1445_v35 = vld [vmem:[#allocation2 + $0x180] sm:$0xff] }
 0x1fc   : > { %4074 = vrot.lane.b32.xlu0 %v5093_v44, %s4205_s7  ;;  %v2445_v53 = vsel %vm2346_vm10, %v2413_v46, %v3786_v54  ;;  %v2446_v26 = vsel %vm2346_vm10, %v2414_v45, %v3787_v58  ;;  %v2478_v18 = vpack.c.bf16 %v2350_v11, %v2349_v42  ;;  %v3712_v58 = vunpack.i.h.bf16 %v5016_v2 }
 0x1fd   : > { %3385 = vmatmul.mubr.msk.bf16.vlgmr.msra.gmra.mxu0 %vm840_vm4, %v2480_v52  ;;  %v3790_v8 = vpop.permute.xlu1 %3789  ;;  %v2479_v1 = vpack.c.bf16 %v2446_v26, %v2445_v53  ;;  %v3711_v54 = vunpack.i.l.bf16 %v5016_v2  ;;  %v1446_v52 = vld [vmem:[#allocation2 + $0x188] sm:$0xff]  ;;  %v3716_v46 = vunpack.i.l.bf16 %v5023_v51  ;;  %v2489_v2 = vpack.c.bf16 %v1490_v5, %v1489_v43 }
 0x1fe   : > { %v5118_v10 = vpop.permute.xlu0 %3769  ;;  %v3792_v38 = vunpack.i.h.bf16 %v3790_v8  ;;  %v3791_v24 = vunpack.i.l.bf16 %v3790_v8  ;;  %3388 = vmatprep.mubr.msk.bf16.mxu0 %vm840_vm4, %v2483_v56  ;;  %v3717_v56 = vunpack.i.h.bf16 %v5023_v51  ;;  %v5156_v8 = vpack.i.bf16 %v1446_v52, %v1445_v35  ;;  %v1494_v43 = vld [vmem:[#allocation2 + $0xca] sm:$0xff] }
 0x1ff   : > { %4064 = vrot.lane.b32.xlu1 %v5048_v36, %s4206_s13  ;;  %2762 = vmatprep.mubr.bf16.mxu1 %v2479_v1  ;;  %v4188_v1 = vld [vmem:[#allocation2 + $0x30] sm:$0xff]  ;;  %v3761_v35 = vunpack.i.l.bf16 %v5064_v12 }
 0x200   : > { %v2384_v15 = vsel %vm840_vm4, %v1357_v17, %v3792_v38  ;;  %v2383_v14 = vsel %vm840_vm4, %v1356_v39, %v3791_v24  ;;  %4079 = vrot.lane.b32.xlu0 %v4078_v25, %s4206_s13  ;;  %2763 = vmatmul.mubr.bf16.vlgmr.msra.gmra.mxu1 %v2478_v18  ;;  %v2285_v51 = vsel %vm840_vm4, %v4188_v1, %v3711_v54  ;;  %v4189_v39 = vld [vmem:[#allocation2 + $0x38] sm:$0xff] }
 0x201   : > { %v5136_v0 = vpop.permute.xlu1 %3809  ;;  %v2415_v27 = vsel %vm2313_vm9, %v2383_v14, %v3751_v20  ;;  %v2416_v41 = vsel %vm2313_vm9, %v2384_v15, %v3752_v37  ;;  %v2318_v24 = vsel %vm2313_vm9, %v2285_v51, %v3716_v46  ;;  %v1477_v37 = vld [vmem:[#allocation2 + $0x181] sm:$0xff]  ;;  %v1478_v20 = vld [vmem:[#allocation2 + $0x189] sm:$0xff]  ;;  %v5185_v46 = vld [vmem:[#allocation2 + $0x171] sm:$0xff] }
 0x202   : > { %v5138_v36 = vpop.permute.xlu0 %3774  ;;  %v2447_v45 = vsel %vm2346_vm10, %v2415_v27, %v3756_v21  ;;  %v2448_v53 = vsel %vm2346_vm10, %v2416_v41, %v3757_v31  ;;  %v1493_v21 = vld [vmem:[#allocation2 + $0xc2] sm:$0xff]  ;;  %v4113_v5 = vpack.i.bf16 %v1478_v20, %v1477_v37  ;;  %v5174_v27 = vld [vmem:[#allocation2 + $0x170] sm:$0xff]  ;;  %v3811_v63 = vunpack.i.l.bf16 %v5136_v0 }
 0x203   : > { %4069 = vrot.lane.b32.xlu1 %v5066_v60, %s4204_s6  ;;  %v2482_v26 = vpack.c.bf16 %v2448_v53, %v2447_v45  ;;  %v2286_v60 = vsel %vm840_vm4, %v4189_v39, %v3712_v58  ;;  %v2495_v54 = vpack.c.bf16 %v1494_v43, %v1493_v21  ;;  %v2385_v39 = vsel %vm840_vm4, %v4847_v13, %v3761_v35  ;;  %v5210_v13 = vld [vmem:[#allocation2 + $0x16a] sm:$0xff] }
 0x204   : > { %4084 = vrot.lane.b32.xlu0 %v4083_v16, %s4204_s6  ;;  %v2319_v29 = vsel %vm2313_vm9, %v2286_v60, %v3717_v56  ;;  %v5183_v56 = vld [vmem:[#allocation2 + $0x169] sm:$0xff]  ;;  %v3812_v35 = vunpack.i.h.bf16 %v5136_v0 }
 0x205   : > { %3389 = vmatmul.mubr.msk.bf16.gmra.mxu0 %vm840_vm4, %v2486_v55  ;;  %v5154_v42 = vpop.permute.xlu1 %3814  ;;  %2770 = vmatprep.mubr.bf16.mxu1 %v2482_v26  ;;  %v3762_v55 = vunpack.i.h.bf16 %v5064_v12  ;;  %v1230_v26 = vld [vmem:[#allocation2 + $0x48] sm:$0xff]  ;;  %v1231_v12 = vld [vmem:[#allocation2 + $0x50] sm:$0xff] }
 0x206   : > { %v3795_v11 = vpop.permute.xlu0 %3794  ;;  %3392 = vmatprep.mubr.msk.bf16.mxu0 %vm840_vm4, %v2489_v2 }
 0x207   : > { %v3797_v17 = vunpack.i.h.bf16 %v3795_v11  ;;  %v3796_v38 = vunpack.i.l.bf16 %v3795_v11  ;;  %4089 = vrot.lane.b32.xlu1 %v5093_v44, %s4206_s13  ;;  %v5172_v44 = vld [vmem:[#allocation2 + $0x168] sm:$0xff]  ;;  %v2386_v51 = vsel %vm840_vm4, %v4840_v47, %v3762_v55 }
 0x208   : > { %4109 = vrot.lane.b32.xlu0 %v5156_v8, %s4205_s7  ;;  %v4118_v2 = vpack.i.bf16 %v5174_v27, %v5172_v44 }
 0x209   : > { %v2351_v18 = vsel %vm2346_vm10, %v2318_v24, %v3796_v38  ;;  %v2352_v30 = vsel %vm2346_vm10, %v2319_v29, %v3797_v17  ;;  %v5169_v15 = vpop.permute.xlu1 %3819  ;;  %v3767_v24 = vunpack.i.h.bf16 %v5099_v7  ;;  %v3766_v29 = vunpack.i.l.bf16 %v5099_v7 }
 0x20a   : > { %v3800_v14 = vpop.permute.xlu0 %3799  ;;  %v2481_v31 = vpack.c.bf16 %v2352_v30, %v2351_v18  ;;  %v5212_v30 = vld [vmem:[#allocation2 + $0x172] sm:$0xff] }
 0x20b   : > { %4094 = vrot.lane.b32.xlu1 %v4078_v25, %s4204_s6  ;;  %v3802_v41 = vunpack.i.h.bf16 %v3800_v14  ;;  %v3801_v58 = vunpack.i.l.bf16 %v3800_v14  ;;  %v4128_v55 = vpack.i.bf16 %v5212_v30, %v5210_v13 }
 0x20c   : > { %2771 = vmatmul.mubr.bf16.gmra.mxu1 %v2481_v31  ;;  %4114 = vrot.lane.b32.xlu0 %v4113_v5, %s4206_s13 }
 0x20d   : > { %3393 = vmatmul.mubr.msk.bf16.gmra.mxu0 %vm840_vm4, %v2492_v62  ;;  %v3840_v25 = vpop.permute.xlu1 %3839  ;;  %v2288_v34 = vsel %vm840_vm4, %v1231_v12, %v3802_v41  ;;  %v2287_v22 = vsel %vm840_vm4, %v1230_v26, %v3801_v58  ;;  %v4123_v62 = vpack.i.bf16 %v5185_v46, %v5183_v56  ;;  %v1360_v41 = vld [vmem:[#allocation2 + $0x79] sm:$0xff] }
 0x20e   : > { %v3805_v52 = vpop.permute.xlu0 %3804  ;;  %3396 = vmatprep.mubr.msk.bf16.mxu0 %vm840_vm4, %v2495_v54  ;;  %v3842_v11 = vunpack.i.h.bf16 %v3840_v25  ;;  %v3841_v1 = vunpack.i.l.bf16 %v3840_v25  ;;  %v5234_v25 = vld [vmem:[#allocation2 + $0x182] sm:$0xff]  ;;  %v1447_v12 = vld [vmem:[#allocation2 + $0x198] sm:$0xff] }
 0x20f   : > { %v3807_v45 = vunpack.i.h.bf16 %v3805_v52  ;;  %v3806_v53 = vunpack.i.l.bf16 %v3805_v52  ;;  %4099 = vrot.lane.b32.xlu1 %v4083_v16, %s4205_s7  ;;  %v5236_v52 = vld [vmem:[#allocation2 + $0x18a] sm:$0xff] }
 0x210   : > { %4119 = vrot.lane.b32.xlu0 %v4118_v2, %s4205_s7  ;;  %v2417_v18 = vsel %vm2313_vm9, %v2385_v39, %v3841_v1  ;;  %v2418_v47 = vsel %vm2313_vm9, %v2386_v51, %v3842_v11  ;;  %v1448_v11 = vld [vmem:[#allocation2 + $0x1a0] sm:$0xff]  ;;  %v3772_v1 = vunpack.i.h.bf16 %v5118_v10  ;;  %v3777_v51 = vunpack.i.h.bf16 %v5138_v36 }
 0x211   : > { %v2320_v60 = vsel %vm2313_vm9, %v2287_v22, %v3806_v53  ;;  %v2321_v17 = vsel %vm2313_vm9, %v2288_v34, %v3807_v45  ;;  %v3845_v16 = vpop.permute.xlu1 %3844  ;;  %v3816_v45 = vunpack.i.l.bf16 %v5154_v42  ;;  %v3771_v34 = vunpack.i.l.bf16 %v5118_v10 }
 0x212   : > { %v5202_v38 = vpop.permute.xlu0 %3824  ;;  %v3847_v37 = vunpack.i.h.bf16 %v3845_v16  ;;  %v3846_v20 = vunpack.i.l.bf16 %v3845_v16  ;;  %v2353_v7 = vsel %vm2346_vm10, %v2320_v60, %v3766_v29  ;;  %v2354_v21 = vsel %vm2346_vm10, %v2321_v17, %v3767_v24  ;;  %v1232_v16 = vld [vmem:[#allocation2 + $0x60] sm:$0xff] }
 0x213   : > { %4104 = vrot.lane.b32.xlu1 %v5081_v6, %s4205_s7  ;;  %v4133_v22 = vpack.i.bf16 %v5236_v52, %v5234_v25  ;;  %v3776_v39 = vunpack.i.l.bf16 %v5138_v36  ;;  %v2507_v10 = vpack.c.bf16 %v5004_v49, %v5002_v9  ;;  %v4138_v29 = vpack.i.bf16 %v1448_v11, %v1447_v12  ;;  %v1479_v36 = vld [vmem:[#allocation2 + $0x199] sm:$0xff] }
 0x214   : > { %4124 = vrot.lane.b32.xlu0 %v4123_v62, %s4206_s13  ;;  %v2449_v14 = vsel %vm2346_vm10, %v2417_v18, %v3846_v20  ;;  %v2450_v31 = vsel %vm2346_vm10, %v2418_v47, %v3847_v37  ;;  %v1233_v37 = vld [vmem:[#allocation2 + $0x68] sm:$0xff]  ;;  %v2289_v18 = vsel %vm840_vm4, %v1232_v16, %v3771_v34  ;;  %v1511_v12 = vld [vmem:[#allocation2 + $0x19a] sm:$0xff] }
 0x215   : > { %3397 = vmatmul.mubr.msk.bf16.gmra.mxu0 %vm840_vm4, %v2498_v23  ;;  %v3850_v6 = vpop.permute.xlu1 %3849  ;;  %v2485_v5 = vpack.c.bf16 %v2450_v31, %v2449_v14  ;;  %v2484_v23 = vpack.c.bf16 %v2354_v21, %v2353_v7  ;;  %v2290_v20 = vsel %vm840_vm4, %v1233_v37, %v3772_v1  ;;  %v2322_v9 = vsel %vm2313_vm9, %v2289_v18, %v3776_v39 }
 0x216   : > { %v5223_v43 = vpop.permute.xlu0 %3829  ;;  %v3852_v58 = vunpack.i.h.bf16 %v3850_v6  ;;  %v3851_v54 = vunpack.i.l.bf16 %v3850_v6  ;;  %3400 = vmatprep.mubr.msk.bf16.mxu0 %vm840_vm4, %v2501_v4  ;;  %v3817_v4 = vunpack.i.h.bf16 %v5154_v42  ;;  %v2504_v42 = vpack.c.bf16 %v5029_v33, %v5027_v32 }
 0x217   : > { %4144 = vrot.lane.b32.xlu1 %v4118_v2, %s4206_s13  ;;  %2778 = vmatprep.mubr.bf16.mxu1 %v2485_v5  ;;  %v2323_v49 = vsel %vm2313_vm9, %v2290_v20, %v3777_v51  ;;  %v3827_v51 = vunpack.i.h.bf16 %v5202_v38  ;;  %v3831_v20 = vunpack.i.l.bf16 %v5223_v43 }
 0x218   : > { %v2388_v48 = vsel %vm840_vm4, %v1361_v57, %v3852_v58  ;;  %v2387_v40 = vsel %vm840_vm4, %v1360_v41, %v3851_v54  ;;  %4129 = vrot.lane.b32.xlu0 %v4128_v55, %s4204_s6  ;;  %2779 = vmatmul.mubr.bf16.gmra.mxu1 %v2484_v23  ;;  %v2510_v58 = vpack.c.bf16 %v5129_v3, %v5127_v28 }
 0x219   : > { %v5243_v0 = vpop.permute.xlu1 %3869  ;;  %v2419_v2 = vsel %vm2313_vm9, %v2387_v40, %v3811_v63  ;;  %v2420_v26 = vsel %vm2313_vm9, %v2388_v48, %v3812_v35  ;;  %v2513_v54 = vpack.c.bf16 %v5070_v50, %v5068_v19  ;;  %v2516_v28 = vpack.c.bf16 %v5212_v30, %v5210_v13  ;;  %v1234_v50 = vld [vmem:[#allocation2 + $0x78] sm:$0xff]  ;;  %v1512_v13 = vld [vmem:[#allocation2 + $0x1a2] sm:$0xff] }
 0x21a   : > { %v5245_v53 = vpop.permute.xlu0 %3834  ;;  %v2451_v60 = vsel %vm2346_vm10, %v2419_v2, %v3816_v45  ;;  %v2452_v17 = vsel %vm2346_vm10, %v2420_v26, %v3817_v4  ;;  %v2519_v19 = vpack.c.bf16 %v5236_v52, %v5234_v25  ;;  %v3822_v45 = vunpack.i.h.bf16 %v5169_v15  ;;  %v1235_v26 = vld [vmem:[#allocation2 + $0x80] sm:$0xff] }
 0x21b   : > { %4149 = vrot.lane.b32.xlu1 %v4123_v62, %s4204_s6  ;;  %v2488_v24 = vpack.c.bf16 %v2452_v17, %v2451_v60  ;;  %v1480_v62 = vld [vmem:[#allocation2 + $0x1a1] sm:$0xff]  ;;  %v3821_v2 = vunpack.i.l.bf16 %v5169_v15  ;;  %v3826_v15 = vunpack.i.l.bf16 %v5202_v38  ;;  %v2522_v17 = vpack.c.bf16 %v1512_v13, %v1511_v12 }
 0x21c   : > { %4134 = vrot.lane.b32.xlu0 %v4133_v22, %s4204_s6  ;;  %v4158_v31 = vpack.i.bf16 %v1480_v62, %v1479_v36  ;;  %v1362_v22 = vld [vmem:[#allocation2 + $0x91] sm:$0xff]  ;;  %v3832_v38 = vunpack.i.h.bf16 %v5223_v43  ;;  %v3872_v43 = vunpack.i.h.bf16 %v5243_v0 }
 0x21d   : > { %3401 = vmatmul.mubr.msk.bf16.gmra.mxu0 %vm840_vm4, %v2504_v42  ;;  %v5264_v32 = vpop.permute.xlu1 %3874  ;;  %2786 = vmatprep.mubr.bf16.mxu1 %v2488_v24  ;;  %v1363_v42 = vld [vmem:[#allocation2 + $0x99] sm:$0xff] }
 0x21e   : > { %v3855_v33 = vpop.permute.xlu0 %3854  ;;  %3404 = vmatprep.mubr.msk.bf16.mxu0 %vm840_vm4, %v2507_v10  ;;  %v2390_v16 = vsel %vm840_vm4, %v1363_v42, %v3822_v45  ;;  %v2389_v10 = vsel %vm840_vm4, %v1362_v22, %v3821_v2 }
 0x21f   : > { %v3857_v47 = vunpack.i.h.bf16 %v3855_v33  ;;  %v3856_v14 = vunpack.i.l.bf16 %v3855_v33  ;;  %4154 = vrot.lane.b32.xlu1 %v4128_v55, %s4205_s7 }
 0x220   : > { %4139 = vrot.lane.b32.xlu0 %v4138_v29, %s4205_s7 }
 0x221   : > { %v2355_v7 = vsel %vm2346_vm10, %v2322_v9, %v3856_v14  ;;  %v2356_v21 = vsel %vm2346_vm10, %v2323_v49, %v3857_v47  ;;  %v5275_v6 = vpop.permute.xlu1 %3879  ;;  %v3837_v14 = vunpack.i.h.bf16 %v5245_v53 }
 0x222   : > { %v3860_v5 = vpop.permute.xlu0 %3859  ;;  %v2487_v41 = vpack.c.bf16 %v2356_v21, %v2355_v7  ;;  %v1236_v7 = vld [vmem:[#allocation2 + $0x90] sm:$0xff]  ;;  %v3836_v21 = vunpack.i.l.bf16 %v5245_v53  ;;  %v3882_v42 = vunpack.i.h.bf16 %v5275_v6 }
 0x223   : > { %4164 = vrot.lane.b32.xlu1 %v5156_v8, %s4206_s13  ;;  %v3862_v8 = vunpack.i.h.bf16 %v3860_v5  ;;  %v3861_v23 = vunpack.i.l.bf16 %v3860_v5 }
 0x224   : > { %2787 = vmatmul.mubr.bf16.gmra.mxu1 %v2487_v41  ;;  %4159 = vrot.lane.b32.xlu0 %v4158_v31, %s4206_s13 }
 0x225   : > { %3405 = vmatmul.mubr.msk.bf16.gmra.mxu0 %vm840_vm4, %v2510_v58  ;;  %v5285_v55 = vpop.permute.xlu1 %3889  ;;  %v2292_v30 = vsel %vm840_vm4, %v1235_v26, %v3862_v8  ;;  %v2291_v11 = vsel %vm840_vm4, %v1234_v50, %v3861_v23 }
 0x226   : > { %v3865_v35 = vpop.permute.xlu0 %3864  ;;  %3408 = vmatprep.mubr.msk.bf16.mxu0 %vm840_vm4, %v2513_v54  ;;  %v1237_v54 = vld [vmem:[#allocation2 + $0x98] sm:$0xff] }
 0x227   : > { %v3867_v3 = vunpack.i.h.bf16 %v3865_v35  ;;  %v3866_v48 = vunpack.i.l.bf16 %v3865_v35  ;;  %v3871_v35 = vunpack.i.l.bf16 %v5243_v0  ;;  %v3876_v0 = vunpack.i.l.bf16 %v5264_v32 }
 0x229   : > { %v5288_v63 = vpop.permute.xlu1 %3894  ;;  %v2324_v1 = vsel %vm2313_vm9, %v2291_v11, %v3866_v48  ;;  %v2325_v34 = vsel %vm2313_vm9, %v2292_v30, %v3867_v3  ;;  %v1365_v3 = vld [vmem:[#allocation2 + $0xb1] sm:$0xff]  ;;  %v2294_v48 = vsel %vm840_vm4, %v1237_v54, %v3832_v38 }
 0x22a   : > { %v5290_v57 = vpop.permute.xlu0 %3884  ;;  %v2357_v36 = vsel %vm2346_vm10, %v2324_v1, %v3826_v15  ;;  %v2358_v62 = vsel %vm2346_vm10, %v2325_v34, %v3827_v51  ;;  %v2327_v13 = vsel %vm2313_vm9, %v2294_v48, %v3837_v14  ;;  %v3881_v51 = vunpack.i.l.bf16 %v5275_v6  ;;  %v1239_v6 = vld [vmem:[#allocation2 + $0xb0] sm:$0xff] }
 0x22b   : > { %v2490_v58 = vpack.c.bf16 %v2358_v62, %v2357_v36  ;;  %v1238_v62 = vld [vmem:[#allocation2 + $0xa8] sm:$0xff] }
 0x22d   : > { %3409 = vmatmul.mubr.msk.bf16.gmra.mxu0 %vm840_vm4, %v2516_v28  ;;  %v3900_v40 = vpop.permute.xlu1 %3899  ;;  %v1364_v28 = vld [vmem:[#allocation2 + $0xa9] sm:$0xff] }
 0x22e   : > { %v5297_v4 = vpop.permute.xlu0 %3914  ;;  %3412 = vmatprep.mubr.msk.bf16.mxu0 %vm840_vm4, %v2519_v19  ;;  %v3902_v25 = vunpack.i.h.bf16 %v3900_v40  ;;  %v3901_v52 = vunpack.i.l.bf16 %v3900_v40  ;;  %v2293_v19 = vsel %vm840_vm4, %v1236_v7, %v3831_v20  ;;  %v3877_v40 = vunpack.i.h.bf16 %v5264_v32 }
 0x22f   : > { %v3917_v8 = vunpack.i.h.bf16 %v5297_v4  ;;  %v3916_v23 = vunpack.i.l.bf16 %v5297_v4  ;;  %v2326_v12 = vsel %vm2313_vm9, %v2293_v19, %v3836_v21 }
 0x230   : > { %v2421_v37 = vsel %vm2313_vm9, %v2389_v10, %v3901_v52  ;;  %v2422_v33 = vsel %vm2313_vm9, %v2390_v16, %v3902_v25  ;;  %v1366_v10 = vld [vmem:[#allocation2 + $0xc1] sm:$0xff] }
 0x231   : > { %v3905_v39 = vpop.permute.xlu1 %3904  ;;  %v2359_v25 = vsel %vm2346_vm10, %v2326_v12, %v3916_v23  ;;  %v2360_v52 = vsel %vm2346_vm10, %v2327_v13, %v3917_v8  ;;  %v2393_v36 = vsel %vm840_vm4, %v1366_v10, %v3881_v51  ;;  %v3886_v8 = vunpack.i.l.bf16 %v5290_v57 }
 0x232   : > { %v5308_v60 = vpop.permute.xlu0 %3919  ;;  %v3907_v24 = vunpack.i.h.bf16 %v3905_v39  ;;  %v3906_v29 = vunpack.i.l.bf16 %v3905_v39  ;;  %v2493_v22 = vpack.c.bf16 %v2360_v52, %v2359_v25  ;;  %v3891_v25 = vunpack.i.l.bf16 %v5285_v55 }
 0x233   : > { %v3921_v16 = vunpack.i.l.bf16 %v5308_v60 }
 0x234   : > { %v2453_v18 = vsel %vm2346_vm10, %v2421_v37, %v3906_v29  ;;  %v2454_v47 = vsel %vm2346_vm10, %v2422_v33, %v3907_v24  ;;  %v1367_v24 = vld [vmem:[#allocation2 + $0xc9] sm:$0xff] }
 0x235   : > { %v3910_v9 = vpop.permute.xlu1 %3909  ;;  %v2491_v31 = vpack.c.bf16 %v2454_v47, %v2453_v18  ;;  %3413 = vmatmul.mubr.msk.bf16.gmra.mxu0 %vm840_vm4, %v2522_v17  ;;  %v3922_v17 = vunpack.i.h.bf16 %v5308_v60  ;;  %v2394_v33 = vsel %vm840_vm4, %v1367_v24, %v3882_v42  ;;  %v2295_v47 = vsel %vm840_vm4, %v1238_v62, %v3921_v16  ;;  %v1240_v24 = vld [vmem:[#allocation2 + $0xc0] sm:$0xff] }
 0x236   : > { %v5321_v49 = vpop.permute.xlu0 %3924  ;;  %v3912_v5 = vunpack.i.h.bf16 %v3910_v9  ;;  %v3911_v41 = vunpack.i.l.bf16 %v3910_v9  ;;  %v3896_v42 = vunpack.i.l.bf16 %v5288_v63 }
 0x237   : > { %2794 = vmatprep.mubr.bf16.mxu1 %v2491_v31  ;;  %v3927_v29 = vunpack.i.h.bf16 %v5321_v49  ;;  %v3926_v37 = vunpack.i.l.bf16 %v5321_v49  ;;  %v2296_v18 = vsel %vm840_vm4, %v1239_v6, %v3922_v17  ;;  %v1369_v49 = vld [vmem:[#allocation2 + $0xe1] sm:$0xff] }
 0x238   : > { %v2392_v53 = vsel %vm840_vm4, %v1365_v3, %v3912_v5  ;;  %v2391_v50 = vsel %vm840_vm4, %v1364_v28, %v3911_v41  ;;  %2795 = vmatmul.mubr.bf16.gmra.mxu1 %v2490_v58  ;;  %v1368_v5 = vld [vmem:[#allocation2 + $0xd9] sm:$0xff] }
 0x239   : > { %v5335_v45 = vpop.permute.xlu1 %3944  ;;  %v2423_v4 = vsel %vm2313_vm9, %v2391_v50, %v3871_v35  ;;  %v2424_v26 = vsel %vm2313_vm9, %v2392_v53, %v3872_v43  ;;  %v2328_v41 = vsel %vm2313_vm9, %v2295_v47, %v3926_v37  ;;  %v2329_v58 = vsel %vm2313_vm9, %v2296_v18, %v3927_v29  ;;  %v1241_v29 = vld [vmem:[#allocation2 + $0xc8] sm:$0xff] }
 0x23a   : > { %v3930_v2 = vpop.permute.xlu0 %3929  ;;  %v2455_v30 = vsel %vm2346_vm10, %v2423_v4, %v3876_v0  ;;  %v2456_v11 = vsel %vm2346_vm10, %v2424_v26, %v3877_v40  ;;  %v3887_v35 = vunpack.i.h.bf16 %v5290_v57  ;;  %v2361_v4 = vsel %vm2346_vm10, %v2328_v41, %v3886_v8 }
 0x23b   : > { %v2494_v32 = vpack.c.bf16 %v2456_v11, %v2455_v30  ;;  %v3932_v9 = vunpack.i.h.bf16 %v3930_v2  ;;  %v3931_v31 = vunpack.i.l.bf16 %v3930_v2  ;;  %v3892_v11 = vunpack.i.h.bf16 %v5285_v55 }
 0x23c   : > { %v2362_v26 = vsel %vm2346_vm10, %v2329_v58, %v3887_v35  ;;  %v2297_v55 = vsel %vm840_vm4, %v1240_v24, %v3891_v25 }
 0x23d   : > { %v5345_v1 = vpop.permute.xlu1 %3949  ;;  %2802 = vmatprep.mubr.bf16.mxu1 %v2494_v32  ;;  %v2496_v51 = vpack.c.bf16 %v2362_v26, %v2361_v4  ;;  %v2298_v37 = vsel %vm840_vm4, %v1241_v29, %v3892_v11  ;;  %v2330_v62 = vsel %vm2313_vm9, %v2297_v55, %v3896_v42 }
 0x23e   : > { %v3935_v34 = vpop.permute.xlu0 %3934 }
 0x23f   : > { %v3937_v19 = vunpack.i.h.bf16 %v3935_v34  ;;  %v3936_v53 = vunpack.i.l.bf16 %v3935_v34 }
 0x240   : > { %2803 = vmatmul.mubr.bf16.gmra.mxu1 %v2493_v22  ;;  %v3897_v22 = vunpack.i.h.bf16 %v5288_v63 }
 0x241   : > { %v5349_v15 = vpop.permute.xlu1 %3954 }
 0x242   : > { %v5351_v39 = vpop.permute.xlu0 %3939  ;;  %v2331_v63 = vsel %vm2313_vm9, %v2298_v37, %v3897_v22 }
 0x243   : > { %v3942_v47 = vunpack.i.h.bf16 %v5351_v39 }
 0x245   : > { %v3960_v38 = vpop.permute.xlu1 %3959 }
 0x246   : > { %v3970_v20 = vpop.permute.xlu0 %3969  ;;  %v3962_v7 = vunpack.i.h.bf16 %v3960_v38  ;;  %v3961_v21 = vunpack.i.l.bf16 %v3960_v38 }
 0x247   : > { %v3972_v14 = vunpack.i.h.bf16 %v3970_v20  ;;  %v3971_v60 = vunpack.i.l.bf16 %v3970_v20 }
 0x248   : > { %v2425_v0 = vsel %vm2313_vm9, %v2393_v36, %v3961_v21  ;;  %v2426_v2 = vsel %vm2313_vm9, %v2394_v33, %v3962_v7  ;;  %v1243_v7 = vld [vmem:[#allocation2 + $0xe0] sm:$0xff] }
 0x249   : > { %v2396_v54 = vsel %vm840_vm4, %v1369_v49, %v3972_v14  ;;  %v2395_v43 = vsel %vm840_vm4, %v1368_v5, %v3971_v60  ;;  %v3965_v23 = vpop.permute.xlu1 %3964 }
 0x24a   : > { %v5367_v28 = vpop.permute.xlu0 %3989  ;;  %v2427_v3 = vsel %vm2313_vm9, %v2395_v43, %v3931_v31  ;;  %v2428_v48 = vsel %vm2313_vm9, %v2396_v54, %v3932_v9  ;;  %v3967_v50 = vunpack.i.h.bf16 %v3965_v23  ;;  %v3966_v40 = vunpack.i.l.bf16 %v3965_v23  ;;  %v1242_v31 = vld [vmem:[#allocation2 + $0xd8] sm:$0xff] }
 0x24b   : > { %v2459_v13 = vsel %vm2346_vm10, %v2427_v3, %v3936_v53  ;;  %v2460_v30 = vsel %vm2346_vm10, %v2428_v48, %v3937_v19  ;;  %v3941_v9 = vunpack.i.l.bf16 %v5351_v39  ;;  %v3947_v23 = vunpack.i.h.bf16 %v5335_v45  ;;  %v1370_v3 = vld [vmem:[#allocation2 + $0xf1] sm:$0xff]  ;;  %v1371_v48 = vld [vmem:[#allocation2 + $0xf9] sm:$0xff] }
 0x24c   : > { %v2457_v57 = vsel %vm2346_vm10, %v2425_v0, %v3966_v40  ;;  %v2458_v12 = vsel %vm2346_vm10, %v2426_v2, %v3967_v50  ;;  %v2500_v10 = vpack.c.bf16 %v2460_v30, %v2459_v13  ;;  %v3946_v39 = vunpack.i.l.bf16 %v5335_v45 }
 0x24d   : > { %v3975_v52 = vpop.permute.xlu1 %3974  ;;  %v2497_v34 = vpack.c.bf16 %v2458_v12, %v2457_v57  ;;  %v2398_v50 = vsel %vm840_vm4, %v1371_v48, %v3942_v47  ;;  %v2397_v40 = vsel %vm840_vm4, %v1370_v3, %v3941_v9  ;;  %v3992_v42 = vunpack.i.h.bf16 %v5367_v28 }
 0x24e   : > { %v5381_v32 = vpop.permute.xlu0 %3994  ;;  %v3977_v17 = vunpack.i.h.bf16 %v3975_v52  ;;  %v3976_v16 = vunpack.i.l.bf16 %v3975_v52 }
 0x24f   : > { %2810 = vmatprep.mubr.bf16.mxu1 %v2497_v34  ;;  %v3997_v29 = vunpack.i.h.bf16 %v5381_v32  ;;  %v3996_v37 = vunpack.i.l.bf16 %v5381_v32 }
 0x250   : > { %2811 = vmatmul.mubr.bf16.gmra.mxu1 %v2496_v51  ;;  %v2363_v20 = vsel %vm2346_vm10, %v2330_v62, %v3976_v16  ;;  %v2364_v18 = vsel %vm2346_vm10, %v2331_v63, %v3977_v17  ;;  %v3991_v51 = vunpack.i.l.bf16 %v5367_v28  ;;  %v1372_v17 = vld [vmem:[#allocation2 + $0x109] sm:$0xff]  ;;  %v1373_v16 = vld [vmem:[#allocation2 + $0x111] sm:$0xff]  ;;  %v3952_v63 = vunpack.i.h.bf16 %v5345_v1 }
 0x251   : > { %v3980_v33 = vpop.permute.xlu1 %3979  ;;  %2818 = vmatprep.mubr.bf16.mxu1 %v2500_v10  ;;  %v2499_v49 = vpack.c.bf16 %v2364_v18, %v2363_v20  ;;  %v3956_v20 = vunpack.i.l.bf16 %v5349_v15 }
 0x252   : > { %v5387_v36 = vpop.permute.xlu0 %3999  ;;  %v3982_v6 = vunpack.i.h.bf16 %v3980_v33  ;;  %v3981_v38 = vunpack.i.l.bf16 %v3980_v33 }
 0x253   : > { %v4002_v3 = vunpack.i.h.bf16 %v5387_v36  ;;  %v4001_v48 = vunpack.i.l.bf16 %v5387_v36 }
 0x254   : > { %v2300_v41 = vsel %vm840_vm4, %v1243_v7, %v3982_v6  ;;  %v2299_v58 = vsel %vm840_vm4, %v1242_v31, %v3981_v38  ;;  %v3951_v6 = vunpack.i.l.bf16 %v5345_v1  ;;  %v3957_v38 = vunpack.i.h.bf16 %v5349_v15 }
 0x255   : > { %v3985_v14 = vpop.permute.xlu1 %3984 }
 0x256   : > { %v4020_v60 = vpop.permute.xlu0 %4019  ;;  %v3987_v21 = vunpack.i.h.bf16 %v3985_v14  ;;  %v3986_v5 = vunpack.i.l.bf16 %v3985_v14  ;;  %v1244_v14 = vld [vmem:[#allocation2 + $0xf0] sm:$0xff] }
 0x257   : > { %v4022_v54 = vunpack.i.h.bf16 %v4020_v60  ;;  %v4021_v43 = vunpack.i.l.bf16 %v4020_v60  ;;  %v1245_v60 = vld [vmem:[#allocation2 + $0xf8] sm:$0xff]  ;;  %v2301_v7 = vsel %vm840_vm4, %v1244_v14, %v3951_v6 }
 0x258   : > { %v2332_v35 = vsel %vm2313_vm9, %v2299_v58, %v3986_v5  ;;  %v2333_v8 = vsel %vm2313_vm9, %v2300_v41, %v3987_v21  ;;  %2819 = vmatmul.mubr.bf16.gmra.mxu1 %v2499_v49  ;;  %v2302_v31 = vsel %vm840_vm4, %v1245_v60, %v3952_v63  ;;  %v2334_v1 = vsel %vm2313_vm9, %v2301_v7, %v3956_v20 }
 0x259   : > { %v5401_v19 = vpop.permute.xlu1 %4004  ;;  %v2429_v4 = vsel %vm2313_vm9, %v2397_v40, %v4021_v43  ;;  %v2430_v26 = vsel %vm2313_vm9, %v2398_v50, %v4022_v54  ;;  %v2365_v57 = vsel %vm2346_vm10, %v2332_v35, %v3946_v39  ;;  %v2366_v12 = vsel %vm2346_vm10, %v2333_v8, %v3947_v23 }
 0x25a   : > { %v4025_v53 = vpop.permute.xlu0 %4024  ;;  %v2502_v22 = vpack.c.bf16 %v2366_v12, %v2365_v57  ;;  %v2335_v15 = vsel %vm2313_vm9, %v2302_v31, %v3957_v38 }
 0x25b   : > { %v4027_v0 = vunpack.i.h.bf16 %v4025_v53  ;;  %v4026_v2 = vunpack.i.l.bf16 %v4025_v53 }
 0x25d   : > { %v2461_v45 = vsel %vm2346_vm10, %v2429_v4, %v4026_v2  ;;  %v2462_v13 = vsel %vm2346_vm10, %v2430_v26, %v4027_v0  ;;  %v5411_v30 = vpop.permute.xlu1 %4009  ;;  %v1246_v0 = vld [vmem:[#allocation2 + $0x108] sm:$0xff]  ;;  %v1247_v2 = vld [vmem:[#allocation2 + $0x110] sm:$0xff] }
 0x25e   : > { %v4030_v11 = vpop.permute.xlu0 %4029  ;;  %v2503_v25 = vpack.c.bf16 %v2462_v13, %v2461_v45  ;;  %v1374_v45 = vld [vmem:[#allocation2 + $0x121] sm:$0xff]  ;;  %v1375_v13 = vld [vmem:[#allocation2 + $0x129] sm:$0xff] }
 0x25f   : > { %v4032_v52 = vunpack.i.h.bf16 %v4030_v11  ;;  %v4031_v34 = vunpack.i.l.bf16 %v4030_v11  ;;  %v2402_v36 = vsel %vm840_vm4, %v1375_v13, %v4002_v3 }
 0x260   : > { %2826 = vmatprep.mubr.bf16.mxu1 %v2503_v25 }
 0x261   : > { %v2400_v10 = vsel %vm840_vm4, %v1373_v16, %v4032_v52  ;;  %v2399_v24 = vsel %vm840_vm4, %v1372_v17, %v4031_v34  ;;  %2827 = vmatmul.mubr.bf16.gmra.mxu1 %v2502_v22  ;;  %v5419_v55 = vpop.permute.xlu1 %4014  ;;  %v2401_v34 = vsel %vm840_vm4, %v1374_v45, %v4001_v48  ;;  %v4007_v22 = vunpack.i.h.bf16 %v5401_v19 }
 0x262   : > { %v5421_v33 = vpop.permute.xlu0 %4049  ;;  %v2431_v62 = vsel %vm2313_vm9, %v2399_v24, %v3991_v51  ;;  %v2432_v28 = vsel %vm2313_vm9, %v2400_v10, %v3992_v42  ;;  %v4006_v42 = vunpack.i.l.bf16 %v5401_v19  ;;  %v4012_v17 = vunpack.i.h.bf16 %v5411_v30 }
 0x263   : > { %v2463_v18 = vsel %vm2346_vm10, %v2431_v62, %v3996_v37  ;;  %v2464_v32 = vsel %vm2346_vm10, %v2432_v28, %v3997_v29  ;;  %v4011_v16 = vunpack.i.l.bf16 %v5411_v30  ;;  %v4017_v38 = vunpack.i.h.bf16 %v5419_v55 }
 0x264   : > { %v2506_v47 = vpack.c.bf16 %v2464_v32, %v2463_v18  ;;  %v1248_v18 = vld [vmem:[#allocation2 + $0x120] sm:$0xff]  ;;  %v1249_v32 = vld [vmem:[#allocation2 + $0x128] sm:$0xff] }
 0x265   : > { %v4035_v9 = vpop.permute.xlu1 %4034  ;;  %v2306_v31 = vsel %vm840_vm4, %v1249_v32, %v4012_v17  ;;  %v2305_v7 = vsel %vm840_vm4, %v1248_v18, %v4011_v16 }
 0x266   : > { %v4037_v21 = vunpack.i.h.bf16 %v4035_v9  ;;  %v4036_v5 = vunpack.i.l.bf16 %v4035_v9  ;;  %v5433_v49 = vpop.permute.xlu0 %4054  ;;  %2834 = vmatprep.mubr.bf16.mxu1 %v2506_v47  ;;  %v4016_v47 = vunpack.i.l.bf16 %v5419_v55 }
 0x268   : > { %v2367_v41 = vsel %vm2346_vm10, %v2334_v1, %v4036_v5  ;;  %v2368_v58 = vsel %vm2346_vm10, %v2335_v15, %v4037_v21  ;;  %v4052_v21 = vunpack.i.h.bf16 %v5421_v33  ;;  %v4051_v5 = vunpack.i.l.bf16 %v5421_v33 }
 0x269   : > { %v4040_v54 = vpop.permute.xlu1 %4039  ;;  %v2505_v43 = vpack.c.bf16 %v2368_v58, %v2367_v41  ;;  %v4057_v1 = vunpack.i.h.bf16 %v5433_v49  ;;  %v4056_v15 = vunpack.i.l.bf16 %v5433_v49  ;;  %v2339_v49 = vsel %vm2313_vm9, %v2306_v31, %v4017_v38 }
 0x26a   : > { %v5439_v35 = vpop.permute.xlu0 %4059  ;;  %v4042_v8 = vunpack.i.h.bf16 %v4040_v54  ;;  %v4041_v23 = vunpack.i.l.bf16 %v4040_v54 }
 0x26b   : > { %2835 = vmatmul.mubr.bf16.gmra.mxu1 %v2505_v43  ;;  %v4062_v13 = vunpack.i.h.bf16 %v5439_v35 }
 0x26c   : > { %v2304_v4 = vsel %vm840_vm4, %v1247_v2, %v4042_v8  ;;  %v2303_v26 = vsel %vm840_vm4, %v1246_v0, %v4041_v23 }
 0x26d   : > { %v4045_v39 = vpop.permute.xlu1 %4044 }
 0x26e   : > { %v4047_v53 = vunpack.i.h.bf16 %v4045_v39  ;;  %v4046_v50 = vunpack.i.l.bf16 %v4045_v39  ;;  %v4075_v40 = vpop.permute.xlu0 %4074  ;;  %v2338_v39 = vsel %vm2313_vm9, %v2305_v7, %v4016_v47 }
 0x26f   : > { %v4077_v57 = vunpack.i.h.bf16 %v4075_v40  ;;  %v4076_v12 = vunpack.i.l.bf16 %v4075_v40 }
 0x270   : > { %v2336_v11 = vsel %vm2313_vm9, %v2303_v26, %v4046_v50  ;;  %v2337_v25 = vsel %vm2313_vm9, %v2304_v4, %v4047_v53 }
 0x271   : > { %v5447_v52 = vpop.permute.xlu1 %4064  ;;  %v2433_v29 = vsel %vm2313_vm9, %v2401_v34, %v4076_v12  ;;  %v2434_v37 = vsel %vm2313_vm9, %v2402_v36, %v4077_v57  ;;  %v2369_v62 = vsel %vm2346_vm10, %v2336_v11, %v4006_v42  ;;  %v2370_v28 = vsel %vm2346_vm10, %v2337_v25, %v4007_v22  ;;  %v1250_v25 = vld [vmem:[#allocation2 + $0x138] sm:$0xff]  ;;  %v1251_v36 = vld [vmem:[#allocation2 + $0x140] sm:$0xff] }
 0x272   : > { %v4080_v51 = vpop.permute.xlu0 %4079  ;;  %v2508_v9 = vpack.c.bf16 %v2370_v28, %v2369_v62  ;;  %v4061_v11 = vunpack.i.l.bf16 %v5439_v35  ;;  %v4066_v62 = vunpack.i.l.bf16 %v5447_v52 }
 0x273   : > { %v4082_v10 = vunpack.i.h.bf16 %v4080_v51  ;;  %v4081_v24 = vunpack.i.l.bf16 %v4080_v51 }
 0x275   : > { %v5459_v63 = vpop.permute.xlu1 %4069  ;;  %v2465_v6 = vsel %vm2346_vm10, %v2433_v29, %v4081_v24  ;;  %v2466_v19 = vsel %vm2346_vm10, %v2434_v37, %v4082_v10  ;;  %v1378_v24 = vld [vmem:[#allocation2 + $0x151] sm:$0xff]  ;;  %v1379_v29 = vld [vmem:[#allocation2 + $0x159] sm:$0xff]  ;;  %v4067_v37 = vunpack.i.h.bf16 %v5447_v52 }
 0x276   : > { %v4085_v20 = vpop.permute.xlu0 %4084  ;;  %v2509_v30 = vpack.c.bf16 %v2466_v19, %v2465_v6  ;;  %v2406_v28 = vsel %vm840_vm4, %v1379_v29, %v4062_v13  ;;  %v2405_v6 = vsel %vm840_vm4, %v1378_v24, %v4061_v11  ;;  %v4190_v24 = vld [vmem:[#allocation2 + $0x189] sm:$0xff] }
 0x277   : > { %v4087_v14 = vunpack.i.h.bf16 %v4085_v20  ;;  %v4086_v60 = vunpack.i.l.bf16 %v4085_v20 }
 0x278   : > { %2842 = vmatprep.mubr.bf16.mxu1 %v2509_v30 }
 0x279   : > { %v2404_v41 = vsel %vm840_vm4, %v5109_v59, %v4087_v14  ;;  %v2403_v55 = vsel %vm840_vm4, %v5107_v61, %v4086_v60  ;;  %2843 = vmatmul.mubr.bf16.gmra.mxu1 %v2508_v9  ;;  %v4090_v58 = vpop.permute.xlu1 %4089  ;;  %v4072_v60 = vunpack.i.h.bf16 %v5459_v63  ;;  %v4071_v9 = vunpack.i.l.bf16 %v5459_v63 }
 0x27a   : > { %v4092_v54 = vunpack.i.h.bf16 %v4090_v58  ;;  %v4091_v43 = vunpack.i.l.bf16 %v4090_v58  ;;  %v5475_v8 = vpop.permute.xlu0 %4109  ;;  %v2435_v23 = vsel %vm2313_vm9, %v2403_v55, %v4051_v5  ;;  %v2436_v33 = vsel %vm2313_vm9, %v2404_v41, %v4052_v21 }
 0x27b   : > { %v2467_v3 = vsel %vm2346_vm10, %v2435_v23, %v4056_v15  ;;  %v2468_v59 = vsel %vm2346_vm10, %v2436_v33, %v4057_v1  ;;  %v4112_v55 = vunpack.i.h.bf16 %v5475_v8  ;;  %v4111_v58 = vunpack.i.l.bf16 %v5475_v8  ;;  %v1252_v23 = vld [vmem:[#allocation2 + $0x150] sm:$0xff]  ;;  %v1253_v33 = vld [vmem:[#allocation2 + $0x158] sm:$0xff] }
 0x27c   : > { %v2512_v48 = vpack.c.bf16 %v2468_v59, %v2467_v3  ;;  %v2371_v61 = vsel %vm2346_vm10, %v2338_v39, %v4091_v43  ;;  %v2372_v53 = vsel %vm2346_vm10, %v2339_v49, %v4092_v54  ;;  %v2309_v8 = vsel %vm840_vm4, %v1252_v23, %v4071_v9 }
 0x27d   : > { %v4095_v50 = vpop.permute.xlu1 %4094  ;;  %v2511_v40 = vpack.c.bf16 %v2372_v53, %v2371_v61 }
 0x27e   : > { %v5485_v0 = vpop.permute.xlu0 %4114  ;;  %2850 = vmatprep.mubr.bf16.mxu1 %v2512_v48  ;;  %v4097_v2 = vunpack.i.h.bf16 %v4095_v50  ;;  %v4096_v4 = vunpack.i.l.bf16 %v4095_v50  ;;  %v2310_v48 = vsel %vm840_vm4, %v1253_v33, %v4072_v60 }
 0x27f   : > { %v4117_v39 = vunpack.i.h.bf16 %v5485_v0  ;;  %v4116_v63 = vunpack.i.l.bf16 %v5485_v0 }
 0x280   : > { %v2308_v34 = vsel %vm840_vm4, %v1251_v36, %v4097_v2  ;;  %v2307_v22 = vsel %vm840_vm4, %v1250_v25, %v4096_v4 }
 0x281   : > { %2851 = vmatmul.mubr.bf16.gmra.mxu1 %v2511_v40  ;;  %v4100_v26 = vpop.permute.xlu1 %4099 }
 0x282   : > { %v4102_v57 = vunpack.i.h.bf16 %v4100_v26  ;;  %v4101_v12 = vunpack.i.l.bf16 %v4100_v26  ;;  %v4120_v45 = vpop.permute.xlu0 %4119 }
 0x283   : > { %v4122_v42 = vunpack.i.h.bf16 %v4120_v45  ;;  %v4121_v51 = vunpack.i.l.bf16 %v4120_v45 }
 0x284   : > { %v2340_v17 = vsel %vm2313_vm9, %v2307_v22, %v4101_v12  ;;  %v2341_v16 = vsel %vm2313_vm9, %v2308_v34, %v4102_v57 }
 0x285   : > { %v4105_v10 = vpop.permute.xlu1 %4104  ;;  %v2437_v20 = vsel %vm2313_vm9, %v2405_v6, %v4121_v51  ;;  %v2438_v30 = vsel %vm2313_vm9, %v2406_v28, %v4122_v42  ;;  %v2373_v18 = vsel %vm2346_vm10, %v2340_v17, %v4066_v62  ;;  %v2374_v32 = vsel %vm2346_vm10, %v2341_v16, %v4067_v37  ;;  %v4191_v37 = vld [vmem:[#allocation2 + $0x181] sm:$0xff] }
 0x286   : > { %v4125_v35 = vpop.permute.xlu0 %4124  ;;  %v4107_v31 = vunpack.i.h.bf16 %v4105_v10  ;;  %v4106_v5 = vunpack.i.l.bf16 %v4105_v10  ;;  %v2514_v41 = vpack.c.bf16 %v2374_v32, %v2373_v18 }
 0x287   : > { %v4127_v19 = vunpack.i.h.bf16 %v4125_v35  ;;  %v4126_v38 = vunpack.i.l.bf16 %v4125_v35 }
 0x288   : > { %v2342_v40 = vsel %vm2313_vm9, %v2309_v8, %v4106_v5  ;;  %v2343_v0 = vsel %vm2313_vm9, %v2310_v48, %v4107_v31 }
 0x289   : > { %v4145_v47 = vpop.permute.xlu1 %4144  ;;  %v2469_v14 = vsel %vm2346_vm10, %v2437_v20, %v4126_v38  ;;  %v2470_v52 = vsel %vm2346_vm10, %v2438_v30, %v4127_v19 }
 0x28a   : > { %v4130_v7 = vpop.permute.xlu0 %4129  ;;  %v2515_v21 = vpack.c.bf16 %v2470_v52, %v2469_v14  ;;  %v4147_v54 = vunpack.i.h.bf16 %v4145_v47  ;;  %v4146_v43 = vunpack.i.l.bf16 %v4145_v47 }
 0x28b   : > { %v4132_v1 = vunpack.i.h.bf16 %v4130_v7  ;;  %v4131_v15 = vunpack.i.l.bf16 %v4130_v7 }
 0x28c   : > { %2858 = vmatprep.mubr.bf16.mxu1 %v2515_v21  ;;  %v2375_v4 = vsel %vm2346_vm10, %v2342_v40, %v4146_v43  ;;  %v2376_v26 = vsel %vm2346_vm10, %v2343_v0, %v4147_v54 }
 0x28d   : > { %v2408_v49 = vsel %vm840_vm4, %v5185_v46, %v4132_v1  ;;  %v2407_v3 = vsel %vm840_vm4, %v5183_v56, %v4131_v15  ;;  %2859 = vmatmul.mubr.bf16.gmra.mxu1 %v2514_v41  ;;  %v4150_v59 = vpop.permute.xlu1 %4149  ;;  %v2517_v22 = vpack.c.bf16 %v2376_v26, %v2375_v4  ;;  %v5540_v1 = vld [vmem:[%s5651_s4] ss:$0 sm:$0xff] }
 0x28e   : > { %v4135_v61 = vpop.permute.xlu0 %4134  ;;  %v2439_v53 = vsel %vm2313_vm9, %v2407_v3, %v4111_v58  ;;  %v2440_v50 = vsel %vm2313_vm9, %v2408_v49, %v4112_v55  ;;  %v4152_v57 = vunpack.i.h.bf16 %v4150_v59  ;;  %v4151_v12 = vunpack.i.l.bf16 %v4150_v59 }
 0x28f   : > { %v2471_v46 = vsel %vm2346_vm10, %v2439_v53, %v4116_v63  ;;  %v2472_v2 = vsel %vm2346_vm10, %v2440_v50, %v4117_v39  ;;  %v4137_v13 = vunpack.i.h.bf16 %v4135_v61  ;;  %v4136_v11 = vunpack.i.l.bf16 %v4135_v61 }
 0x290   : > { %v2518_v56 = vpack.c.bf16 %v2472_v2, %v2471_v46  ;;  %v2312_v17 = vsel %vm840_vm4, %v5174_v27, %v4152_v57  ;;  %v2311_v16 = vsel %vm840_vm4, %v5172_v44, %v4151_v12 }
 0x291   : > { %v4155_v45 = vpop.permute.xlu1 %4154  ;;  %v2410_v29 = vsel %vm840_vm4, %v4190_v24, %v4137_v13  ;;  %v2409_v62 = vsel %vm840_vm4, %v4191_v37, %v4136_v11 }
 0x292   : > { %v4140_v25 = vpop.permute.xlu0 %4139  ;;  %2866 = vmatprep.mubr.bf16.mxu1 %v2518_v56  ;;  %v4157_v36 = vunpack.i.h.bf16 %v4155_v45  ;;  %v4156_v34 = vunpack.i.l.bf16 %v4155_v45 }
 0x293   : > { %v4142_v42 = vunpack.i.h.bf16 %v4140_v25  ;;  %v4141_v51 = vunpack.i.l.bf16 %v4140_v25 }
 0x294   : > { %v2344_v19 = vsel %vm2313_vm9, %v2311_v16, %v4156_v34  ;;  %v2345_v38 = vsel %vm2313_vm9, %v2312_v17, %v4157_v36 }
 0x295   : > { %2867 = vmatmul.mubr.bf16.gmra.mxu1 %v2517_v22  ;;  %v4165_v10 = vpop.permute.xlu1 %4164  ;;  %v2441_v30 = vsel %vm2313_vm9, %v2409_v62, %v4141_v51  ;;  %v2442_v44 = vsel %vm2313_vm9, %v2410_v29, %v4142_v42 }
 0x296   : > { %v4167_v35 = vunpack.i.h.bf16 %v4165_v10  ;;  %v4166_v28 = vunpack.i.l.bf16 %v4165_v10  ;;  %v4160_v6 = vpop.permute.xlu0 %4159 }
 0x297   : > { %v4162_v20 = vunpack.i.h.bf16 %v4160_v6  ;;  %v4161_v27 = vunpack.i.l.bf16 %v4160_v6 }
 0x298   : > { %v2377_v18 = vsel %vm2346_vm10, %v2344_v19, %v4166_v28  ;;  %v2378_v32 = vsel %vm2346_vm10, %v2345_v38, %v4167_v35 }
 0x299   : > { %v2473_v47 = vsel %vm2346_vm10, %v2441_v30, %v4161_v27  ;;  %v2474_v14 = vsel %vm2346_vm10, %v2442_v44, %v4162_v20  ;;  %v2520_v52 = vpack.c.bf16 %v2378_v32, %v2377_v18 }
 0x29a   : > { %v2521_v60 = vpack.c.bf16 %v2474_v14, %v2473_v47 }
 0x29c   : > { %2874 = vmatprep.mubr.bf16.mxu1 %v2521_v60 }
 0x29d   : > { %2875 = vmatmul.mubr.bf16.gmra.mxu1 %v2520_v52 }
 0x2b5   : > { %v3230_v9 = vpop.f32.mrf.mxu0 }
 0x2b7   : > { %v3231_v31 = vpop.f32.mrf.mxu0 }
 0x2b8   : > { %v3232_v21 = vadd.f32 %v3231_v31, %v3230_v9 }
 0x2b9   : > { %v3233_v7 = vpop.f32.mrf.mxu0 }
 0x2ba   : > { %v2757_v55 = vadd.f32 %v3232_v21, %v5540_v1 }
 0x2bb   : > { %v3234_v5 = vpop.f32.mrf.mxu0 }
 0x2bc   : > { %v3235_v41 = vadd.f32 %v3234_v5, %v3233_v7 }
 0x2bd   : > { %v3386_v15 = vpop.f32.mrf.mxu0 }
 0x2be   : > { %v2760_v33 = vadd.f32 %v3235_v41, %v5540_v1 }
 0x2bf   : > { %v2917_v58 = vpop.f32.mrf.mxu0 }
 0x2c0   : > { %v2918_v54 = vadd.f32 %v2917_v58, %v2757_v55  ;;  %v3236_v43 = vpop.f32.mrf.mxu1 }
 0x2c1   : > { %v3387_v23 = vpop.f32.mrf.mxu0 }
 0x2c2   : > { %3044 = vst.msk [vmem:[%s5547_s8] sm:$0xff] %vm840_vm4, %v2918_v54  ;;  %v3237_v39 = vpop.f32.mrf.mxu1 }
 0x2c3   : > { %v2920_v63 = vpop.f32.mrf.mxu0  ;;  %v3238_v49 = vadd.f32 %v3237_v39, %v3236_v43 }
 0x2c4   : > { %v2921_v3 = vadd.f32 %v2920_v63, %v2760_v33  ;;  %v3239_v59 = vpop.f32.mrf.mxu1 }
 0x2c5   : > { %v2765_v48 = vadd.f32 %v3238_v49, %v5540_v1  ;;  %v3390_v50 = vpop.f32.mrf.mxu0 }
 0x2c6   : > { %3045 = vst.msk [vmem:[%s5547_s8 + $0x8] sm:$0xff] %vm840_vm4, %v2921_v3  ;;  %v3240_v8 = vpop.f32.mrf.mxu1 }
 0x2c7   : > { %v2926_v61 = vadd.f32 %v3386_v15, %v2765_v48  ;;  %v3241_v53 = vadd.f32 %v3240_v8, %v3239_v59  ;;  %v2933_v2 = vpop.f32.mrf.mxu0 }
 0x2c9   : > { %3046 = vst.msk [vmem:[%s5547_s8 + $0x10] sm:$0xff] %vm840_vm4, %v2926_v61  ;;  %v2768_v40 = vadd.f32 %v3241_v53, %v5540_v1  ;;  %v3391_v12 = vpop.f32.mrf.mxu0 }
 0x2cb   : > { %v2929_v46 = vadd.f32 %v3387_v23, %v2768_v40  ;;  %v2936_v36 = vpop.f32.mrf.mxu0 }
 0x2cc   : > { %v3242_v0 = vpop.f32.mrf.mxu1 }
 0x2cd   : > { %3047 = vst.msk [vmem:[%s5547_s8 + $0x18] sm:$0xff] %vm840_vm4, %v2929_v46  ;;  %v3394_v37 = vpop.f32.mrf.mxu0 }
 0x2ce   : > { %v3243_v56 = vpop.f32.mrf.mxu1 }
 0x2cf   : > { %v3244_v4 = vadd.f32 %v3243_v56, %v3242_v0  ;;  %v2949_v6 = vpop.f32.mrf.mxu0 }
 0x2d0   : > { %v3245_v26 = vpop.f32.mrf.mxu1 }
 0x2d1   : > { %v2773_v57 = vadd.f32 %v3244_v4, %v5540_v1  ;;  %v3395_v30 = vpop.f32.mrf.mxu0 }
 0x2d2   : > { %v3246_v45 = vpop.f32.mrf.mxu1 }
 0x2d3   : > { %v2934_v13 = vadd.f32 %v2933_v2, %v2773_v57  ;;  %v3247_v11 = vadd.f32 %v3246_v45, %v3245_v26  ;;  %v2952_v14 = vpop.f32.mrf.mxu0 }
 0x2d5   : > { %3048 = vst.msk [vmem:[%s5547_s8 + $0x20] sm:$0xff] %vm840_vm4, %v2934_v13  ;;  %v2776_v25 = vadd.f32 %v3247_v11, %v5540_v1  ;;  %v3398_v5 = vpop.f32.mrf.mxu0 }
 0x2d7   : > { %v2937_v34 = vadd.f32 %v2936_v36, %v2776_v25  ;;  %v2965_v43 = vpop.f32.mrf.mxu0 }
 0x2d8   : > { %v3248_v22 = vpop.f32.mrf.mxu1 }
 0x2d9   : > { %3049 = vst.msk [vmem:[%s5547_s8 + $0x28] sm:$0xff] %vm840_vm4, %v2937_v34  ;;  %v3399_v3 = vpop.f32.mrf.mxu0 }
 0x2da   : > { %v3249_v42 = vpop.f32.mrf.mxu1 }
 0x2db   : > { %v3250_v51 = vadd.f32 %v3249_v42, %v3248_v22  ;;  %v2968_v53 = vpop.f32.mrf.mxu0 }
 0x2dc   : > { %v3251_v17 = vpop.f32.mrf.mxu1 }
 0x2dd   : > { %v2781_v16 = vadd.f32 %v3250_v51, %v5540_v1  ;;  %v3402_v4 = vpop.f32.mrf.mxu0 }
 0x2de   : > { %v3252_v10 = vpop.f32.mrf.mxu1 }
 0x2df   : > { %v2942_v24 = vadd.f32 %v3390_v50, %v2781_v16  ;;  %v3253_v29 = vadd.f32 %v3252_v10, %v3251_v17  ;;  %v2981_v11 = vpop.f32.mrf.mxu0 }
 0x2e1   : > { %3050 = vst.msk [vmem:[%s5547_s8 + $0x30] sm:$0xff] %vm840_vm4, %v2942_v24  ;;  %v2784_v62 = vadd.f32 %v3253_v29, %v5540_v1  ;;  %v3403_v51 = vpop.f32.mrf.mxu0 }
 0x2e3   : > { %v2945_v28 = vadd.f32 %v3391_v12, %v2784_v62 }
 0x2e4   : > { %v3254_v35 = vpop.f32.mrf.mxu1 }
 0x2e5   : > { %3051 = vst.msk [vmem:[%s5547_s8 + $0x38] sm:$0xff] %vm840_vm4, %v2945_v28 }
 0x2e6   : > { %v3255_v19 = vpop.f32.mrf.mxu1 }
 0x2e7   : > { %v3256_v38 = vadd.f32 %v3255_v19, %v3254_v35 }
 0x2e8   : > { %v3257_v20 = vpop.f32.mrf.mxu1 }
 0x2e9   : > { %v2789_v27 = vadd.f32 %v3256_v38, %v5540_v1 }
 0x2ea   : > { %v3258_v44 = vpop.f32.mrf.mxu1 }
 0x2eb   : > { %v2950_v18 = vadd.f32 %v2949_v6, %v2789_v27  ;;  %v3259_v32 = vadd.f32 %v3258_v44, %v3257_v20 }
 0x2ed   : > { %3052 = vst.msk [vmem:[%s5547_s8 + $0x40] sm:$0xff] %vm840_vm4, %v2950_v18  ;;  %v2792_v47 = vadd.f32 %v3259_v32, %v5540_v1 }
 0x2ef   : > { %v2953_v52 = vadd.f32 %v2952_v14, %v2792_v47 }
 0x2f1   : > { %3053 = vst.msk [vmem:[%s5547_s8 + $0x48] sm:$0xff] %vm840_vm4, %v2953_v52 }
 0x2f8   : > { %v3260_v60 = vpop.f32.mrf.mxu1 }
 0x2fa   : > { %v3261_v9 = vpop.f32.mrf.mxu1 }
 0x2fb   : > { %v3262_v31 = vadd.f32 %v3261_v9, %v3260_v60 }
 0x2fc   : > { %v3263_v7 = vpop.f32.mrf.mxu1 }
 0x2fd   : > { %v2797_v21 = vadd.f32 %v3262_v31, %v5540_v1 }
 0x2fe   : > { %v3264_v15 = vpop.f32.mrf.mxu1 }
 0x2ff   : > { %v2958_v41 = vadd.f32 %v3394_v37, %v2797_v21  ;;  %v3265_v55 = vadd.f32 %v3264_v15, %v3263_v7  ;;  %v2984_v37 = vpop.f32.mrf.mxu0 }
 0x300   : > { %v3266_v58 = vpop.f32.mrf.mxu1 }
 0x301   : > { %3054 = vst.msk [vmem:[%s5547_s8 + $0x50] sm:$0xff] %vm840_vm4, %v2958_v41  ;;  %v2800_v54 = vadd.f32 %v3265_v55, %v5540_v1 }
 0x302   : > { %v3267_v23 = vpop.f32.mrf.mxu1 }
 0x303   : > { %v2961_v33 = vadd.f32 %v3395_v30, %v2800_v54  ;;  %v3268_v39 = vadd.f32 %v3267_v23, %v3266_v58  ;;  %v3406_v30 = vpop.f32.mrf.mxu0 }
 0x304   : > { %v3269_v63 = vpop.f32.mrf.mxu1 }
 0x305   : > { %3055 = vst.msk [vmem:[%s5547_s8 + $0x58] sm:$0xff] %vm840_vm4, %v2961_v33  ;;  %v2805_v49 = vadd.f32 %v3268_v39, %v5540_v1  ;;  %v2997_v47 = vpop.f32.mrf.mxu0 }
 0x306   : > { %v3270_v59 = vpop.f32.mrf.mxu1 }
 0x307   : > { %v2966_v48 = vadd.f32 %v2965_v43, %v2805_v49  ;;  %v3271_v8 = vadd.f32 %v3270_v59, %v3269_v63  ;;  %v3407_v31 = vpop.f32.mrf.mxu0 }
 0x309   : > { %3056 = vst.msk [vmem:[%s5547_s8 + $0x60] sm:$0xff] %vm840_vm4, %v2966_v48  ;;  %v2808_v61 = vadd.f32 %v3271_v8, %v5540_v1  ;;  %v3000_v41 = vpop.f32.mrf.mxu0 }
 0x30b   : > { %v2969_v50 = vadd.f32 %v2968_v53, %v2808_v61  ;;  %v3410_v39 = vpop.f32.mrf.mxu0 }
 0x30d   : > { %3057 = vst.msk [vmem:[%s5547_s8 + $0x68] sm:$0xff] %vm840_vm4, %v2969_v50  ;;  %v3013_v8 = vpop.f32.mrf.mxu0 }
 0x310   : > { %v3272_v40 = vpop.f32.mrf.mxu1 }
 0x312   : > { %v3273_v0 = vpop.f32.mrf.mxu1 }
 0x313   : > { %v3274_v46 = vadd.f32 %v3273_v0, %v3272_v40 }
 0x314   : > { %v3275_v2 = vpop.f32.mrf.mxu1 }
 0x315   : > { %v2813_v56 = vadd.f32 %v3274_v46, %v5540_v1  ;;  %v3411_v46 = vpop.f32.mrf.mxu0 }
 0x316   : > { %v3276_v26 = vpop.f32.mrf.mxu1 }
 0x317   : > { %v2974_v57 = vadd.f32 %v3398_v5, %v2813_v56  ;;  %v3277_v12 = vadd.f32 %v3276_v26, %v3275_v2 }
 0x318   : > { %v3278_v45 = vpop.f32.mrf.mxu1 }
 0x319   : > { %3058 = vst.msk [vmem:[%s5547_s8 + $0x70] sm:$0xff] %vm840_vm4, %v2974_v57  ;;  %v2816_v13 = vadd.f32 %v3277_v12, %v5540_v1  ;;  %v3016_v57 = vpop.f32.mrf.mxu0 }
 0x31a   : > { %v3279_v25 = vpop.f32.mrf.mxu1 }
 0x31b   : > { %v2977_v36 = vadd.f32 %v3399_v3, %v2816_v13  ;;  %v3280_v34 = vadd.f32 %v3279_v25, %v3278_v45 }
 0x31c   : > { %v3281_v22 = vpop.f32.mrf.mxu1 }
 0x31d   : > { %3059 = vst.msk [vmem:[%s5547_s8 + $0x78] sm:$0xff] %vm840_vm4, %v2977_v36  ;;  %v2821_v42 = vadd.f32 %v3280_v34, %v5540_v1  ;;  %v3414_v36 = vpop.f32.mrf.mxu0 }
 0x31e   : > { %v3282_v17 = vpop.f32.mrf.mxu1 }
 0x31f   : > { %v2982_v16 = vadd.f32 %v2981_v11, %v2821_v42  ;;  %v3283_v10 = vadd.f32 %v3282_v17, %v3281_v22 }
 0x321   : > { %v3284_v24 = vpop.f32.mrf.mxu1  ;;  %3060 = vst.msk [vmem:[%s5547_s8 + $0x80] sm:$0xff] %vm840_vm4, %v2982_v16  ;;  %v2824_v29 = vadd.f32 %v3283_v10, %v5540_v1  ;;  %v3029_v16 = vpop.f32.mrf.mxu0 }
 0x323   : > { %v3285_v62 = vpop.f32.mrf.mxu1  ;;  %v2985_v35 = vadd.f32 %v2984_v37, %v2824_v29 }
 0x324   : > { %v3286_v28 = vadd.f32 %v3285_v62, %v3284_v24 }
 0x325   : > { %v3287_v6 = vpop.f32.mrf.mxu1  ;;  %3061 = vst.msk [vmem:[%s5547_s8 + $0x88] sm:$0xff] %vm840_vm4, %v2985_v35  ;;  %v3415_v35 = vpop.f32.mrf.mxu0 }
 0x326   : > { %v2829_v19 = vadd.f32 %v3286_v28, %v5540_v1 }
 0x327   : > { %v3288_v38 = vpop.f32.mrf.mxu1 }
 0x328   : > { %v2990_v20 = vadd.f32 %v3402_v4, %v2829_v19  ;;  %v3289_v27 = vadd.f32 %v3288_v38, %v3287_v6 }
 0x32a   : > { %3062 = vst.msk [vmem:[%s5547_s8 + $0x90] sm:$0xff] %vm840_vm4, %v2990_v20  ;;  %v2832_v44 = vadd.f32 %v3289_v27, %v5540_v1  ;;  %v3032_v27 = vpop.f32.mrf.mxu0 }
 0x32b   : > { %v3290_v32 = vpop.f32.mrf.mxu1 }
 0x32c   : > { %v2993_v18 = vadd.f32 %v3403_v51, %v2832_v44 }
 0x32d   : > { %v3291_v14 = vpop.f32.mrf.mxu1 }
 0x32e   : > { %3063 = vst.msk [vmem:[%s5547_s8 + $0x98] sm:$0xff] %vm840_vm4, %v2993_v18  ;;  %v3292_v52 = vadd.f32 %v3291_v14, %v3290_v32 }
 0x32f   : > { %v3293_v60 = vpop.f32.mrf.mxu1 }
 0x330   : > { %v2837_v9 = vadd.f32 %v3292_v52, %v5540_v1 }
 0x331   : > { %v3294_v7 = vpop.f32.mrf.mxu1 }
 0x332   : > { %v2998_v21 = vadd.f32 %v2997_v47, %v2837_v9  ;;  %v3295_v5 = vadd.f32 %v3294_v7, %v3293_v60 }
 0x334   : > { %3064 = vst.msk [vmem:[%s5547_s8 + $0xa0] sm:$0xff] %vm840_vm4, %v2998_v21  ;;  %v2840_v15 = vadd.f32 %v3295_v5, %v5540_v1 }
 0x336   : > { %v3001_v55 = vadd.f32 %v3000_v41, %v2840_v15 }
 0x338   : > { %3065 = vst.msk [vmem:[%s5547_s8 + $0xa8] sm:$0xff] %vm840_vm4, %v3001_v55 }
 0x339   : > { %v3296_v58 = vpop.f32.mrf.mxu1 }
 0x33b   : > { %v3297_v54 = vpop.f32.mrf.mxu1 }
 0x33c   : > { %v3298_v43 = vadd.f32 %v3297_v54, %v3296_v58 }
 0x33d   : > { %v3299_v23 = vpop.f32.mrf.mxu1 }
 0x33e   : > { %v2845_v33 = vadd.f32 %v3298_v43, %v5540_v1 }
 0x33f   : > { %v3300_v63 = vpop.f32.mrf.mxu1 }
 0x340   : > { %v3006_v49 = vadd.f32 %v3406_v30, %v2845_v33  ;;  %v3301_v3 = vadd.f32 %v3300_v63, %v3299_v23 }
 0x341   : > { %v3302_v59 = vpop.f32.mrf.mxu1 }
 0x342   : > { %3066 = vst.msk [vmem:[%s5547_s8 + $0xb0] sm:$0xff] %vm840_vm4, %v3006_v49  ;;  %v2848_v48 = vadd.f32 %v3301_v3, %v5540_v1 }
 0x343   : > { %v3303_v61 = vpop.f32.mrf.mxu1 }
 0x344   : > { %v3009_v53 = vadd.f32 %v3407_v31, %v2848_v48  ;;  %v3304_v50 = vadd.f32 %v3303_v61, %v3302_v59 }
 0x345   : > { %v3305_v40 = vpop.f32.mrf.mxu1 }
 0x346   : > { %3067 = vst.msk [vmem:[%s5547_s8 + $0xb8] sm:$0xff] %vm840_vm4, %v3009_v53  ;;  %v2853_v0 = vadd.f32 %v3304_v50, %v5540_v1 }
 0x347   : > { %v3306_v2 = vpop.f32.mrf.mxu1 }
 0x348   : > { %v3014_v56 = vadd.f32 %v3013_v8, %v2853_v0  ;;  %v3307_v4 = vadd.f32 %v3306_v2, %v3305_v40 }
 0x34a   : > { %3068 = vst.msk [vmem:[%s5547_s8 + $0xc0] sm:$0xff] %vm840_vm4, %v3014_v56  ;;  %v2856_v26 = vadd.f32 %v3307_v4, %v5540_v1 }
 0x34c   : > { %v3017_v12 = vadd.f32 %v3016_v57, %v2856_v26 }
 0x34d   : > { %v3308_v45 = vpop.f32.mrf.mxu1 }
 0x34e   : > { %3069 = vst.msk [vmem:[%s5547_s8 + $0xc8] sm:$0xff] %vm840_vm4, %v3017_v12 }
 0x34f   : > { %v3309_v13 = vpop.f32.mrf.mxu1 }
 0x350   : > { %v3310_v11 = vadd.f32 %v3309_v13, %v3308_v45 }
 0x351   : > { %v3311_v25 = vpop.f32.mrf.mxu1 }
 0x352   : > { %v2861_v34 = vadd.f32 %v3310_v11, %v5540_v1 }
 0x353   : > { %v3312_v22 = vpop.f32.mrf.mxu1 }
 0x354   : > { %v3022_v42 = vadd.f32 %v3410_v39, %v2861_v34  ;;  %v3313_v51 = vadd.f32 %v3312_v22, %v3311_v25 }
 0x355   : > { %v3314_v17 = vpop.f32.mrf.mxu1 }
 0x356   : > { %3070 = vst.msk [vmem:[%s5547_s8 + $0xd0] sm:$0xff] %vm840_vm4, %v3022_v42  ;;  %v2864_v10 = vadd.f32 %v3313_v51, %v5540_v1 }
 0x357   : > { %v3315_v24 = vpop.f32.mrf.mxu1 }
 0x358   : > { %v3025_v29 = vadd.f32 %v3411_v46, %v2864_v10  ;;  %v3316_v37 = vadd.f32 %v3315_v24, %v3314_v17 }
 0x359   : > { %v3317_v62 = vpop.f32.mrf.mxu1 }
 0x35a   : > { %3071 = vst.msk [vmem:[%s5547_s8 + $0xd8] sm:$0xff] %vm840_vm4, %v3025_v29  ;;  %v2869_v28 = vadd.f32 %v3316_v37, %v5540_v1 }
 0x35b   : > { %v3318_v6 = vpop.f32.mrf.mxu1 }
 0x35c   : > { %v3319_v19 = vadd.f32 %v3318_v6, %v3317_v62  ;;  %v3030_v38 = vadd.f32 %v3029_v16, %v2869_v28 }
 0x35d   : > { %v3320_v20 = vpop.f32.mrf.mxu1 }
 0x35e   : > { %3072 = vst.msk [vmem:[%s5547_s8 + $0xe0] sm:$0xff] %vm840_vm4, %v3030_v38  ;;  %v2872_v30 = vadd.f32 %v3319_v19, %v5540_v1 }
 0x35f   : > { %v3321_v44 = vpop.f32.mrf.mxu1 }
 0x360   : > { %v3322_v18 = vadd.f32 %v3321_v44, %v3320_v20  ;;  %v3033_v32 = vadd.f32 %v3032_v27, %v2872_v30 }
 0x361   : > { %v3323_v47 = vpop.f32.mrf.mxu1 }
 0x362   : > { %v2877_v14 = vadd.f32 %v3322_v18, %v5540_v1  ;;  %3073 = vst.msk [vmem:[%s5547_s8 + $0xe8] sm:$0xff] %vm840_vm4, %v3033_v32 }
 0x363   : > { %v3324_v52 = vpop.f32.mrf.mxu1 }
 0x364   : > { %v3038_v60 = vadd.f32 %v3414_v36, %v2877_v14  ;;  %v3325_v9 = vadd.f32 %v3324_v52, %v3323_v47 }
 0x366   : > { %3074 = vst.msk [vmem:[%s5547_s8 + $0xf0] sm:$0xff] %vm840_vm4, %v3038_v60  ;;  %v2880_v31 = vadd.f32 %v3325_v9, %v5540_v1 }
 0x368   : > { %v3041_v7 = vadd.f32 %v3415_v35, %v2880_v31 }
 0x36a   : > { %3075 = vst.msk [vmem:[%s5547_s8 + $0xf8] sm:$0xff] %vm840_vm4, %v3041_v7 }
 0x36b PF: > { %s15_s18 = sadd.s32 1, %s4198_s18  }
 0x36c   : > { %p12_p4 = scmp.ge.s32.totalorder %s15_s18, 4  }
 0x36e   :  { %14 = sbr.rel (!%p12_p4) target bundleno = 1 (0x1), region = 73 }

</bundles_post_ra>
